<compile_context>
chip_gen: v7x
topology: tpu7x:2x2x1
jax: 0.10.0
libtpu: 0.0.40
codegen_flags: <defaults>
</compile_context>

<pallas_src>
import functools

import jax
import jax.numpy as jnp
import numpy as np
from jax.experimental import pallas as pl
from jax.experimental.pallas import tpu as pltpu

C_FEAT = 32  # encoder.out_dim


def _largest_divisor_leq(n, cap):
    for d in range(min(n, cap), 0, -1):
        if n % d == 0:
            return d
    return 1


# ---------------------------------------------------------------------------
# Kernel 1 (fused): per block of (episode, way) groups
#   f_shot   = relu(Wt_enc @ x_shot + b_enc)          (written out)
#   f_pseudo = relu(Wt_enc @ x_pseudo + b_enc)        (written to output block)
#   a_shot / a_pseudo = means over shots / pseudo shots
#   mask     = sigmoid(Wt_mask @ concat(a_shot, a_pseudo) + b_mask)
#   out_pseudo *= mask                                (in-place on output block)
# ---------------------------------------------------------------------------
def _group_kernel(xs_ref, xp_ref, wte_ref, be_ref, wtm_ref, bm_ref,
                  oxs_ref, oxp_ref):
    wte = wte_ref[...]           # (C, Cin)
    be = be_ref[...]             # (C, 1)
    wtm = wtm_ref[...]           # (C, 2C)
    bm = bm_ref[...]             # (C, 1)

    gb, n_shot = xs_ref.shape[0], xs_ref.shape[1]
    n_pseudo = xp_ref.shape[1]

    for g in range(gb):
        # --- encode shots, accumulate mean, emit features -------------------
        a_shot = None
        for s in range(n_shot):
            f = jnp.dot(wte, xs_ref[g, s], preferred_element_type=jnp.float32)
            f = jnp.maximum(f + be, 0.0)            # (C, HW)
            oxs_ref[g, s] = f
            a_shot = f if s == 0 else a_shot + f
        a_shot = a_shot / float(n_shot)

        # --- encode pseudo shots into the output block, accumulate mean -----
        a_pseudo = None
        for p in range(n_pseudo):
            f = jnp.dot(wte, xp_ref[g, p], preferred_element_type=jnp.float32)
            f = jnp.maximum(f + be, 0.0)            # (C, HW)
            oxp_ref[g, p] = f                       # stash features in VMEM out
            a_pseudo = f if p == 0 else a_pseudo + f
        a_pseudo = a_pseudo / float(n_pseudo)

        # --- masking head: single K=2C dot + sigmoid -------------------------
        total = jnp.concatenate([a_shot, a_pseudo], axis=0)   # (2C, HW)
        logits = jnp.dot(wtm, total, preferred_element_type=jnp.float32) + bm
        mask = jax.nn.sigmoid(logits)                          # (C, HW)

        # --- apply mask in place (broadcast over pseudo shots) ---------------
        for p in range(n_pseudo):
            oxp_ref[g, p] = oxp_ref[g, p] * mask


def group_mask_apply(xs, xp, wte, be, wtm, bm, group_block=None):
    # xs: (G, S, Cin, HW), xp: (G, P, Cin, HW) -- raw pixels, channels-first.
    G, S, cin, hw = xs.shape
    P = xp.shape[1]
    C = wte.shape[0]
    gb = group_block if group_block is not None else _largest_divisor_leq(G, 8)
    out_shapes = (
        jax.ShapeDtypeStruct((G, S, C, hw), jnp.float32),
        jax.ShapeDtypeStruct((G, P, C, hw), jnp.float32),
    )
    return pl.pallas_call(
        _group_kernel,
        out_shape=out_shapes,
        grid_spec=pltpu.PrefetchScalarGridSpec(
            num_scalar_prefetch=0,
            grid=(G // gb,),
            in_specs=[
                pl.BlockSpec((gb, S, cin, hw), lambda i: (i, 0, 0, 0)),
                pl.BlockSpec((gb, P, cin, hw), lambda i: (i, 0, 0, 0)),
                pl.BlockSpec((C, cin), lambda i: (0, 0)),
                pl.BlockSpec((C, 1), lambda i: (0, 0)),
                pl.BlockSpec((C, 2 * C), lambda i: (0, 0)),
                pl.BlockSpec((C, 1), lambda i: (0, 0)),
            ],
            out_specs=(
                pl.BlockSpec((gb, S, C, hw), lambda i: (i, 0, 0, 0)),
                pl.BlockSpec((gb, P, C, hw), lambda i: (i, 0, 0, 0)),
            ),
        ),
        compiler_params=pltpu.CompilerParams(
            dimension_semantics=("parallel",)),
    )(xs, xp, wte, be, wtm, bm)


# ---------------------------------------------------------------------------
# Kernel 2: query encoder = pointwise (1x1) conv + ReLU, channels-first.
#   per image: (C, Cin) @ (Cin, HW) + b -> relu, blocked over many images.
# ---------------------------------------------------------------------------
def _encoder_kernel(x_ref, wte_ref, be_ref, o_ref):
    wte = wte_ref[...]           # (C, Cin)
    be = be_ref[...]             # (C, 1)
    for i in range(x_ref.shape[0]):
        y = jnp.dot(wte, x_ref[i], preferred_element_type=jnp.float32) + be
        o_ref[i] = jnp.maximum(y, 0.0)


def encode_images(x, wte, be, img_block=None):
    # x: (M, Cin, HW) raw pixels, channels-first.
    M, cin, hw = x.shape
    C = wte.shape[0]
    mb = img_block if img_block is not None else _largest_divisor_leq(M, 16)
    return pl.pallas_call(
        _encoder_kernel,
        out_shape=jax.ShapeDtypeStruct((M, C, hw), jnp.float32),
        grid_spec=pltpu.PrefetchScalarGridSpec(
            num_scalar_prefetch=0,
            grid=(M // mb,),
            in_specs=[
                pl.BlockSpec((mb, cin, hw), lambda i: (i, 0, 0)),
                pl.BlockSpec((C, cin), lambda i: (0, 0)),
                pl.BlockSpec((C, 1), lambda i: (0, 0)),
            ],
            out_specs=pl.BlockSpec((mb, C, hw), lambda i: (i, 0, 0)),
        ),
        compiler_params=pltpu.CompilerParams(
            dimension_semantics=("parallel",)),
    )(x, wte, be)


# ---------------------------------------------------------------------------
# MaskingModel.forward
# ---------------------------------------------------------------------------
def masking_model_forward(params, x_shot, x_pseudo, x_query):
    E, N, S, Cin, H, W = x_shot.shape
    P = x_pseudo.shape[2]
    Q = x_query.shape[1]
    HW = H * W
    C = params["enc_w"].shape[1]

    # Weights in channels-first orientation (tiny, done once outside kernels).
    wte = params["enc_w"].T                      # (C, Cin)
    be = params["enc_b"].reshape(C, 1)           # (C, 1)
    wtm = params["mask_w"].T                     # (C, 2C)
    bm = params["mask_b"].reshape(C, 1)          # (C, 1)

    # NCHW is already channels-first: only flatten H,W -> HW (no transposes).
    xs = x_shot.reshape(E * N, S, Cin, HW)
    xp = x_pseudo.reshape(E * N, P, Cin, HW)
    xq = x_query.reshape(E * Q, Cin, HW)

    # Fused encode + mean + mask + multiply for shot/pseudo (no HBM round-trip).
    xs_feat, xp_masked = group_mask_apply(xs, xp, wte, be, wtm, bm)
    # Plain encoder for queries.
    xq_feat = encode_images(xq, wte, be)

    xs_feat = xs_feat.reshape(E, N, S, C, H, W)
    xp_masked = xp_masked.reshape(E, N, P, C, H, W)
    xq_feat = xq_feat.reshape(E, Q, C, H, W)
    return xs_feat, xp_masked, xq_feat


# ---------------------------------------------------------------------------
# Pure-JAX reference for correctness checking.
# ---------------------------------------------------------------------------
def ref_forward(params, x_shot, x_pseudo, x_query):
    def enc(x):
        y = jnp.einsum("...chw,cd->...dhw", x, params["enc_w"])
        y = y + params["enc_b"][0][:, None, None]
        return jnp.maximum(y, 0.0)

    xs, xp, xq = enc(x_shot), enc(x_pseudo), enc(x_query)
    a_shot = jnp.mean(xs, axis=-4)
    a_pseudo = jnp.mean(xp, axis=-4)
    total = jnp.concatenate([a_shot, a_pseudo], axis=-3)
    logits = jnp.einsum("...chw,cd->...dhw", total, params["mask_w"])
    logits = logits + params["mask_b"][0][:, None, None]
    mask = jax.nn.sigmoid(logits)[:, :, None]  # unsqueeze(dim=2)
    return xs, xp * mask, xq


if __name__ == "__main__":
    E, N, S, P, Q, H, W = 2, 2, 2, 3, 4, 16, 16

    key = jax.random.PRNGKey(0)
    kxs, kxp, kxq, kw1, kw2 = jax.random.split(key, 5)
    x_shot = jax.random.normal(kxs, (E, N, S, 3, H, W), jnp.float32)
    x_pseudo = jax.random.normal(kxp, (E, N, P, 3, H, W), jnp.float32)
    x_query = jax.random.normal(kxq, (E, Q, 3, H, W), jnp.float32)

    params = {
        "enc_w": 0.1 * jax.random.normal(kw1, (3, C_FEAT), jnp.float32),
        "enc_b": jnp.zeros((1, C_FEAT), jnp.float32),
        "mask_w": 0.1 * jax.random.normal(kw2, (2 * C_FEAT, C_FEAT), jnp.float32),
        "mask_b": jnp.zeros((1, C_FEAT), jnp.float32),
    }

    fwd = jax.jit(functools.partial(masking_model_forward, params))
    out_shot, out_pseudo, out_query = fwd(x_shot, x_pseudo, x_query)
    jax.block_until_ready((out_shot, out_pseudo, out_query))

    r_shot, r_pseudo, r_query = ref_forward(params, x_shot, x_pseudo, x_query)
    np.testing.assert_allclose(np.asarray(out_shot), np.asarray(r_shot), rtol=1e-5, atol=1e-5)
    np.testing.assert_allclose(np.asarray(out_pseudo), np.asarray(r_pseudo), rtol=1e-5, atol=1e-5)
    np.testing.assert_allclose(np.asarray(out_query), np.asarray(r_query), rtol=1e-5, atol=1e-5)

    print("KERNEL_OK")
</pallas_src>

<mosaic_0001>
module attributes {stable_mosaic.version = 11 : i64} {
  func.func @_group_kernel(%arg0: i32, %arg1: memref<4x2x3x256xf32, #tpu.memory_space<vmem>>, %arg2: memref<4x3x3x256xf32, #tpu.memory_space<vmem>>, %arg3: memref<32x3xf32, #tpu.memory_space<vmem>>, %arg4: memref<32x1xf32, #tpu.memory_space<vmem>>, %arg5: memref<32x64xf32, #tpu.memory_space<vmem>>, %arg6: memref<32x1xf32, #tpu.memory_space<vmem>>, %arg7: memref<4x2x32x256xf32, #tpu.memory_space<vmem>>, %arg8: memref<4x3x32x256xf32, #tpu.memory_space<vmem>>) attributes {dimension_semantics = [#tpu.dimension_semantics<parallel>], iteration_bounds = array<i64: 1>, scalar_prefetch = 0 : i64, scratch_operands = 0 : i64, tpu.core_type = #tpu.core_type<tc>, window_params = [{transform_indices = @transform_0, window_bounds = array<i64: 4, 2, 3, 256>}, {transform_indices = @transform_1, window_bounds = array<i64: 4, 3, 3, 256>}, {pipeline_mode = #tpu.pipeline_mode<synchronous>, transform_indices = @transform_2, window_bounds = array<i64: 32, 3>}, {pipeline_mode = #tpu.pipeline_mode<synchronous>, transform_indices = @transform_3, window_bounds = array<i64: 32, 1>}, {pipeline_mode = #tpu.pipeline_mode<synchronous>, transform_indices = @transform_4, window_bounds = array<i64: 32, 64>}, {pipeline_mode = #tpu.pipeline_mode<synchronous>, transform_indices = @transform_5, window_bounds = array<i64: 32, 1>}, {transform_indices = @transform_6, window_bounds = array<i64: 4, 2, 32, 256>}, {transform_indices = @transform_7, window_bounds = array<i64: 4, 3, 32, 256>}]} {
    %c0 = arith.constant 0 : index
    %c0_0 = arith.constant 0 : index
    %0 = vector.load %arg3[%c0, %c0_0] : memref<32x3xf32, #tpu.memory_space<vmem>>, vector<32x3xf32>
    %c0_1 = arith.constant 0 : index
    %c0_2 = arith.constant 0 : index
    %1 = vector.load %arg4[%c0_1, %c0_2] : memref<32x1xf32, #tpu.memory_space<vmem>>, vector<32x1xf32>
    %c0_3 = arith.constant 0 : index
    %c0_4 = arith.constant 0 : index
    %2 = vector.load %arg5[%c0_3, %c0_4] : memref<32x64xf32, #tpu.memory_space<vmem>>, vector<32x64xf32>
    %c0_5 = arith.constant 0 : index
    %c0_6 = arith.constant 0 : index
    %3 = vector.load %arg6[%c0_5, %c0_6] : memref<32x1xf32, #tpu.memory_space<vmem>>, vector<32x1xf32>
    %c0_7 = arith.constant 0 : index
    %c0_8 = arith.constant 0 : index
    %c0_9 = arith.constant 0 : index
    %c0_10 = arith.constant 0 : index
    %4 = vector.load %arg1[%c0_7, %c0_8, %c0_9, %c0_10] : memref<4x2x3x256xf32, #tpu.memory_space<vmem>>, vector<1x1x3x256xf32>
    %5 = vector.shape_cast %4 : vector<1x1x3x256xf32> to vector<3x256xf32>
    %cst = arith.constant dense<0.000000e+00> : vector<32x256xf32>
    %6 = tpu.matmul %0, %5, %cst {dimension_numbers = #tpu.dot_dimension_numbers<[1], [0], [0], [1], [0, 0, 1, 1], [], []>} : vector<32x3xf32>, vector<3x256xf32>, vector<32x256xf32> -> vector<32x256xf32>
    %7 = vector.broadcast %1 : vector<32x1xf32> to vector<32x256xf32>
    %8 = arith.addf %6, %7 : vector<32x256xf32>
    %cst_11 = arith.constant 0.000000e+00 : f32
    %9 = vector.broadcast %cst_11 : f32 to vector<32x256xf32>
    %10 = arith.maximumf %8, %9 : vector<32x256xf32>
    %c0_12 = arith.constant 0 : index
    %c0_13 = arith.constant 0 : index
    %c0_14 = arith.constant 0 : index
    %c0_15 = arith.constant 0 : index
    %11 = vector.load %arg7[%c0_12, %c0_13, %c0_14, %c0_15] : memref<4x2x32x256xf32, #tpu.memory_space<vmem>>, vector<1x1x32x256xf32>
    %12 = vector.shape_cast %11 : vector<1x1x32x256xf32> to vector<32x256xf32>
    %13 = vector.shape_cast %10 : vector<32x256xf32> to vector<1x1x32x256xf32>
    tpu.vector_store %arg7[%c0_12, %c0_13, %c0_14, %c0_15], %13 {strides = array<i32>} : memref<4x2x32x256xf32, #tpu.memory_space<vmem>>, vector<1x1x32x256xf32>,
    %c0_16 = arith.constant 0 : index
    %c1 = arith.constant 1 : index
    %c0_17 = arith.constant 0 : index
    %c0_18 = arith.constant 0 : index
    %14 = vector.load %arg1[%c0_16, %c1, %c0_17, %c0_18] : memref<4x2x3x256xf32, #tpu.memory_space<vmem>>, vector<1x1x3x256xf32>
    %15 = vector.shape_cast %14 : vector<1x1x3x256xf32> to vector<3x256xf32>
    %cst_19 = arith.constant dense<0.000000e+00> : vector<32x256xf32>
    %16 = tpu.matmul %0, %15, %cst_19 {dimension_numbers = #tpu.dot_dimension_numbers<[1], [0], [0], [1], [0, 0, 1, 1], [], []>} : vector<32x3xf32>, vector<3x256xf32>, vector<32x256xf32> -> vector<32x256xf32>
    %17 = vector.broadcast %1 : vector<32x1xf32> to vector<32x256xf32>
    %18 = arith.addf %16, %17 : vector<32x256xf32>
    %cst_20 = arith.constant 0.000000e+00 : f32
    %19 = vector.broadcast %cst_20 : f32 to vector<32x256xf32>
    %20 = arith.maximumf %18, %19 : vector<32x256xf32>
    %c0_21 = arith.constant 0 : index
    %c1_22 = arith.constant 1 : index
    %c0_23 = arith.constant 0 : index
    %c0_24 = arith.constant 0 : index
    %21 = vector.load %arg7[%c0_21, %c1_22, %c0_23, %c0_24] : memref<4x2x32x256xf32, #tpu.memory_space<vmem>>, vector<1x1x32x256xf32>
    %22 = vector.shape_cast %21 : vector<1x1x32x256xf32> to vector<32x256xf32>
    %23 = vector.shape_cast %20 : vector<32x256xf32> to vector<1x1x32x256xf32>
    tpu.vector_store %arg7[%c0_21, %c1_22, %c0_23, %c0_24], %23 {strides = array<i32>} : memref<4x2x32x256xf32, #tpu.memory_space<vmem>>, vector<1x1x32x256xf32>,
    %24 = arith.addf %10, %20 : vector<32x256xf32>
    %cst_25 = arith.constant 2.000000e+00 : f32
    %25 = vector.broadcast %cst_25 : f32 to vector<32x256xf32>
    %26 = arith.divf %24, %25 : vector<32x256xf32>
    %c0_26 = arith.constant 0 : index
    %c0_27 = arith.constant 0 : index
    %c0_28 = arith.constant 0 : index
    %c0_29 = arith.constant 0 : index
    %27 = vector.load %arg2[%c0_26, %c0_27, %c0_28, %c0_29] : memref<4x3x3x256xf32, #tpu.memory_space<vmem>>, vector<1x1x3x256xf32>
    %28 = vector.shape_cast %27 : vector<1x1x3x256xf32> to vector<3x256xf32>
    %cst_30 = arith.constant dense<0.000000e+00> : vector<32x256xf32>
    %29 = tpu.matmul %0, %28, %cst_30 {dimension_numbers = #tpu.dot_dimension_numbers<[1], [0], [0], [1], [0, 0, 1, 1], [], []>} : vector<32x3xf32>, vector<3x256xf32>, vector<32x256xf32> -> vector<32x256xf32>
    %30 = vector.broadcast %1 : vector<32x1xf32> to vector<32x256xf32>
    %31 = arith.addf %29, %30 : vector<32x256xf32>
    %cst_31 = arith.constant 0.000000e+00 : f32
    %32 = vector.broadcast %cst_31 : f32 to vector<32x256xf32>
    %33 = arith.maximumf %31, %32 : vector<32x256xf32>
    %c0_32 = arith.constant 0 : index
    %c0_33 = arith.constant 0 : index
    %c0_34 = arith.constant 0 : index
    %c0_35 = arith.constant 0 : index
    %34 = vector.load %arg8[%c0_32, %c0_33, %c0_34, %c0_35] : memref<4x3x32x256xf32, #tpu.memory_space<vmem>>, vector<1x1x32x256xf32>
    %35 = vector.shape_cast %34 : vector<1x1x32x256xf32> to vector<32x256xf32>
    %36 = vector.shape_cast %33 : vector<32x256xf32> to vector<1x1x32x256xf32>
    tpu.vector_store %arg8[%c0_32, %c0_33, %c0_34, %c0_35], %36 {strides = array<i32>} : memref<4x3x32x256xf32, #tpu.memory_space<vmem>>, vector<1x1x32x256xf32>,
    %c0_36 = arith.constant 0 : index
    %c1_37 = arith.constant 1 : index
    %c0_38 = arith.constant 0 : index
    %c0_39 = arith.constant 0 : index
    %37 = vector.load %arg2[%c0_36, %c1_37, %c0_38, %c0_39] : memref<4x3x3x256xf32, #tpu.memory_space<vmem>>, vector<1x1x3x256xf32>
    %38 = vector.shape_cast %37 : vector<1x1x3x256xf32> to vector<3x256xf32>
    %cst_40 = arith.constant dense<0.000000e+00> : vector<32x256xf32>
    %39 = tpu.matmul %0, %38, %cst_40 {dimension_numbers = #tpu.dot_dimension_numbers<[1], [0], [0], [1], [0, 0, 1, 1], [], []>} : vector<32x3xf32>, vector<3x256xf32>, vector<32x256xf32> -> vector<32x256xf32>
    %40 = vector.broadcast %1 : vector<32x1xf32> to vector<32x256xf32>
    %41 = arith.addf %39, %40 : vector<32x256xf32>
    %cst_41 = arith.constant 0.000000e+00 : f32
    %42 = vector.broadcast %cst_41 : f32 to vector<32x256xf32>
    %43 = arith.maximumf %41, %42 : vector<32x256xf32>
    %c0_42 = arith.constant 0 : index
    %c1_43 = arith.constant 1 : index
    %c0_44 = arith.constant 0 : index
    %c0_45 = arith.constant 0 : index
    %44 = vector.load %arg8[%c0_42, %c1_43, %c0_44, %c0_45] : memref<4x3x32x256xf32, #tpu.memory_space<vmem>>, vector<1x1x32x256xf32>
    %45 = vector.shape_cast %44 : vector<1x1x32x256xf32> to vector<32x256xf32>
    %46 = vector.shape_cast %43 : vector<32x256xf32> to vector<1x1x32x256xf32>
    tpu.vector_store %arg8[%c0_42, %c1_43, %c0_44, %c0_45], %46 {strides = array<i32>} : memref<4x3x32x256xf32, #tpu.memory_space<vmem>>, vector<1x1x32x256xf32>,
    %47 = arith.addf %33, %43 : vector<32x256xf32>
    %c0_46 = arith.constant 0 : index
    %c2 = arith.constant 2 : index
    %c0_47 = arith.constant 0 : index
    %c0_48 = arith.constant 0 : index
    %48 = vector.load %arg2[%c0_46, %c2, %c0_47, %c0_48] : memref<4x3x3x256xf32, #tpu.memory_space<vmem>>, vector<1x1x3x256xf32>
    %49 = vector.shape_cast %48 : vector<1x1x3x256xf32> to vector<3x256xf32>
    %cst_49 = arith.constant dense<0.000000e+00> : vector<32x256xf32>
    %50 = tpu.matmul %0, %49, %cst_49 {dimension_numbers = #tpu.dot_dimension_numbers<[1], [0], [0], [1], [0, 0, 1, 1], [], []>} : vector<32x3xf32>, vector<3x256xf32>, vector<32x256xf32> -> vector<32x256xf32>
    %51 = vector.broadcast %1 : vector<32x1xf32> to vector<32x256xf32>
    %52 = arith.addf %50, %51 : vector<32x256xf32>
    %cst_50 = arith.constant 0.000000e+00 : f32
    %53 = vector.broadcast %cst_50 : f32 to vector<32x256xf32>
    %54 = arith.maximumf %52, %53 : vector<32x256xf32>
    %c0_51 = arith.constant 0 : index
    %c2_52 = arith.constant 2 : index
    %c0_53 = arith.constant 0 : index
    %c0_54 = arith.constant 0 : index
    %55 = vector.load %arg8[%c0_51, %c2_52, %c0_53, %c0_54] : memref<4x3x32x256xf32, #tpu.memory_space<vmem>>, vector<1x1x32x256xf32>
    %56 = vector.shape_cast %55 : vector<1x1x32x256xf32> to vector<32x256xf32>
    %57 = vector.shape_cast %54 : vector<32x256xf32> to vector<1x1x32x256xf32>
    tpu.vector_store %arg8[%c0_51, %c2_52, %c0_53, %c0_54], %57 {strides = array<i32>} : memref<4x3x32x256xf32, #tpu.memory_space<vmem>>, vector<1x1x32x256xf32>,
    %58 = arith.addf %47, %54 : vector<32x256xf32>
    %cst_55 = arith.constant 3.000000e+00 : f32
    %59 = vector.broadcast %cst_55 : f32 to vector<32x256xf32>
    %60 = arith.divf %58, %59 : vector<32x256xf32>
    %61 = tpu.concatenate %26, %60 in 0 : vector<32x256xf32>, vector<32x256xf32> -> vector<64x256xf32>
    %cst_56 = arith.constant dense<0.000000e+00> : vector<32x256xf32>
    %62 = tpu.matmul %2, %61, %cst_56 {dimension_numbers = #tpu.dot_dimension_numbers<[1], [0], [0], [1], [0, 0, 1, 1], [], []>} : vector<32x64xf32>, vector<64x256xf32>, vector<32x256xf32> -> vector<32x256xf32>
    %63 = vector.broadcast %3 : vector<32x1xf32> to vector<32x256xf32>
    %64 = arith.addf %62, %63 : vector<32x256xf32>
    %65 = arith.negf %64 : vector<32x256xf32>
    %66 = math.exp %65 : vector<32x256xf32>
    %cst_57 = arith.constant 1.000000e+00 : f32
    %67 = vector.broadcast %cst_57 : f32 to vector<32x256xf32>
    %68 = arith.addf %67, %66 : vector<32x256xf32>
    %69 = arith.divf %67, %68 : vector<32x256xf32>
    %c0_58 = arith.constant 0 : index
    %c0_59 = arith.constant 0 : index
    %c0_60 = arith.constant 0 : index
    %c0_61 = arith.constant 0 : index
    %70 = vector.load %arg8[%c0_58, %c0_59, %c0_60, %c0_61] : memref<4x3x32x256xf32, #tpu.memory_space<vmem>>, vector<1x1x32x256xf32>
    %71 = vector.shape_cast %70 : vector<1x1x32x256xf32> to vector<32x256xf32>
    %72 = arith.mulf %71, %69 : vector<32x256xf32>
    %c0_62 = arith.constant 0 : index
    %c0_63 = arith.constant 0 : index
    %c0_64 = arith.constant 0 : index
    %c0_65 = arith.constant 0 : index
    %73 = vector.load %arg8[%c0_62, %c0_63, %c0_64, %c0_65] : memref<4x3x32x256xf32, #tpu.memory_space<vmem>>, vector<1x1x32x256xf32>
    %74 = vector.shape_cast %73 : vector<1x1x32x256xf32> to vector<32x256xf32>
    %75 = vector.shape_cast %72 : vector<32x256xf32> to vector<1x1x32x256xf32>
    tpu.vector_store %arg8[%c0_62, %c0_63, %c0_64, %c0_65], %75 {strides = array<i32>} : memref<4x3x32x256xf32, #tpu.memory_space<vmem>>, vector<1x1x32x256xf32>,
    %c0_66 = arith.constant 0 : index
    %c1_67 = arith.constant 1 : index
    %c0_68 = arith.constant 0 : index
    %c0_69 = arith.constant 0 : index
    %76 = vector.load %arg8[%c0_66, %c1_67, %c0_68, %c0_69] : memref<4x3x32x256xf32, #tpu.memory_space<vmem>>, vector<1x1x32x256xf32>
    %77 = vector.shape_cast %76 : vector<1x1x32x256xf32> to vector<32x256xf32>
    %78 = arith.mulf %77, %69 : vector<32x256xf32>
    %c0_70 = arith.constant 0 : index
    %c1_71 = arith.constant 1 : index
    %c0_72 = arith.constant 0 : index
    %c0_73 = arith.constant 0 : index
    %79 = vector.load %arg8[%c0_70, %c1_71, %c0_72, %c0_73] : memref<4x3x32x256xf32, #tpu.memory_space<vmem>>, vector<1x1x32x256xf32>
    %80 = vector.shape_cast %79 : vector<1x1x32x256xf32> to vector<32x256xf32>
    %81 = vector.shape_cast %78 : vector<32x256xf32> to vector<1x1x32x256xf32>
    tpu.vector_store %arg8[%c0_70, %c1_71, %c0_72, %c0_73], %81 {strides = array<i32>} : memref<4x3x32x256xf32, #tpu.memory_space<vmem>>, vector<1x1x32x256xf32>,
    %c0_74 = arith.constant 0 : index
    %c2_75 = arith.constant 2 : index
    %c0_76 = arith.constant 0 : index
    %c0_77 = arith.constant 0 : index
    %82 = vector.load %arg8[%c0_74, %c2_75, %c0_76, %c0_77] : memref<4x3x32x256xf32, #tpu.memory_space<vmem>>, vector<1x1x32x256xf32>
    %83 = vector.shape_cast %82 : vector<1x1x32x256xf32> to vector<32x256xf32>
    %84 = arith.mulf %83, %69 : vector<32x256xf32>
    %c0_78 = arith.constant 0 : index
    %c2_79 = arith.constant 2 : index
    %c0_80 = arith.constant 0 : index
    %c0_81 = arith.constant 0 : index
    %85 = vector.load %arg8[%c0_78, %c2_79, %c0_80, %c0_81] : memref<4x3x32x256xf32, #tpu.memory_space<vmem>>, vector<1x1x32x256xf32>
    %86 = vector.shape_cast %85 : vector<1x1x32x256xf32> to vector<32x256xf32>
    %87 = vector.shape_cast %84 : vector<32x256xf32> to vector<1x1x32x256xf32>
    tpu.vector_store %arg8[%c0_78, %c2_79, %c0_80, %c0_81], %87 {strides = array<i32>} : memref<4x3x32x256xf32, #tpu.memory_space<vmem>>, vector<1x1x32x256xf32>,
    %c1_82 = arith.constant 1 : index
    %c0_83 = arith.constant 0 : index
    %c0_84 = arith.constant 0 : index
    %c0_85 = arith.constant 0 : index
    %88 = vector.load %arg1[%c1_82, %c0_83, %c0_84, %c0_85] : memref<4x2x3x256xf32, #tpu.memory_space<vmem>>, vector<1x1x3x256xf32>
    %89 = vector.shape_cast %88 : vector<1x1x3x256xf32> to vector<3x256xf32>
    %cst_86 = arith.constant dense<0.000000e+00> : vector<32x256xf32>
    %90 = tpu.matmul %0, %89, %cst_86 {dimension_numbers = #tpu.dot_dimension_numbers<[1], [0], [0], [1], [0, 0, 1, 1], [], []>} : vector<32x3xf32>, vector<3x256xf32>, vector<32x256xf32> -> vector<32x256xf32>
    %91 = vector.broadcast %1 : vector<32x1xf32> to vector<32x256xf32>
    %92 = arith.addf %90, %91 : vector<32x256xf32>
    %cst_87 = arith.constant 0.000000e+00 : f32
    %93 = vector.broadcast %cst_87 : f32 to vector<32x256xf32>
    %94 = arith.maximumf %92, %93 : vector<32x256xf32>
    %c1_88 = arith.constant 1 : index
    %c0_89 = arith.constant 0 : index
    %c0_90 = arith.constant 0 : index
    %c0_91 = arith.constant 0 : index
    %95 = vector.load %arg7[%c1_88, %c0_89, %c0_90, %c0_91] : memref<4x2x32x256xf32, #tpu.memory_space<vmem>>, vector<1x1x32x256xf32>
    %96 = vector.shape_cast %95 : vector<1x1x32x256xf32> to vector<32x256xf32>
    %97 = vector.shape_cast %94 : vector<32x256xf32> to vector<1x1x32x256xf32>
    tpu.vector_store %arg7[%c1_88, %c0_89, %c0_90, %c0_91], %97 {strides = array<i32>} : memref<4x2x32x256xf32, #tpu.memory_space<vmem>>, vector<1x1x32x256xf32>,
    %c1_92 = arith.constant 1 : index
    %c1_93 = arith.constant 1 : index
    %c0_94 = arith.constant 0 : index
    %c0_95 = arith.constant 0 : index
    %98 = vector.load %arg1[%c1_92, %c1_93, %c0_94, %c0_95] : memref<4x2x3x256xf32, #tpu.memory_space<vmem>>, vector<1x1x3x256xf32>
    %99 = vector.shape_cast %98 : vector<1x1x3x256xf32> to vector<3x256xf32>
    %cst_96 = arith.constant dense<0.000000e+00> : vector<32x256xf32>
    %100 = tpu.matmul %0, %99, %cst_96 {dimension_numbers = #tpu.dot_dimension_numbers<[1], [0], [0], [1], [0, 0, 1, 1], [], []>} : vector<32x3xf32>, vector<3x256xf32>, vector<32x256xf32> -> vector<32x256xf32>
    %101 = vector.broadcast %1 : vector<32x1xf32> to vector<32x256xf32>
    %102 = arith.addf %100, %101 : vector<32x256xf32>
    %cst_97 = arith.constant 0.000000e+00 : f32
    %103 = vector.broadcast %cst_97 : f32 to vector<32x256xf32>
    %104 = arith.maximumf %102, %103 : vector<32x256xf32>
    %c1_98 = arith.constant 1 : index
    %c1_99 = arith.constant 1 : index
    %c0_100 = arith.constant 0 : index
    %c0_101 = arith.constant 0 : index
    %105 = vector.load %arg7[%c1_98, %c1_99, %c0_100, %c0_101] : memref<4x2x32x256xf32, #tpu.memory_space<vmem>>, vector<1x1x32x256xf32>
    %106 = vector.shape_cast %105 : vector<1x1x32x256xf32> to vector<32x256xf32>
    %107 = vector.shape_cast %104 : vector<32x256xf32> to vector<1x1x32x256xf32>
    tpu.vector_store %arg7[%c1_98, %c1_99, %c0_100, %c0_101], %107 {strides = array<i32>} : memref<4x2x32x256xf32, #tpu.memory_space<vmem>>, vector<1x1x32x256xf32>,
    %108 = arith.addf %94, %104 : vector<32x256xf32>
    %cst_102 = arith.constant 2.000000e+00 : f32
    %109 = vector.broadcast %cst_102 : f32 to vector<32x256xf32>
    %110 = arith.divf %108, %109 : vector<32x256xf32>
    %c1_103 = arith.constant 1 : index
    %c0_104 = arith.constant 0 : index
    %c0_105 = arith.constant 0 : index
    %c0_106 = arith.constant 0 : index
    %111 = vector.load %arg2[%c1_103, %c0_104, %c0_105, %c0_106] : memref<4x3x3x256xf32, #tpu.memory_space<vmem>>, vector<1x1x3x256xf32>
    %112 = vector.shape_cast %111 : vector<1x1x3x256xf32> to vector<3x256xf32>
    %cst_107 = arith.constant dense<0.000000e+00> : vector<32x256xf32>
    %113 = tpu.matmul %0, %112, %cst_107 {dimension_numbers = #tpu.dot_dimension_numbers<[1], [0], [0], [1], [0, 0, 1, 1], [], []>} : vector<32x3xf32>, vector<3x256xf32>, vector<32x256xf32> -> vector<32x256xf32>
    %114 = vector.broadcast %1 : vector<32x1xf32> to vector<32x256xf32>
    %115 = arith.addf %113, %114 : vector<32x256xf32>
    %cst_108 = arith.constant 0.000000e+00 : f32
    %116 = vector.broadcast %cst_108 : f32 to vector<32x256xf32>
    %117 = arith.maximumf %115, %116 : vector<32x256xf32>
    %c1_109 = arith.constant 1 : index
    %c0_110 = arith.constant 0 : index
    %c0_111 = arith.constant 0 : index
    %c0_112 = arith.constant 0 : index
    %118 = vector.load %arg8[%c1_109, %c0_110, %c0_111, %c0_112] : memref<4x3x32x256xf32, #tpu.memory_space<vmem>>, vector<1x1x32x256xf32>
    %119 = vector.shape_cast %118 : vector<1x1x32x256xf32> to vector<32x256xf32>
    %120 = vector.shape_cast %117 : vector<32x256xf32> to vector<1x1x32x256xf32>
    tpu.vector_store %arg8[%c1_109, %c0_110, %c0_111, %c0_112], %120 {strides = array<i32>} : memref<4x3x32x256xf32, #tpu.memory_space<vmem>>, vector<1x1x32x256xf32>,
    %c1_113 = arith.constant 1 : index
    %c1_114 = arith.constant 1 : index
    %c0_115 = arith.constant 0 : index
    %c0_116 = arith.constant 0 : index
    %121 = vector.load %arg2[%c1_113, %c1_114, %c0_115, %c0_116] : memref<4x3x3x256xf32, #tpu.memory_space<vmem>>, vector<1x1x3x256xf32>
    %122 = vector.shape_cast %121 : vector<1x1x3x256xf32> to vector<3x256xf32>
    %cst_117 = arith.constant dense<0.000000e+00> : vector<32x256xf32>
    %123 = tpu.matmul %0, %122, %cst_117 {dimension_numbers = #tpu.dot_dimension_numbers<[1], [0], [0], [1], [0, 0, 1, 1], [], []>} : vector<32x3xf32>, vector<3x256xf32>, vector<32x256xf32> -> vector<32x256xf32>
    %124 = vector.broadcast %1 : vector<32x1xf32> to vector<32x256xf32>
    %125 = arith.addf %123, %124 : vector<32x256xf32>
    %cst_118 = arith.constant 0.000000e+00 : f32
    %126 = vector.broadcast %cst_118 : f32 to vector<32x256xf32>
    %127 = arith.maximumf %125, %126 : vector<32x256xf32>
    %c1_119 = arith.constant 1 : index
    %c1_120 = arith.constant 1 : index
    %c0_121 = arith.constant 0 : index
    %c0_122 = arith.constant 0 : index
    %128 = vector.load %arg8[%c1_119, %c1_120, %c0_121, %c0_122] : memref<4x3x32x256xf32, #tpu.memory_space<vmem>>, vector<1x1x32x256xf32>
    %129 = vector.shape_cast %128 : vector<1x1x32x256xf32> to vector<32x256xf32>
    %130 = vector.shape_cast %127 : vector<32x256xf32> to vector<1x1x32x256xf32>
    tpu.vector_store %arg8[%c1_119, %c1_120, %c0_121, %c0_122], %130 {strides = array<i32>} : memref<4x3x32x256xf32, #tpu.memory_space<vmem>>, vector<1x1x32x256xf32>,
    %131 = arith.addf %117, %127 : vector<32x256xf32>
    %c1_123 = arith.constant 1 : index
    %c2_124 = arith.constant 2 : index
    %c0_125 = arith.constant 0 : index
    %c0_126 = arith.constant 0 : index
    %132 = vector.load %arg2[%c1_123, %c2_124, %c0_125, %c0_126] : memref<4x3x3x256xf32, #tpu.memory_space<vmem>>, vector<1x1x3x256xf32>
    %133 = vector.shape_cast %132 : vector<1x1x3x256xf32> to vector<3x256xf32>
    %cst_127 = arith.constant dense<0.000000e+00> : vector<32x256xf32>
    %134 = tpu.matmul %0, %133, %cst_127 {dimension_numbers = #tpu.dot_dimension_numbers<[1], [0], [0], [1], [0, 0, 1, 1], [], []>} : vector<32x3xf32>, vector<3x256xf32>, vector<32x256xf32> -> vector<32x256xf32>
    %135 = vector.broadcast %1 : vector<32x1xf32> to vector<32x256xf32>
    %136 = arith.addf %134, %135 : vector<32x256xf32>
    %cst_128 = arith.constant 0.000000e+00 : f32
    %137 = vector.broadcast %cst_128 : f32 to vector<32x256xf32>
    %138 = arith.maximumf %136, %137 : vector<32x256xf32>
    %c1_129 = arith.constant 1 : index
    %c2_130 = arith.constant 2 : index
    %c0_131 = arith.constant 0 : index
    %c0_132 = arith.constant 0 : index
    %139 = vector.load %arg8[%c1_129, %c2_130, %c0_131, %c0_132] : memref<4x3x32x256xf32, #tpu.memory_space<vmem>>, vector<1x1x32x256xf32>
    %140 = vector.shape_cast %139 : vector<1x1x32x256xf32> to vector<32x256xf32>
    %141 = vector.shape_cast %138 : vector<32x256xf32> to vector<1x1x32x256xf32>
    tpu.vector_store %arg8[%c1_129, %c2_130, %c0_131, %c0_132], %141 {strides = array<i32>} : memref<4x3x32x256xf32, #tpu.memory_space<vmem>>, vector<1x1x32x256xf32>,
    %142 = arith.addf %131, %138 : vector<32x256xf32>
    %cst_133 = arith.constant 3.000000e+00 : f32
    %143 = vector.broadcast %cst_133 : f32 to vector<32x256xf32>
    %144 = arith.divf %142, %143 : vector<32x256xf32>
    %145 = tpu.concatenate %110, %144 in 0 : vector<32x256xf32>, vector<32x256xf32> -> vector<64x256xf32>
    %cst_134 = arith.constant dense<0.000000e+00> : vector<32x256xf32>
    %146 = tpu.matmul %2, %145, %cst_134 {dimension_numbers = #tpu.dot_dimension_numbers<[1], [0], [0], [1], [0, 0, 1, 1], [], []>} : vector<32x64xf32>, vector<64x256xf32>, vector<32x256xf32> -> vector<32x256xf32>
    %147 = vector.broadcast %3 : vector<32x1xf32> to vector<32x256xf32>
    %148 = arith.addf %146, %147 : vector<32x256xf32>
    %149 = arith.negf %148 : vector<32x256xf32>
    %150 = math.exp %149 : vector<32x256xf32>
    %cst_135 = arith.constant 1.000000e+00 : f32
    %151 = vector.broadcast %cst_135 : f32 to vector<32x256xf32>
    %152 = arith.addf %151, %150 : vector<32x256xf32>
    %153 = arith.divf %151, %152 : vector<32x256xf32>
    %c1_136 = arith.constant 1 : index
    %c0_137 = arith.constant 0 : index
    %c0_138 = arith.constant 0 : index
    %c0_139 = arith.constant 0 : index
    %154 = vector.load %arg8[%c1_136, %c0_137, %c0_138, %c0_139] : memref<4x3x32x256xf32, #tpu.memory_space<vmem>>, vector<1x1x32x256xf32>
    %155 = vector.shape_cast %154 : vector<1x1x32x256xf32> to vector<32x256xf32>
    %156 = arith.mulf %155, %153 : vector<32x256xf32>
    %c1_140 = arith.constant 1 : index
    %c0_141 = arith.constant 0 : index
    %c0_142 = arith.constant 0 : index
    %c0_143 = arith.constant 0 : index
    %157 = vector.load %arg8[%c1_140, %c0_141, %c0_142, %c0_143] : memref<4x3x32x256xf32, #tpu.memory_space<vmem>>, vector<1x1x32x256xf32>
    %158 = vector.shape_cast %157 : vector<1x1x32x256xf32> to vector<32x256xf32>
    %159 = vector.shape_cast %156 : vector<32x256xf32> to vector<1x1x32x256xf32>
    tpu.vector_store %arg8[%c1_140, %c0_141, %c0_142, %c0_143], %159 {strides = array<i32>} : memref<4x3x32x256xf32, #tpu.memory_space<vmem>>, vector<1x1x32x256xf32>,
    %c1_144 = arith.constant 1 : index
    %c1_145 = arith.constant 1 : index
    %c0_146 = arith.constant 0 : index
    %c0_147 = arith.constant 0 : index
    %160 = vector.load %arg8[%c1_144, %c1_145, %c0_146, %c0_147] : memref<4x3x32x256xf32, #tpu.memory_space<vmem>>, vector<1x1x32x256xf32>
    %161 = vector.shape_cast %160 : vector<1x1x32x256xf32> to vector<32x256xf32>
    %162 = arith.mulf %161, %153 : vector<32x256xf32>
    %c1_148 = arith.constant 1 : index
    %c1_149 = arith.constant 1 : index
    %c0_150 = arith.constant 0 : index
    %c0_151 = arith.constant 0 : index
    %163 = vector.load %arg8[%c1_148, %c1_149, %c0_150, %c0_151] : memref<4x3x32x256xf32, #tpu.memory_space<vmem>>, vector<1x1x32x256xf32>
    %164 = vector.shape_cast %163 : vector<1x1x32x256xf32> to vector<32x256xf32>
    %165 = vector.shape_cast %162 : vector<32x256xf32> to vector<1x1x32x256xf32>
    tpu.vector_store %arg8[%c1_148, %c1_149, %c0_150, %c0_151], %165 {strides = array<i32>} : memref<4x3x32x256xf32, #tpu.memory_space<vmem>>, vector<1x1x32x256xf32>,
    %c1_152 = arith.constant 1 : index
    %c2_153 = arith.constant 2 : index
    %c0_154 = arith.constant 0 : index
    %c0_155 = arith.constant 0 : index
    %166 = vector.load %arg8[%c1_152, %c2_153, %c0_154, %c0_155] : memref<4x3x32x256xf32, #tpu.memory_space<vmem>>, vector<1x1x32x256xf32>
    %167 = vector.shape_cast %166 : vector<1x1x32x256xf32> to vector<32x256xf32>
    %168 = arith.mulf %167, %153 : vector<32x256xf32>
    %c1_156 = arith.constant 1 : index
    %c2_157 = arith.constant 2 : index
    %c0_158 = arith.constant 0 : index
    %c0_159 = arith.constant 0 : index
    %169 = vector.load %arg8[%c1_156, %c2_157, %c0_158, %c0_159] : memref<4x3x32x256xf32, #tpu.memory_space<vmem>>, vector<1x1x32x256xf32>
    %170 = vector.shape_cast %169 : vector<1x1x32x256xf32> to vector<32x256xf32>
    %171 = vector.shape_cast %168 : vector<32x256xf32> to vector<1x1x32x256xf32>
    tpu.vector_store %arg8[%c1_156, %c2_157, %c0_158, %c0_159], %171 {strides = array<i32>} : memref<4x3x32x256xf32, #tpu.memory_space<vmem>>, vector<1x1x32x256xf32>,
    %c2_160 = arith.constant 2 : index
    %c0_161 = arith.constant 0 : index
    %c0_162 = arith.constant 0 : index
    %c0_163 = arith.constant 0 : index
    %172 = vector.load %arg1[%c2_160, %c0_161, %c0_162, %c0_163] : memref<4x2x3x256xf32, #tpu.memory_space<vmem>>, vector<1x1x3x256xf32>
    %173 = vector.shape_cast %172 : vector<1x1x3x256xf32> to vector<3x256xf32>
    %cst_164 = arith.constant dense<0.000000e+00> : vector<32x256xf32>
    %174 = tpu.matmul %0, %173, %cst_164 {dimension_numbers = #tpu.dot_dimension_numbers<[1], [0], [0], [1], [0, 0, 1, 1], [], []>} : vector<32x3xf32>, vector<3x256xf32>, vector<32x256xf32> -> vector<32x256xf32>
    %175 = vector.broadcast %1 : vector<32x1xf32> to vector<32x256xf32>
    %176 = arith.addf %174, %175 : vector<32x256xf32>
    %cst_165 = arith.constant 0.000000e+00 : f32
    %177 = vector.broadcast %cst_165 : f32 to vector<32x256xf32>
    %178 = arith.maximumf %176, %177 : vector<32x256xf32>
    %c2_166 = arith.constant 2 : index
    %c0_167 = arith.constant 0 : index
    %c0_168 = arith.constant 0 : index
    %c0_169 = arith.constant 0 : index
    %179 = vector.load %arg7[%c2_166, %c0_167, %c0_168, %c0_169] : memref<4x2x32x256xf32, #tpu.memory_space<vmem>>, vector<1x1x32x256xf32>
    %180 = vector.shape_cast %179 : vector<1x1x32x256xf32> to vector<32x256xf32>
    %181 = vector.shape_cast %178 : vector<32x256xf32> to vector<1x1x32x256xf32>
    tpu.vector_store %arg7[%c2_166, %c0_167, %c0_168, %c0_169], %181 {strides = array<i32>} : memref<4x2x32x256xf32, #tpu.memory_space<vmem>>, vector<1x1x32x256xf32>,
    %c2_170 = arith.constant 2 : index
    %c1_171 = arith.constant 1 : index
    %c0_172 = arith.constant 0 : index
    %c0_173 = arith.constant 0 : index
    %182 = vector.load %arg1[%c2_170, %c1_171, %c0_172, %c0_173] : memref<4x2x3x256xf32, #tpu.memory_space<vmem>>, vector<1x1x3x256xf32>
    %183 = vector.shape_cast %182 : vector<1x1x3x256xf32> to vector<3x256xf32>
    %cst_174 = arith.constant dense<0.000000e+00> : vector<32x256xf32>
    %184 = tpu.matmul %0, %183, %cst_174 {dimension_numbers = #tpu.dot_dimension_numbers<[1], [0], [0], [1], [0, 0, 1, 1], [], []>} : vector<32x3xf32>, vector<3x256xf32>, vector<32x256xf32> -> vector<32x256xf32>
    %185 = vector.broadcast %1 : vector<32x1xf32> to vector<32x256xf32>
    %186 = arith.addf %184, %185 : vector<32x256xf32>
    %cst_175 = arith.constant 0.000000e+00 : f32
    %187 = vector.broadcast %cst_175 : f32 to vector<32x256xf32>
    %188 = arith.maximumf %186, %187 : vector<32x256xf32>
    %c2_176 = arith.constant 2 : index
    %c1_177 = arith.constant 1 : index
    %c0_178 = arith.constant 0 : index
    %c0_179 = arith.constant 0 : index
    %189 = vector.load %arg7[%c2_176, %c1_177, %c0_178, %c0_179] : memref<4x2x32x256xf32, #tpu.memory_space<vmem>>, vector<1x1x32x256xf32>
    %190 = vector.shape_cast %189 : vector<1x1x32x256xf32> to vector<32x256xf32>
    %191 = vector.shape_cast %188 : vector<32x256xf32> to vector<1x1x32x256xf32>
    tpu.vector_store %arg7[%c2_176, %c1_177, %c0_178, %c0_179], %191 {strides = array<i32>} : memref<4x2x32x256xf32, #tpu.memory_space<vmem>>, vector<1x1x32x256xf32>,
    %192 = arith.addf %178, %188 : vector<32x256xf32>
    %cst_180 = arith.constant 2.000000e+00 : f32
    %193 = vector.broadcast %cst_180 : f32 to vector<32x256xf32>
    %194 = arith.divf %192, %193 : vector<32x256xf32>
    %c2_181 = arith.constant 2 : index
    %c0_182 = arith.constant 0 : index
    %c0_183 = arith.constant 0 : index
    %c0_184 = arith.constant 0 : index
    %195 = vector.load %arg2[%c2_181, %c0_182, %c0_183, %c0_184] : memref<4x3x3x256xf32, #tpu.memory_space<vmem>>, vector<1x1x3x256xf32>
    %196 = vector.shape_cast %195 : vector<1x1x3x256xf32> to vector<3x256xf32>
    %cst_185 = arith.constant dense<0.000000e+00> : vector<32x256xf32>
    %197 = tpu.matmul %0, %196, %cst_185 {dimension_numbers = #tpu.dot_dimension_numbers<[1], [0], [0], [1], [0, 0, 1, 1], [], []>} : vector<32x3xf32>, vector<3x256xf32>, vector<32x256xf32> -> vector<32x256xf32>
    %198 = vector.broadcast %1 : vector<32x1xf32> to vector<32x256xf32>
    %199 = arith.addf %197, %198 : vector<32x256xf32>
    %cst_186 = arith.constant 0.000000e+00 : f32
    %200 = vector.broadcast %cst_186 : f32 to vector<32x256xf32>
    %201 = arith.maximumf %199, %200 : vector<32x256xf32>
    %c2_187 = arith.constant 2 : index
    %c0_188 = arith.constant 0 : index
    %c0_189 = arith.constant 0 : index
    %c0_190 = arith.constant 0 : index
    %202 = vector.load %arg8[%c2_187, %c0_188, %c0_189, %c0_190] : memref<4x3x32x256xf32, #tpu.memory_space<vmem>>, vector<1x1x32x256xf32>
    %203 = vector.shape_cast %202 : vector<1x1x32x256xf32> to vector<32x256xf32>
    %204 = vector.shape_cast %201 : vector<32x256xf32> to vector<1x1x32x256xf32>
    tpu.vector_store %arg8[%c2_187, %c0_188, %c0_189, %c0_190], %204 {strides = array<i32>} : memref<4x3x32x256xf32, #tpu.memory_space<vmem>>, vector<1x1x32x256xf32>,
    %c2_191 = arith.constant 2 : index
    %c1_192 = arith.constant 1 : index
    %c0_193 = arith.constant 0 : index
    %c0_194 = arith.constant 0 : index
    %205 = vector.load %arg2[%c2_191, %c1_192, %c0_193, %c0_194] : memref<4x3x3x256xf32, #tpu.memory_space<vmem>>, vector<1x1x3x256xf32>
    %206 = vector.shape_cast %205 : vector<1x1x3x256xf32> to vector<3x256xf32>
    %cst_195 = arith.constant dense<0.000000e+00> : vector<32x256xf32>
    %207 = tpu.matmul %0, %206, %cst_195 {dimension_numbers = #tpu.dot_dimension_numbers<[1], [0], [0], [1], [0, 0, 1, 1], [], []>} : vector<32x3xf32>, vector<3x256xf32>, vector<32x256xf32> -> vector<32x256xf32>
    %208 = vector.broadcast %1 : vector<32x1xf32> to vector<32x256xf32>
    %209 = arith.addf %207, %208 : vector<32x256xf32>
    %cst_196 = arith.constant 0.000000e+00 : f32
    %210 = vector.broadcast %cst_196 : f32 to vector<32x256xf32>
    %211 = arith.maximumf %209, %210 : vector<32x256xf32>
    %c2_197 = arith.constant 2 : index
    %c1_198 = arith.constant 1 : index
    %c0_199 = arith.constant 0 : index
    %c0_200 = arith.constant 0 : index
    %212 = vector.load %arg8[%c2_197, %c1_198, %c0_199, %c0_200] : memref<4x3x32x256xf32, #tpu.memory_space<vmem>>, vector<1x1x32x256xf32>
    %213 = vector.shape_cast %212 : vector<1x1x32x256xf32> to vector<32x256xf32>
    %214 = vector.shape_cast %211 : vector<32x256xf32> to vector<1x1x32x256xf32>
    tpu.vector_store %arg8[%c2_197, %c1_198, %c0_199, %c0_200], %214 {strides = array<i32>} : memref<4x3x32x256xf32, #tpu.memory_space<vmem>>, vector<1x1x32x256xf32>,
    %215 = arith.addf %201, %211 : vector<32x256xf32>
    %c2_201 = arith.constant 2 : index
    %c2_202 = arith.constant 2 : index
    %c0_203 = arith.constant 0 : index
    %c0_204 = arith.constant 0 : index
    %216 = vector.load %arg2[%c2_201, %c2_202, %c0_203, %c0_204] : memref<4x3x3x256xf32, #tpu.memory_space<vmem>>, vector<1x1x3x256xf32>
    %217 = vector.shape_cast %216 : vector<1x1x3x256xf32> to vector<3x256xf32>
    %cst_205 = arith.constant dense<0.000000e+00> : vector<32x256xf32>
    %218 = tpu.matmul %0, %217, %cst_205 {dimension_numbers = #tpu.dot_dimension_numbers<[1], [0], [0], [1], [0, 0, 1, 1], [], []>} : vector<32x3xf32>, vector<3x256xf32>, vector<32x256xf32> -> vector<32x256xf32>
    %219 = vector.broadcast %1 : vector<32x1xf32> to vector<32x256xf32>
    %220 = arith.addf %218, %219 : vector<32x256xf32>
    %cst_206 = arith.constant 0.000000e+00 : f32
    %221 = vector.broadcast %cst_206 : f32 to vector<32x256xf32>
    %222 = arith.maximumf %220, %221 : vector<32x256xf32>
    %c2_207 = arith.constant 2 : index
    %c2_208 = arith.constant 2 : index
    %c0_209 = arith.constant 0 : index
    %c0_210 = arith.constant 0 : index
    %223 = vector.load %arg8[%c2_207, %c2_208, %c0_209, %c0_210] : memref<4x3x32x256xf32, #tpu.memory_space<vmem>>, vector<1x1x32x256xf32>
    %224 = vector.shape_cast %223 : vector<1x1x32x256xf32> to vector<32x256xf32>
    %225 = vector.shape_cast %222 : vector<32x256xf32> to vector<1x1x32x256xf32>
    tpu.vector_store %arg8[%c2_207, %c2_208, %c0_209, %c0_210], %225 {strides = array<i32>} : memref<4x3x32x256xf32, #tpu.memory_space<vmem>>, vector<1x1x32x256xf32>,
    %226 = arith.addf %215, %222 : vector<32x256xf32>
    %cst_211 = arith.constant 3.000000e+00 : f32
    %227 = vector.broadcast %cst_211 : f32 to vector<32x256xf32>
    %228 = arith.divf %226, %227 : vector<32x256xf32>
    %229 = tpu.concatenate %194, %228 in 0 : vector<32x256xf32>, vector<32x256xf32> -> vector<64x256xf32>
    %cst_212 = arith.constant dense<0.000000e+00> : vector<32x256xf32>
    %230 = tpu.matmul %2, %229, %cst_212 {dimension_numbers = #tpu.dot_dimension_numbers<[1], [0], [0], [1], [0, 0, 1, 1], [], []>} : vector<32x64xf32>, vector<64x256xf32>, vector<32x256xf32> -> vector<32x256xf32>
    %231 = vector.broadcast %3 : vector<32x1xf32> to vector<32x256xf32>
    %232 = arith.addf %230, %231 : vector<32x256xf32>
    %233 = arith.negf %232 : vector<32x256xf32>
    %234 = math.exp %233 : vector<32x256xf32>
    %cst_213 = arith.constant 1.000000e+00 : f32
    %235 = vector.broadcast %cst_213 : f32 to vector<32x256xf32>
    %236 = arith.addf %235, %234 : vector<32x256xf32>
    %237 = arith.divf %235, %236 : vector<32x256xf32>
    %c2_214 = arith.constant 2 : index
    %c0_215 = arith.constant 0 : index
    %c0_216 = arith.constant 0 : index
    %c0_217 = arith.constant 0 : index
    %238 = vector.load %arg8[%c2_214, %c0_215, %c0_216, %c0_217] : memref<4x3x32x256xf32, #tpu.memory_space<vmem>>, vector<1x1x32x256xf32>
    %239 = vector.shape_cast %238 : vector<1x1x32x256xf32> to vector<32x256xf32>
    %240 = arith.mulf %239, %237 : vector<32x256xf32>
    %c2_218 = arith.constant 2 : index
    %c0_219 = arith.constant 0 : index
    %c0_220 = arith.constant 0 : index
    %c0_221 = arith.constant 0 : index
    %241 = vector.load %arg8[%c2_218, %c0_219, %c0_220, %c0_221] : memref<4x3x32x256xf32, #tpu.memory_space<vmem>>, vector<1x1x32x256xf32>
    %242 = vector.shape_cast %241 : vector<1x1x32x256xf32> to vector<32x256xf32>
    %243 = vector.shape_cast %240 : vector<32x256xf32> to vector<1x1x32x256xf32>
    tpu.vector_store %arg8[%c2_218, %c0_219, %c0_220, %c0_221], %243 {strides = array<i32>} : memref<4x3x32x256xf32, #tpu.memory_space<vmem>>, vector<1x1x32x256xf32>,
    %c2_222 = arith.constant 2 : index
    %c1_223 = arith.constant 1 : index
    %c0_224 = arith.constant 0 : index
    %c0_225 = arith.constant 0 : index
    %244 = vector.load %arg8[%c2_222, %c1_223, %c0_224, %c0_225] : memref<4x3x32x256xf32, #tpu.memory_space<vmem>>, vector<1x1x32x256xf32>
    %245 = vector.shape_cast %244 : vector<1x1x32x256xf32> to vector<32x256xf32>
    %246 = arith.mulf %245, %237 : vector<32x256xf32>
    %c2_226 = arith.constant 2 : index
    %c1_227 = arith.constant 1 : index
    %c0_228 = arith.constant 0 : index
    %c0_229 = arith.constant 0 : index
    %247 = vector.load %arg8[%c2_226, %c1_227, %c0_228, %c0_229] : memref<4x3x32x256xf32, #tpu.memory_space<vmem>>, vector<1x1x32x256xf32>
    %248 = vector.shape_cast %247 : vector<1x1x32x256xf32> to vector<32x256xf32>
    %249 = vector.shape_cast %246 : vector<32x256xf32> to vector<1x1x32x256xf32>
    tpu.vector_store %arg8[%c2_226, %c1_227, %c0_228, %c0_229], %249 {strides = array<i32>} : memref<4x3x32x256xf32, #tpu.memory_space<vmem>>, vector<1x1x32x256xf32>,
    %c2_230 = arith.constant 2 : index
    %c2_231 = arith.constant 2 : index
    %c0_232 = arith.constant 0 : index
    %c0_233 = arith.constant 0 : index
    %250 = vector.load %arg8[%c2_230, %c2_231, %c0_232, %c0_233] : memref<4x3x32x256xf32, #tpu.memory_space<vmem>>, vector<1x1x32x256xf32>
    %251 = vector.shape_cast %250 : vector<1x1x32x256xf32> to vector<32x256xf32>
    %252 = arith.mulf %251, %237 : vector<32x256xf32>
    %c2_234 = arith.constant 2 : index
    %c2_235 = arith.constant 2 : index
    %c0_236 = arith.constant 0 : index
    %c0_237 = arith.constant 0 : index
    %253 = vector.load %arg8[%c2_234, %c2_235, %c0_236, %c0_237] : memref<4x3x32x256xf32, #tpu.memory_space<vmem>>, vector<1x1x32x256xf32>
    %254 = vector.shape_cast %253 : vector<1x1x32x256xf32> to vector<32x256xf32>
    %255 = vector.shape_cast %252 : vector<32x256xf32> to vector<1x1x32x256xf32>
    tpu.vector_store %arg8[%c2_234, %c2_235, %c0_236, %c0_237], %255 {strides = array<i32>} : memref<4x3x32x256xf32, #tpu.memory_space<vmem>>, vector<1x1x32x256xf32>,
    %c3 = arith.constant 3 : index
    %c0_238 = arith.constant 0 : index
    %c0_239 = arith.constant 0 : index
    %c0_240 = arith.constant 0 : index
    %256 = vector.load %arg1[%c3, %c0_238, %c0_239, %c0_240] : memref<4x2x3x256xf32, #tpu.memory_space<vmem>>, vector<1x1x3x256xf32>
    %257 = vector.shape_cast %256 : vector<1x1x3x256xf32> to vector<3x256xf32>
    %cst_241 = arith.constant dense<0.000000e+00> : vector<32x256xf32>
    %258 = tpu.matmul %0, %257, %cst_241 {dimension_numbers = #tpu.dot_dimension_numbers<[1], [0], [0], [1], [0, 0, 1, 1], [], []>} : vector<32x3xf32>, vector<3x256xf32>, vector<32x256xf32> -> vector<32x256xf32>
    %259 = vector.broadcast %1 : vector<32x1xf32> to vector<32x256xf32>
    %260 = arith.addf %258, %259 : vector<32x256xf32>
    %cst_242 = arith.constant 0.000000e+00 : f32
    %261 = vector.broadcast %cst_242 : f32 to vector<32x256xf32>
    %262 = arith.maximumf %260, %261 : vector<32x256xf32>
    %c3_243 = arith.constant 3 : index
    %c0_244 = arith.constant 0 : index
    %c0_245 = arith.constant 0 : index
    %c0_246 = arith.constant 0 : index
    %263 = vector.load %arg7[%c3_243, %c0_244, %c0_245, %c0_246] : memref<4x2x32x256xf32, #tpu.memory_space<vmem>>, vector<1x1x32x256xf32>
    %264 = vector.shape_cast %263 : vector<1x1x32x256xf32> to vector<32x256xf32>
    %265 = vector.shape_cast %262 : vector<32x256xf32> to vector<1x1x32x256xf32>
    tpu.vector_store %arg7[%c3_243, %c0_244, %c0_245, %c0_246], %265 {strides = array<i32>} : memref<4x2x32x256xf32, #tpu.memory_space<vmem>>, vector<1x1x32x256xf32>,
    %c3_247 = arith.constant 3 : index
    %c1_248 = arith.constant 1 : index
    %c0_249 = arith.constant 0 : index
    %c0_250 = arith.constant 0 : index
    %266 = vector.load %arg1[%c3_247, %c1_248, %c0_249, %c0_250] : memref<4x2x3x256xf32, #tpu.memory_space<vmem>>, vector<1x1x3x256xf32>
    %267 = vector.shape_cast %266 : vector<1x1x3x256xf32> to vector<3x256xf32>
    %cst_251 = arith.constant dense<0.000000e+00> : vector<32x256xf32>
    %268 = tpu.matmul %0, %267, %cst_251 {dimension_numbers = #tpu.dot_dimension_numbers<[1], [0], [0], [1], [0, 0, 1, 1], [], []>} : vector<32x3xf32>, vector<3x256xf32>, vector<32x256xf32> -> vector<32x256xf32>
    %269 = vector.broadcast %1 : vector<32x1xf32> to vector<32x256xf32>
    %270 = arith.addf %268, %269 : vector<32x256xf32>
    %cst_252 = arith.constant 0.000000e+00 : f32
    %271 = vector.broadcast %cst_252 : f32 to vector<32x256xf32>
    %272 = arith.maximumf %270, %271 : vector<32x256xf32>
    %c3_253 = arith.constant 3 : index
    %c1_254 = arith.constant 1 : index
    %c0_255 = arith.constant 0 : index
    %c0_256 = arith.constant 0 : index
    %273 = vector.load %arg7[%c3_253, %c1_254, %c0_255, %c0_256] : memref<4x2x32x256xf32, #tpu.memory_space<vmem>>, vector<1x1x32x256xf32>
    %274 = vector.shape_cast %273 : vector<1x1x32x256xf32> to vector<32x256xf32>
    %275 = vector.shape_cast %272 : vector<32x256xf32> to vector<1x1x32x256xf32>
    tpu.vector_store %arg7[%c3_253, %c1_254, %c0_255, %c0_256], %275 {strides = array<i32>} : memref<4x2x32x256xf32, #tpu.memory_space<vmem>>, vector<1x1x32x256xf32>,
    %276 = arith.addf %262, %272 : vector<32x256xf32>
    %cst_257 = arith.constant 2.000000e+00 : f32
    %277 = vector.broadcast %cst_257 : f32 to vector<32x256xf32>
    %278 = arith.divf %276, %277 : vector<32x256xf32>
    %c3_258 = arith.constant 3 : index
    %c0_259 = arith.constant 0 : index
    %c0_260 = arith.constant 0 : index
    %c0_261 = arith.constant 0 : index
    %279 = vector.load %arg2[%c3_258, %c0_259, %c0_260, %c0_261] : memref<4x3x3x256xf32, #tpu.memory_space<vmem>>, vector<1x1x3x256xf32>
    %280 = vector.shape_cast %279 : vector<1x1x3x256xf32> to vector<3x256xf32>
    %cst_262 = arith.constant dense<0.000000e+00> : vector<32x256xf32>
    %281 = tpu.matmul %0, %280, %cst_262 {dimension_numbers = #tpu.dot_dimension_numbers<[1], [0], [0], [1], [0, 0, 1, 1], [], []>} : vector<32x3xf32>, vector<3x256xf32>, vector<32x256xf32> -> vector<32x256xf32>
    %282 = vector.broadcast %1 : vector<32x1xf32> to vector<32x256xf32>
    %283 = arith.addf %281, %282 : vector<32x256xf32>
    %cst_263 = arith.constant 0.000000e+00 : f32
    %284 = vector.broadcast %cst_263 : f32 to vector<32x256xf32>
    %285 = arith.maximumf %283, %284 : vector<32x256xf32>
    %c3_264 = arith.constant 3 : index
    %c0_265 = arith.constant 0 : index
    %c0_266 = arith.constant 0 : index
    %c0_267 = arith.constant 0 : index
    %286 = vector.load %arg8[%c3_264, %c0_265, %c0_266, %c0_267] : memref<4x3x32x256xf32, #tpu.memory_space<vmem>>, vector<1x1x32x256xf32>
    %287 = vector.shape_cast %286 : vector<1x1x32x256xf32> to vector<32x256xf32>
    %288 = vector.shape_cast %285 : vector<32x256xf32> to vector<1x1x32x256xf32>
    tpu.vector_store %arg8[%c3_264, %c0_265, %c0_266, %c0_267], %288 {strides = array<i32>} : memref<4x3x32x256xf32, #tpu.memory_space<vmem>>, vector<1x1x32x256xf32>,
    %c3_268 = arith.constant 3 : index
    %c1_269 = arith.constant 1 : index
    %c0_270 = arith.constant 0 : index
    %c0_271 = arith.constant 0 : index
    %289 = vector.load %arg2[%c3_268, %c1_269, %c0_270, %c0_271] : memref<4x3x3x256xf32, #tpu.memory_space<vmem>>, vector<1x1x3x256xf32>
    %290 = vector.shape_cast %289 : vector<1x1x3x256xf32> to vector<3x256xf32>
    %cst_272 = arith.constant dense<0.000000e+00> : vector<32x256xf32>
    %291 = tpu.matmul %0, %290, %cst_272 {dimension_numbers = #tpu.dot_dimension_numbers<[1], [0], [0], [1], [0, 0, 1, 1], [], []>} : vector<32x3xf32>, vector<3x256xf32>, vector<32x256xf32> -> vector<32x256xf32>
    %292 = vector.broadcast %1 : vector<32x1xf32> to vector<32x256xf32>
    %293 = arith.addf %291, %292 : vector<32x256xf32>
    %cst_273 = arith.constant 0.000000e+00 : f32
    %294 = vector.broadcast %cst_273 : f32 to vector<32x256xf32>
    %295 = arith.maximumf %293, %294 : vector<32x256xf32>
    %c3_274 = arith.constant 3 : index
    %c1_275 = arith.constant 1 : index
    %c0_276 = arith.constant 0 : index
    %c0_277 = arith.constant 0 : index
    %296 = vector.load %arg8[%c3_274, %c1_275, %c0_276, %c0_277] : memref<4x3x32x256xf32, #tpu.memory_space<vmem>>, vector<1x1x32x256xf32>
    %297 = vector.shape_cast %296 : vector<1x1x32x256xf32> to vector<32x256xf32>
    %298 = vector.shape_cast %295 : vector<32x256xf32> to vector<1x1x32x256xf32>
    tpu.vector_store %arg8[%c3_274, %c1_275, %c0_276, %c0_277], %298 {strides = array<i32>} : memref<4x3x32x256xf32, #tpu.memory_space<vmem>>, vector<1x1x32x256xf32>,
    %299 = arith.addf %285, %295 : vector<32x256xf32>
    %c3_278 = arith.constant 3 : index
    %c2_279 = arith.constant 2 : index
    %c0_280 = arith.constant 0 : index
    %c0_281 = arith.constant 0 : index
    %300 = vector.load %arg2[%c3_278, %c2_279, %c0_280, %c0_281] : memref<4x3x3x256xf32, #tpu.memory_space<vmem>>, vector<1x1x3x256xf32>
    %301 = vector.shape_cast %300 : vector<1x1x3x256xf32> to vector<3x256xf32>
    %cst_282 = arith.constant dense<0.000000e+00> : vector<32x256xf32>
    %302 = tpu.matmul %0, %301, %cst_282 {dimension_numbers = #tpu.dot_dimension_numbers<[1], [0], [0], [1], [0, 0, 1, 1], [], []>} : vector<32x3xf32>, vector<3x256xf32>, vector<32x256xf32> -> vector<32x256xf32>
    %303 = vector.broadcast %1 : vector<32x1xf32> to vector<32x256xf32>
    %304 = arith.addf %302, %303 : vector<32x256xf32>
    %cst_283 = arith.constant 0.000000e+00 : f32
    %305 = vector.broadcast %cst_283 : f32 to vector<32x256xf32>
    %306 = arith.maximumf %304, %305 : vector<32x256xf32>
    %c3_284 = arith.constant 3 : index
    %c2_285 = arith.constant 2 : index
    %c0_286 = arith.constant 0 : index
    %c0_287 = arith.constant 0 : index
    %307 = vector.load %arg8[%c3_284, %c2_285, %c0_286, %c0_287] : memref<4x3x32x256xf32, #tpu.memory_space<vmem>>, vector<1x1x32x256xf32>
    %308 = vector.shape_cast %307 : vector<1x1x32x256xf32> to vector<32x256xf32>
    %309 = vector.shape_cast %306 : vector<32x256xf32> to vector<1x1x32x256xf32>
    tpu.vector_store %arg8[%c3_284, %c2_285, %c0_286, %c0_287], %309 {strides = array<i32>} : memref<4x3x32x256xf32, #tpu.memory_space<vmem>>, vector<1x1x32x256xf32>,
    %310 = arith.addf %299, %306 : vector<32x256xf32>
    %cst_288 = arith.constant 3.000000e+00 : f32
    %311 = vector.broadcast %cst_288 : f32 to vector<32x256xf32>
    %312 = arith.divf %310, %311 : vector<32x256xf32>
    %313 = tpu.concatenate %278, %312 in 0 : vector<32x256xf32>, vector<32x256xf32> -> vector<64x256xf32>
    %cst_289 = arith.constant dense<0.000000e+00> : vector<32x256xf32>
    %314 = tpu.matmul %2, %313, %cst_289 {dimension_numbers = #tpu.dot_dimension_numbers<[1], [0], [0], [1], [0, 0, 1, 1], [], []>} : vector<32x64xf32>, vector<64x256xf32>, vector<32x256xf32> -> vector<32x256xf32>
    %315 = vector.broadcast %3 : vector<32x1xf32> to vector<32x256xf32>
    %316 = arith.addf %314, %315 : vector<32x256xf32>
    %317 = arith.negf %316 : vector<32x256xf32>
    %318 = math.exp %317 : vector<32x256xf32>
    %cst_290 = arith.constant 1.000000e+00 : f32
    %319 = vector.broadcast %cst_290 : f32 to vector<32x256xf32>
    %320 = arith.addf %319, %318 : vector<32x256xf32>
    %321 = arith.divf %319, %320 : vector<32x256xf32>
    %c3_291 = arith.constant 3 : index
    %c0_292 = arith.constant 0 : index
    %c0_293 = arith.constant 0 : index
    %c0_294 = arith.constant 0 : index
    %322 = vector.load %arg8[%c3_291, %c0_292, %c0_293, %c0_294] : memref<4x3x32x256xf32, #tpu.memory_space<vmem>>, vector<1x1x32x256xf32>
    %323 = vector.shape_cast %322 : vector<1x1x32x256xf32> to vector<32x256xf32>
    %324 = arith.mulf %323, %321 : vector<32x256xf32>
    %c3_295 = arith.constant 3 : index
    %c0_296 = arith.constant 0 : index
    %c0_297 = arith.constant 0 : index
    %c0_298 = arith.constant 0 : index
    %325 = vector.load %arg8[%c3_295, %c0_296, %c0_297, %c0_298] : memref<4x3x32x256xf32, #tpu.memory_space<vmem>>, vector<1x1x32x256xf32>
    %326 = vector.shape_cast %325 : vector<1x1x32x256xf32> to vector<32x256xf32>
    %327 = vector.shape_cast %324 : vector<32x256xf32> to vector<1x1x32x256xf32>
    tpu.vector_store %arg8[%c3_295, %c0_296, %c0_297, %c0_298], %327 {strides = array<i32>} : memref<4x3x32x256xf32, #tpu.memory_space<vmem>>, vector<1x1x32x256xf32>,
    %c3_299 = arith.constant 3 : index
    %c1_300 = arith.constant 1 : index
    %c0_301 = arith.constant 0 : index
    %c0_302 = arith.constant 0 : index
    %328 = vector.load %arg8[%c3_299, %c1_300, %c0_301, %c0_302] : memref<4x3x32x256xf32, #tpu.memory_space<vmem>>, vector<1x1x32x256xf32>
    %329 = vector.shape_cast %328 : vector<1x1x32x256xf32> to vector<32x256xf32>
    %330 = arith.mulf %329, %321 : vector<32x256xf32>
    %c3_303 = arith.constant 3 : index
    %c1_304 = arith.constant 1 : index
    %c0_305 = arith.constant 0 : index
    %c0_306 = arith.constant 0 : index
    %331 = vector.load %arg8[%c3_303, %c1_304, %c0_305, %c0_306] : memref<4x3x32x256xf32, #tpu.memory_space<vmem>>, vector<1x1x32x256xf32>
    %332 = vector.shape_cast %331 : vector<1x1x32x256xf32> to vector<32x256xf32>
    %333 = vector.shape_cast %330 : vector<32x256xf32> to vector<1x1x32x256xf32>
    tpu.vector_store %arg8[%c3_303, %c1_304, %c0_305, %c0_306], %333 {strides = array<i32>} : memref<4x3x32x256xf32, #tpu.memory_space<vmem>>, vector<1x1x32x256xf32>,
    %c3_307 = arith.constant 3 : index
    %c2_308 = arith.constant 2 : index
    %c0_309 = arith.constant 0 : index
    %c0_310 = arith.constant 0 : index
    %334 = vector.load %arg8[%c3_307, %c2_308, %c0_309, %c0_310] : memref<4x3x32x256xf32, #tpu.memory_space<vmem>>, vector<1x1x32x256xf32>
    %335 = vector.shape_cast %334 : vector<1x1x32x256xf32> to vector<32x256xf32>
    %336 = arith.mulf %335, %321 : vector<32x256xf32>
    %c3_311 = arith.constant 3 : index
    %c2_312 = arith.constant 2 : index
    %c0_313 = arith.constant 0 : index
    %c0_314 = arith.constant 0 : index
    %337 = vector.load %arg8[%c3_311, %c2_312, %c0_313, %c0_314] : memref<4x3x32x256xf32, #tpu.memory_space<vmem>>, vector<1x1x32x256xf32>
    %338 = vector.shape_cast %337 : vector<1x1x32x256xf32> to vector<32x256xf32>
    %339 = vector.shape_cast %336 : vector<32x256xf32> to vector<1x1x32x256xf32>
    tpu.vector_store %arg8[%c3_311, %c2_312, %c0_313, %c0_314], %339 {strides = array<i32>} : memref<4x3x32x256xf32, #tpu.memory_space<vmem>>, vector<1x1x32x256xf32>,
    return
  }
  func.func @transform_0(%arg0: i32) -> (i32, i32, i32, i32) {
    %c0_i32 = arith.constant 0 : i32
    %c0_i32_0 = arith.constant 0 : i32
    %c0_i32_1 = arith.constant 0 : i32
    %c0_i32_2 = arith.constant 0 : i32
    return %arg0, %c0_i32, %c0_i32_0, %c0_i32_1 : i32, i32, i32, i32
  }
  func.func @transform_1(%arg0: i32) -> (i32, i32, i32, i32) {
    %c0_i32 = arith.constant 0 : i32
    %c0_i32_0 = arith.constant 0 : i32
    %c0_i32_1 = arith.constant 0 : i32
    %c0_i32_2 = arith.constant 0 : i32
    return %arg0, %c0_i32, %c0_i32_0, %c0_i32_1 : i32, i32, i32, i32
  }
  func.func @transform_2(%arg0: i32) -> (i32, i32) {
    %c0_i32 = arith.constant 0 : i32
    %c0_i32_0 = arith.constant 0 : i32
    %c0_i32_1 = arith.constant 0 : i32
    return %c0_i32, %c0_i32_0 : i32, i32
  }
  func.func @transform_3(%arg0: i32) -> (i32, i32) {
    %c0_i32 = arith.constant 0 : i32
    %c0_i32_0 = arith.constant 0 : i32
    %c0_i32_1 = arith.constant 0 : i32
    return %c0_i32, %c0_i32_0 : i32, i32
  }
  func.func @transform_4(%arg0: i32) -> (i32, i32) {
    %c0_i32 = arith.constant 0 : i32
    %c0_i32_0 = arith.constant 0 : i32
    %c0_i32_1 = arith.constant 0 : i32
    return %c0_i32, %c0_i32_0 : i32, i32
  }
  func.func @transform_5(%arg0: i32) -> (i32, i32) {
    %c0_i32 = arith.constant 0 : i32
    %c0_i32_0 = arith.constant 0 : i32
    %c0_i32_1 = arith.constant 0 : i32
    return %c0_i32, %c0_i32_0 : i32, i32
  }
  func.func @transform_6(%arg0: i32) -> (i32, i32, i32, i32) {
    %c0_i32 = arith.constant 0 : i32
    %c0_i32_0 = arith.constant 0 : i32
    %c0_i32_1 = arith.constant 0 : i32
    %c0_i32_2 = arith.constant 0 : i32
    return %arg0, %c0_i32, %c0_i32_0, %c0_i32_1 : i32, i32, i32, i32
  }
  func.func @transform_7(%arg0: i32) -> (i32, i32, i32, i32) {
    %c0_i32 = arith.constant 0 : i32
    %c0_i32_0 = arith.constant 0 : i32
    %c0_i32_1 = arith.constant 0 : i32
    %c0_i32_2 = arith.constant 0 : i32
    return %arg0, %c0_i32, %c0_i32_0, %c0_i32_1 : i32, i32, i32, i32
  }
}

module attributes {stable_mosaic.version = 11 : i64} {
  func.func @_encoder_kernel(%arg0: i32, %arg1: memref<8x3x256xf32, #tpu.memory_space<vmem>>, %arg2: memref<32x3xf32, #tpu.memory_space<vmem>>, %arg3: memref<32x1xf32, #tpu.memory_space<vmem>>, %arg4: memref<8x32x256xf32, #tpu.memory_space<vmem>>) attributes {dimension_semantics = [#tpu.dimension_semantics<parallel>], iteration_bounds = array<i64: 1>, scalar_prefetch = 0 : i64, scratch_operands = 0 : i64, tpu.core_type = #tpu.core_type<tc>, window_params = [{transform_indices = @transform_0, window_bounds = array<i64: 8, 3, 256>}, {pipeline_mode = #tpu.pipeline_mode<synchronous>, transform_indices = @transform_1, window_bounds = array<i64: 32, 3>}, {pipeline_mode = #tpu.pipeline_mode<synchronous>, transform_indices = @transform_2, window_bounds = array<i64: 32, 1>}, {transform_indices = @transform_3, window_bounds = array<i64: 8, 32, 256>}]} {
    %c0 = arith.constant 0 : index
    %c0_0 = arith.constant 0 : index
    %0 = vector.load %arg2[%c0, %c0_0] : memref<32x3xf32, #tpu.memory_space<vmem>>, vector<32x3xf32>
    %c0_1 = arith.constant 0 : index
    %c0_2 = arith.constant 0 : index
    %1 = vector.load %arg3[%c0_1, %c0_2] : memref<32x1xf32, #tpu.memory_space<vmem>>, vector<32x1xf32>
    %c0_3 = arith.constant 0 : index
    %c0_4 = arith.constant 0 : index
    %c0_5 = arith.constant 0 : index
    %2 = vector.load %arg1[%c0_3, %c0_4, %c0_5] : memref<8x3x256xf32, #tpu.memory_space<vmem>>, vector<1x3x256xf32>
    %3 = vector.shape_cast %2 : vector<1x3x256xf32> to vector<3x256xf32>
    %cst = arith.constant dense<0.000000e+00> : vector<32x256xf32>
    %4 = tpu.matmul %0, %3, %cst {dimension_numbers = #tpu.dot_dimension_numbers<[1], [0], [0], [1], [0, 0, 1, 1], [], []>} : vector<32x3xf32>, vector<3x256xf32>, vector<32x256xf32> -> vector<32x256xf32>
    %5 = vector.broadcast %1 : vector<32x1xf32> to vector<32x256xf32>
    %6 = arith.addf %4, %5 : vector<32x256xf32>
    %cst_6 = arith.constant 0.000000e+00 : f32
    %7 = vector.broadcast %cst_6 : f32 to vector<32x256xf32>
    %8 = arith.maximumf %6, %7 : vector<32x256xf32>
    %c0_7 = arith.constant 0 : index
    %c0_8 = arith.constant 0 : index
    %c0_9 = arith.constant 0 : index
    %9 = vector.load %arg4[%c0_7, %c0_8, %c0_9] : memref<8x32x256xf32, #tpu.memory_space<vmem>>, vector<1x32x256xf32>
    %10 = vector.shape_cast %9 : vector<1x32x256xf32> to vector<32x256xf32>
    %11 = vector.shape_cast %8 : vector<32x256xf32> to vector<1x32x256xf32>
    tpu.vector_store %arg4[%c0_7, %c0_8, %c0_9], %11 {strides = array<i32>} : memref<8x32x256xf32, #tpu.memory_space<vmem>>, vector<1x32x256xf32>,
    %c1 = arith.constant 1 : index
    %c0_10 = arith.constant 0 : index
    %c0_11 = arith.constant 0 : index
    %12 = vector.load %arg1[%c1, %c0_10, %c0_11] : memref<8x3x256xf32, #tpu.memory_space<vmem>>, vector<1x3x256xf32>
    %13 = vector.shape_cast %12 : vector<1x3x256xf32> to vector<3x256xf32>
    %cst_12 = arith.constant dense<0.000000e+00> : vector<32x256xf32>
    %14 = tpu.matmul %0, %13, %cst_12 {dimension_numbers = #tpu.dot_dimension_numbers<[1], [0], [0], [1], [0, 0, 1, 1], [], []>} : vector<32x3xf32>, vector<3x256xf32>, vector<32x256xf32> -> vector<32x256xf32>
    %15 = vector.broadcast %1 : vector<32x1xf32> to vector<32x256xf32>
    %16 = arith.addf %14, %15 : vector<32x256xf32>
    %cst_13 = arith.constant 0.000000e+00 : f32
    %17 = vector.broadcast %cst_13 : f32 to vector<32x256xf32>
    %18 = arith.maximumf %16, %17 : vector<32x256xf32>
    %c1_14 = arith.constant 1 : index
    %c0_15 = arith.constant 0 : index
    %c0_16 = arith.constant 0 : index
    %19 = vector.load %arg4[%c1_14, %c0_15, %c0_16] : memref<8x32x256xf32, #tpu.memory_space<vmem>>, vector<1x32x256xf32>
    %20 = vector.shape_cast %19 : vector<1x32x256xf32> to vector<32x256xf32>
    %21 = vector.shape_cast %18 : vector<32x256xf32> to vector<1x32x256xf32>
    tpu.vector_store %arg4[%c1_14, %c0_15, %c0_16], %21 {strides = array<i32>} : memref<8x32x256xf32, #tpu.memory_space<vmem>>, vector<1x32x256xf32>,
    %c2 = arith.constant 2 : index
    %c0_17 = arith.constant 0 : index
    %c0_18 = arith.constant 0 : index
    %22 = vector.load %arg1[%c2, %c0_17, %c0_18] : memref<8x3x256xf32, #tpu.memory_space<vmem>>, vector<1x3x256xf32>
    %23 = vector.shape_cast %22 : vector<1x3x256xf32> to vector<3x256xf32>
    %cst_19 = arith.constant dense<0.000000e+00> : vector<32x256xf32>
    %24 = tpu.matmul %0, %23, %cst_19 {dimension_numbers = #tpu.dot_dimension_numbers<[1], [0], [0], [1], [0, 0, 1, 1], [], []>} : vector<32x3xf32>, vector<3x256xf32>, vector<32x256xf32> -> vector<32x256xf32>
    %25 = vector.broadcast %1 : vector<32x1xf32> to vector<32x256xf32>
    %26 = arith.addf %24, %25 : vector<32x256xf32>
    %cst_20 = arith.constant 0.000000e+00 : f32
    %27 = vector.broadcast %cst_20 : f32 to vector<32x256xf32>
    %28 = arith.maximumf %26, %27 : vector<32x256xf32>
    %c2_21 = arith.constant 2 : index
    %c0_22 = arith.constant 0 : index
    %c0_23 = arith.constant 0 : index
    %29 = vector.load %arg4[%c2_21, %c0_22, %c0_23] : memref<8x32x256xf32, #tpu.memory_space<vmem>>, vector<1x32x256xf32>
    %30 = vector.shape_cast %29 : vector<1x32x256xf32> to vector<32x256xf32>
    %31 = vector.shape_cast %28 : vector<32x256xf32> to vector<1x32x256xf32>
    tpu.vector_store %arg4[%c2_21, %c0_22, %c0_23], %31 {strides = array<i32>} : memref<8x32x256xf32, #tpu.memory_space<vmem>>, vector<1x32x256xf32>,
    %c3 = arith.constant 3 : index
    %c0_24 = arith.constant 0 : index
    %c0_25 = arith.constant 0 : index
    %32 = vector.load %arg1[%c3, %c0_24, %c0_25] : memref<8x3x256xf32, #tpu.memory_space<vmem>>, vector<1x3x256xf32>
    %33 = vector.shape_cast %32 : vector<1x3x256xf32> to vector<3x256xf32>
    %cst_26 = arith.constant dense<0.000000e+00> : vector<32x256xf32>
    %34 = tpu.matmul %0, %33, %cst_26 {dimension_numbers = #tpu.dot_dimension_numbers<[1], [0], [0], [1], [0, 0, 1, 1], [], []>} : vector<32x3xf32>, vector<3x256xf32>, vector<32x256xf32> -> vector<32x256xf32>
    %35 = vector.broadcast %1 : vector<32x1xf32> to vector<32x256xf32>
    %36 = arith.addf %34, %35 : vector<32x256xf32>
    %cst_27 = arith.constant 0.000000e+00 : f32
    %37 = vector.broadcast %cst_27 : f32 to vector<32x256xf32>
    %38 = arith.maximumf %36, %37 : vector<32x256xf32>
    %c3_28 = arith.constant 3 : index
    %c0_29 = arith.constant 0 : index
    %c0_30 = arith.constant 0 : index
    %39 = vector.load %arg4[%c3_28, %c0_29, %c0_30] : memref<8x32x256xf32, #tpu.memory_space<vmem>>, vector<1x32x256xf32>
    %40 = vector.shape_cast %39 : vector<1x32x256xf32> to vector<32x256xf32>
    %41 = vector.shape_cast %38 : vector<32x256xf32> to vector<1x32x256xf32>
    tpu.vector_store %arg4[%c3_28, %c0_29, %c0_30], %41 {strides = array<i32>} : memref<8x32x256xf32, #tpu.memory_space<vmem>>, vector<1x32x256xf32>,
    %c4 = arith.constant 4 : index
    %c0_31 = arith.constant 0 : index
    %c0_32 = arith.constant 0 : index
    %42 = vector.load %arg1[%c4, %c0_31, %c0_32] : memref<8x3x256xf32, #tpu.memory_space<vmem>>, vector<1x3x256xf32>
    %43 = vector.shape_cast %42 : vector<1x3x256xf32> to vector<3x256xf32>
    %cst_33 = arith.constant dense<0.000000e+00> : vector<32x256xf32>
    %44 = tpu.matmul %0, %43, %cst_33 {dimension_numbers = #tpu.dot_dimension_numbers<[1], [0], [0], [1], [0, 0, 1, 1], [], []>} : vector<32x3xf32>, vector<3x256xf32>, vector<32x256xf32> -> vector<32x256xf32>
    %45 = vector.broadcast %1 : vector<32x1xf32> to vector<32x256xf32>
    %46 = arith.addf %44, %45 : vector<32x256xf32>
    %cst_34 = arith.constant 0.000000e+00 : f32
    %47 = vector.broadcast %cst_34 : f32 to vector<32x256xf32>
    %48 = arith.maximumf %46, %47 : vector<32x256xf32>
    %c4_35 = arith.constant 4 : index
    %c0_36 = arith.constant 0 : index
    %c0_37 = arith.constant 0 : index
    %49 = vector.load %arg4[%c4_35, %c0_36, %c0_37] : memref<8x32x256xf32, #tpu.memory_space<vmem>>, vector<1x32x256xf32>
    %50 = vector.shape_cast %49 : vector<1x32x256xf32> to vector<32x256xf32>
    %51 = vector.shape_cast %48 : vector<32x256xf32> to vector<1x32x256xf32>
    tpu.vector_store %arg4[%c4_35, %c0_36, %c0_37], %51 {strides = array<i32>} : memref<8x32x256xf32, #tpu.memory_space<vmem>>, vector<1x32x256xf32>,
    %c5 = arith.constant 5 : index
    %c0_38 = arith.constant 0 : index
    %c0_39 = arith.constant 0 : index
    %52 = vector.load %arg1[%c5, %c0_38, %c0_39] : memref<8x3x256xf32, #tpu.memory_space<vmem>>, vector<1x3x256xf32>
    %53 = vector.shape_cast %52 : vector<1x3x256xf32> to vector<3x256xf32>
    %cst_40 = arith.constant dense<0.000000e+00> : vector<32x256xf32>
    %54 = tpu.matmul %0, %53, %cst_40 {dimension_numbers = #tpu.dot_dimension_numbers<[1], [0], [0], [1], [0, 0, 1, 1], [], []>} : vector<32x3xf32>, vector<3x256xf32>, vector<32x256xf32> -> vector<32x256xf32>
    %55 = vector.broadcast %1 : vector<32x1xf32> to vector<32x256xf32>
    %56 = arith.addf %54, %55 : vector<32x256xf32>
    %cst_41 = arith.constant 0.000000e+00 : f32
    %57 = vector.broadcast %cst_41 : f32 to vector<32x256xf32>
    %58 = arith.maximumf %56, %57 : vector<32x256xf32>
    %c5_42 = arith.constant 5 : index
    %c0_43 = arith.constant 0 : index
    %c0_44 = arith.constant 0 : index
    %59 = vector.load %arg4[%c5_42, %c0_43, %c0_44] : memref<8x32x256xf32, #tpu.memory_space<vmem>>, vector<1x32x256xf32>
    %60 = vector.shape_cast %59 : vector<1x32x256xf32> to vector<32x256xf32>
    %61 = vector.shape_cast %58 : vector<32x256xf32> to vector<1x32x256xf32>
    tpu.vector_store %arg4[%c5_42, %c0_43, %c0_44], %61 {strides = array<i32>} : memref<8x32x256xf32, #tpu.memory_space<vmem>>, vector<1x32x256xf32>,
    %c6 = arith.constant 6 : index
    %c0_45 = arith.constant 0 : index
    %c0_46 = arith.constant 0 : index
    %62 = vector.load %arg1[%c6, %c0_45, %c0_46] : memref<8x3x256xf32, #tpu.memory_space<vmem>>, vector<1x3x256xf32>
    %63 = vector.shape_cast %62 : vector<1x3x256xf32> to vector<3x256xf32>
    %cst_47 = arith.constant dense<0.000000e+00> : vector<32x256xf32>
    %64 = tpu.matmul %0, %63, %cst_47 {dimension_numbers = #tpu.dot_dimension_numbers<[1], [0], [0], [1], [0, 0, 1, 1], [], []>} : vector<32x3xf32>, vector<3x256xf32>, vector<32x256xf32> -> vector<32x256xf32>
    %65 = vector.broadcast %1 : vector<32x1xf32> to vector<32x256xf32>
    %66 = arith.addf %64, %65 : vector<32x256xf32>
    %cst_48 = arith.constant 0.000000e+00 : f32
    %67 = vector.broadcast %cst_48 : f32 to vector<32x256xf32>
    %68 = arith.maximumf %66, %67 : vector<32x256xf32>
    %c6_49 = arith.constant 6 : index
    %c0_50 = arith.constant 0 : index
    %c0_51 = arith.constant 0 : index
    %69 = vector.load %arg4[%c6_49, %c0_50, %c0_51] : memref<8x32x256xf32, #tpu.memory_space<vmem>>, vector<1x32x256xf32>
    %70 = vector.shape_cast %69 : vector<1x32x256xf32> to vector<32x256xf32>
    %71 = vector.shape_cast %68 : vector<32x256xf32> to vector<1x32x256xf32>
    tpu.vector_store %arg4[%c6_49, %c0_50, %c0_51], %71 {strides = array<i32>} : memref<8x32x256xf32, #tpu.memory_space<vmem>>, vector<1x32x256xf32>,
    %c7 = arith.constant 7 : index
    %c0_52 = arith.constant 0 : index
    %c0_53 = arith.constant 0 : index
    %72 = vector.load %arg1[%c7, %c0_52, %c0_53] : memref<8x3x256xf32, #tpu.memory_space<vmem>>, vector<1x3x256xf32>
    %73 = vector.shape_cast %72 : vector<1x3x256xf32> to vector<3x256xf32>
    %cst_54 = arith.constant dense<0.000000e+00> : vector<32x256xf32>
    %74 = tpu.matmul %0, %73, %cst_54 {dimension_numbers = #tpu.dot_dimension_numbers<[1], [0], [0], [1], [0, 0, 1, 1], [], []>} : vector<32x3xf32>, vector<3x256xf32>, vector<32x256xf32> -> vector<32x256xf32>
    %75 = vector.broadcast %1 : vector<32x1xf32> to vector<32x256xf32>
    %76 = arith.addf %74, %75 : vector<32x256xf32>
    %cst_55 = arith.constant 0.000000e+00 : f32
    %77 = vector.broadcast %cst_55 : f32 to vector<32x256xf32>
    %78 = arith.maximumf %76, %77 : vector<32x256xf32>
    %c7_56 = arith.constant 7 : index
    %c0_57 = arith.constant 0 : index
    %c0_58 = arith.constant 0 : index
    %79 = vector.load %arg4[%c7_56, %c0_57, %c0_58] : memref<8x32x256xf32, #tpu.memory_space<vmem>>, vector<1x32x256xf32>
    %80 = vector.shape_cast %79 : vector<1x32x256xf32> to vector<32x256xf32>
    %81 = vector.shape_cast %78 : vector<32x256xf32> to vector<1x32x256xf32>
    tpu.vector_store %arg4[%c7_56, %c0_57, %c0_58], %81 {strides = array<i32>} : memref<8x32x256xf32, #tpu.memory_space<vmem>>, vector<1x32x256xf32>,
    return
  }
  func.func @transform_0(%arg0: i32) -> (i32, i32, i32) {
    %c0_i32 = arith.constant 0 : i32
    %c0_i32_0 = arith.constant 0 : i32
    %c0_i32_1 = arith.constant 0 : i32
    return %arg0, %c0_i32, %c0_i32_0 : i32, i32, i32
  }
  func.func @transform_1(%arg0: i32) -> (i32, i32) {
    %c0_i32 = arith.constant 0 : i32
    %c0_i32_0 = arith.constant 0 : i32
    %c0_i32_1 = arith.constant 0 : i32
    return %c0_i32, %c0_i32_0 : i32, i32
  }
  func.func @transform_2(%arg0: i32) -> (i32, i32) {
    %c0_i32 = arith.constant 0 : i32
    %c0_i32_0 = arith.constant 0 : i32
    %c0_i32_1 = arith.constant 0 : i32
    return %c0_i32, %c0_i32_0 : i32, i32
  }
  func.func @transform_3(%arg0: i32) -> (i32, i32, i32) {
    %c0_i32 = arith.constant 0 : i32
    %c0_i32_0 = arith.constant 0 : i32
    %c0_i32_1 = arith.constant 0 : i32
    return %arg0, %c0_i32, %c0_i32_0 : i32, i32, i32
  }
}

</mosaic_0001>

<bundles_post_ra>
// kernel: masking_model_forward.3
= control target key start
LH: loop header
LB: loop body
LE: loop exit
PB: predicated region body
PF: predicated region fallthrough
CT: control target
= control target key end

     0   :  { %vm58_vm0 = vcmask 1042432   ;;  %v1093_v2 = vmov 0.0   ;;  %v1094_v7 = vmov 0   ;;  %vm45_vm1 = vcmask 23552   ;;  %s1537_s0 = inlined_call_operand.vmem [shape: f32[8,3,256], index: 0, kind: input, shape index: {}]   ;;  %s1538_s1 = inlined_call_operand.vmem [shape: f32[32,3], index: 1, kind: input, shape index: {}]   ;;  %s1539_s2 = inlined_call_operand.vmem [shape: f32[32,1], index: 2, kind: input, shape index: {}]   ;;  %s1540_s3 = inlined_call_operand.vmem [shape: f32[8,32,256], index: 3, kind: output, shape index: {}]  }
   0x1   :  { %v22_v0 = vld [vmem:[%s1537_s0] sm:$0x77]  ;;  %v976_v1 = vld [vmem:[%s1537_s0 + $0x8] sm:$0x77]  ;;  %127 = vmatprep.mubr.f32.mxu0 %v1093_v2  ;;  %240 = vmatprep.mubr.f32.mxu1 %v1093_v2  ;;  %v991_v5 = vld [vmem:[%s1537_s0 + $0x10] sm:$0x77] }
   0x2   :  { %v44_v3 = vcombine.high %v22_v0, %v22_v0  ;;  %v171_v4 = vcombine.high %v976_v1, %v976_v1  ;;  %v1006_v6 = vld [vmem:[%s1537_s0 + $0x18] sm:$0x77]  ;;  %1083 = vset.pattern.permute.xlu0 %v1094_v7  ;;  %1084 = vset.pattern.permute.xlu1 %v1094_v7  ;;  %v1132_v8 = vld [vmem:[%s1538_s1] sm:$0xff]  ;;  %v285_v9 = vcombine.high %v991_v5, %v991_v5  ;;  %v1036_v12 = vld [vmem:[%s1537_s0 + $0x28] sm:$0x77] }
   0x3   :  { %v399_v10 = vcombine.high %v1006_v6, %v1006_v6  ;;  %v1021_v11 = vld [vmem:[%s1537_s0 + $0x20] sm:$0x77]  ;;  %v1153_v13 = vld [vmem:[%s1538_s1 + $0x8] sm:$0xff]  ;;  %v627_v15 = vcombine.high %v1036_v12, %v1036_v12  ;;  %v20_v17 = vld [vmem:[%s1539_s2 + $0x10] sm:$0xff] }
   0x4   :  { %970 = vmatprep.subr.msk.mxu0 %vm58_vm0, %v44_v3  ;;  %977 = vmatprep.subr.msk.mxu1 %vm58_vm0, %v171_v4  ;;  %v513_v14 = vcombine.high %v1021_v11, %v1021_v11  ;;  %v18_v16 = vld [vmem:[%s1539_s2] sm:$0xff]  ;;  %v1174_v18 = vld [vmem:[%s1538_s1 + $0x10] sm:$0xff]  ;;  %v19_v19 = vld [vmem:[%s1539_s2 + $0x8] sm:$0xff] }
   0x5   :  { %971 = vmatpush1.msk.msra.mxu0 %vm58_vm0, %v22_v0  ;;  %978 = vmatpush1.msk.msra.mxu1 %vm58_vm0, %v976_v1  ;;  %v21_v20 = vld [vmem:[%s1539_s2 + $0x18] sm:$0xff]  ;;  %v1051_v22 = vld [vmem:[%s1537_s0 + $0x30] sm:$0x77] }
   0x6   :  { %972 = vmatmul.mubr.msk.f32.vlgmr.msra.gmra.mrb[0].mxu0 %vm45_vm1, %v1132_v8  ;;  %979 = vmatmul.mubr.msk.f32.vlgmr.msra.gmra.mrb[0].mxu1 %vm45_vm1, %v1132_v8  ;;  %v17_v21 = vld [vmem:[%s1538_s1 + $0x18] sm:$0xff]  ;;  %v741_v24 = vcombine.high %v1051_v22, %v1051_v22 }
   0x7   :  { %992 = vmatprep.subr.msk.mxu0 %vm58_vm0, %v285_v9  ;;  %1007 = vmatprep.subr.msk.mxu1 %vm58_vm0, %v399_v10  ;;  %v1066_v23 = vld [vmem:[%s1537_s0 + $0x38] sm:$0x77] }
   0x8   :  { %993 = vmatpush1.msk.msra.mxu0 %vm58_vm0, %v991_v5  ;;  %1008 = vmatpush1.msk.msra.mxu1 %vm58_vm0, %v1006_v6  ;;  %v855_v25 = vcombine.high %v1066_v23, %v1066_v23 }
   0x9   :  { %133 = vmatprep.mubr.f32.mxu0 %v1093_v2  ;;  %246 = vmatprep.mubr.f32.mxu1 %v1093_v2 }
   0xa   :  { %973 = vmatmul.mubr.msk.f32.gmra.mrb[2].mxu0 %vm45_vm1, %v1153_v13  ;;  %980 = vmatmul.mubr.msk.f32.gmra.mrb[2].mxu1 %vm45_vm1, %v1153_v13 }
   0xb   :  { %139 = vmatprep.mubr.f32.mxu0 %v1093_v2  ;;  %252 = vmatprep.mubr.f32.mxu1 %v1093_v2 }
   0xc   :  { %1022 = vmatprep.subr.msk.mxu0 %vm58_vm0, %v513_v14  ;;  %1037 = vmatprep.subr.msk.mxu1 %vm58_vm0, %v627_v15 }
   0xd   :  { %25 = vperm.xlu0 %1083, %v18_v16   ;;  %35 = vperm.xlu1 %1084, %v20_v17  }
   0xe   :  { %974 = vmatmul.mubr.msk.f32.gmra.mrb[4].mxu0 %vm45_vm1, %v1174_v18  ;;  %981 = vmatmul.mubr.msk.f32.gmra.mrb[4].mxu1 %vm45_vm1, %v1174_v18 }
   0xf   :  { %145 = vmatprep.mubr.f32.mxu0 %v1093_v2  ;;  %258 = vmatprep.mubr.f32.mxu1 %v1093_v2 }
  0x11   :  { %30 = vperm.xlu0 %1083, %v19_v19   ;;  %40 = vperm.xlu1 %1084, %v21_v20  }
  0x12   :  { %975 = vmatmul.mubr.msk.f32.gmra.mrb[6].mxu0 %vm45_vm1, %v17_v21  ;;  %982 = vmatmul.mubr.msk.f32.gmra.mrb[6].mxu1 %vm45_vm1, %v17_v21 }
  0x13   :  { %354 = vmatprep.mubr.f32.mxu0 %v1093_v2  ;;  %468 = vmatprep.mubr.f32.mxu1 %v1093_v2 }
  0x16   :  { %994 = vmatmul.mubr.msk.f32.vlgmr.msra.gmra.mrb[8].mxu0 %vm45_vm1, %v1132_v8  ;;  %1009 = vmatmul.mubr.msk.f32.vlgmr.msra.gmra.mrb[8].mxu1 %vm45_vm1, %v1132_v8 }
  0x17   :  { %1023 = vmatpush1.msk.msra.mxu0 %vm58_vm0, %v1021_v11  ;;  %1038 = vmatpush1.msk.msra.mxu1 %vm58_vm0, %v1036_v12 }
  0x18   :  { %360 = vmatprep.mubr.f32.mxu0 %v1093_v2  ;;  %474 = vmatprep.mubr.f32.mxu1 %v1093_v2 }
  0x19   :  { %1052 = vmatprep.subr.msk.mxu0 %vm58_vm0, %v741_v24  ;;  %1067 = vmatprep.subr.msk.mxu1 %vm58_vm0, %v855_v25 }
  0x1a   :  { %995 = vmatmul.mubr.msk.f32.gmra.mrb[10].mxu0 %vm45_vm1, %v1153_v13  ;;  %1010 = vmatmul.mubr.msk.f32.gmra.mrb[10].mxu1 %vm45_vm1, %v1153_v13 }
  0x1b   :  { %366 = vmatprep.mubr.f32.mxu0 %v1093_v2  ;;  %480 = vmatprep.mubr.f32.mxu1 %v1093_v2 }
  0x1e   :  { %996 = vmatmul.mubr.msk.f32.gmra.mrb[12].mxu0 %vm45_vm1, %v1174_v18  ;;  %1011 = vmatmul.mubr.msk.f32.gmra.mrb[12].mxu1 %vm45_vm1, %v1174_v18 }
  0x1f   :  { %372 = vmatprep.mubr.f32.mxu0 %v1093_v2  ;;  %486 = vmatprep.mubr.f32.mxu1 %v1093_v2 }
  0x22   :  { %997 = vmatmul.mubr.msk.f32.gmra.mrb[14].mxu0 %vm45_vm1, %v17_v21  ;;  %1012 = vmatmul.mubr.msk.f32.gmra.mrb[14].mxu1 %vm45_vm1, %v17_v21 }
  0x23   :  { %582 = vmatprep.mubr.f32.mxu0 %v1093_v2  ;;  %696 = vmatprep.mubr.f32.mxu1 %v1093_v2 }
  0x26   :  { %1024 = vmatmul.mubr.msk.f32.vlgmr.msra.gmra.mrb[16].mxu0 %vm45_vm1, %v1132_v8  ;;  %1039 = vmatmul.mubr.msk.f32.vlgmr.msra.gmra.mrb[16].mxu1 %vm45_vm1, %v1132_v8 }
  0x27   :  { %1053 = vmatpush1.msk.msra.mxu0 %vm58_vm0, %v1051_v22  ;;  %1068 = vmatpush1.msk.msra.mxu1 %vm58_vm0, %v1066_v23 }
  0x28   :  { %588 = vmatprep.mubr.f32.mxu0 %v1093_v2  ;;  %702 = vmatprep.mubr.f32.mxu1 %v1093_v2 }
  0x2a   :  { %1025 = vmatmul.mubr.msk.f32.gmra.mrb[18].mxu0 %vm45_vm1, %v1153_v13  ;;  %1040 = vmatmul.mubr.msk.f32.gmra.mrb[18].mxu1 %vm45_vm1, %v1153_v13 }
  0x2b   :  { %594 = vmatprep.mubr.f32.mxu0 %v1093_v2  ;;  %708 = vmatprep.mubr.f32.mxu1 %v1093_v2 }
  0x2e   :  { %1026 = vmatmul.mubr.msk.f32.gmra.mrb[20].mxu0 %vm45_vm1, %v1174_v18  ;;  %1041 = vmatmul.mubr.msk.f32.gmra.mrb[20].mxu1 %vm45_vm1, %v1174_v18 }
  0x2f   :  { %600 = vmatprep.mubr.f32.mxu0 %v1093_v2  ;;  %714 = vmatprep.mubr.f32.mxu1 %v1093_v2 }
  0x32   :  { %1027 = vmatmul.mubr.msk.f32.gmra.mrb[22].mxu0 %vm45_vm1, %v17_v21  ;;  %1042 = vmatmul.mubr.msk.f32.gmra.mrb[22].mxu1 %vm45_vm1, %v17_v21 }
  0x33   :  { %810 = vmatprep.mubr.f32.mxu0 %v1093_v2  ;;  %924 = vmatprep.mubr.f32.mxu1 %v1093_v2 }
  0x36   :  { %1054 = vmatmul.mubr.msk.f32.vlgmr.msra.gmra.mrb[24].mxu0 %vm45_vm1, %v1132_v8  ;;  %1069 = vmatmul.mubr.msk.f32.vlgmr.msra.gmra.mrb[24].mxu1 %vm45_vm1, %v1132_v8 }
  0x37   :  { %816 = vmatprep.mubr.f32.mxu0 %v1093_v2  ;;  %930 = vmatprep.mubr.f32.mxu1 %v1093_v2 }
  0x3a   :  { %1055 = vmatmul.mubr.msk.f32.gmra.mrb[26].mxu0 %vm45_vm1, %v1153_v13  ;;  %1070 = vmatmul.mubr.msk.f32.gmra.mrb[26].mxu1 %vm45_vm1, %v1153_v13 }
  0x3b   :  { %822 = vmatprep.mubr.f32.mxu0 %v1093_v2  ;;  %936 = vmatprep.mubr.f32.mxu1 %v1093_v2 }
  0x3e   :  { %1056 = vmatmul.mubr.msk.f32.gmra.mrb[28].mxu0 %vm45_vm1, %v1174_v18  ;;  %1071 = vmatmul.mubr.msk.f32.gmra.mrb[28].mxu1 %vm45_vm1, %v1174_v18 }
  0x3f   :  { %828 = vmatprep.mubr.f32.mxu0 %v1093_v2  ;;  %942 = vmatprep.mubr.f32.mxu1 %v1093_v2 }
  0x42   :  { %1057 = vmatmul.mubr.msk.f32.gmra.mrb[30].mxu0 %vm45_vm1, %v17_v21  ;;  %1072 = vmatmul.mubr.msk.f32.gmra.mrb[30].mxu1 %vm45_vm1, %v17_v21 }
  0x8c   :  { %v1273_v26 = vpop.permute.xlu0 %25  ;;  %v1281_v38 = vpop.permute.xlu1 %35 }
  0x90   :  { %v1279_v35 = vpop.permute.xlu0 %30  ;;  %v1315_v61 = vpop.permute.xlu1 %40 }
  0xd9   :  { %v129_v27 = vpop.f32.mrb[0].mxu0  ;;  %v242_v28 = vpop.f32.mrb[0].mxu1 }
  0xda   :  { %v130_v29 = vadd.f32 %v129_v27, %v1273_v26  ;;  %v243_v30 = vadd.f32 %v242_v28, %v1273_v26  ;;  %v131_v31 = vpop.f32.mrb[1].mxu0  ;;  %v244_v32 = vpop.f32.mrb[1].mxu1 }
  0xdb   :  { %v132_v33 = vadd.f32 %v131_v31, %v1273_v26  ;;  %v245_v34 = vadd.f32 %v244_v32, %v1273_v26 }
  0xdc   :  { %v152_v36 = vmax.f32 %v130_v29, 0.0  ;;  %v265_v37 = vmax.f32 %v243_v30, 0.0 }
  0xdd   :  { %v153_v39 = vmax.f32 %v132_v33, 0.0  ;;  %v266_v40 = vmax.f32 %v245_v34, 0.0  ;;  %v135_v41 = vpop.f32.mrb[2].mxu0  ;;  %v248_v42 = vpop.f32.mrb[2].mxu1 }
  0xde   :  { %160 = vst [vmem:[%s1540_s3] sm:$0xff] %v152_v36  ;;  %983 = vst [vmem:[%s1540_s3 + $0x40] sm:$0xff] %v265_v37  ;;  %v136_v43 = vadd.f32 %v135_v41, %v1279_v35  ;;  %v249_v44 = vadd.f32 %v248_v42, %v1279_v35  ;;  %v137_v45 = vpop.f32.mrb[3].mxu0  ;;  %v250_v46 = vpop.f32.mrb[3].mxu1 }
  0xdf   :  { %161 = vst [vmem:[%s1540_s3 + $0x8] sm:$0xff] %v153_v39  ;;  %984 = vst [vmem:[%s1540_s3 + $0x48] sm:$0xff] %v266_v40  ;;  %v138_v47 = vadd.f32 %v137_v45, %v1279_v35  ;;  %v251_v48 = vadd.f32 %v250_v46, %v1279_v35 }
  0xe0   :  { %v154_v49 = vmax.f32 %v136_v43, 0.0  ;;  %v267_v50 = vmax.f32 %v249_v44, 0.0 }
  0xe1   :  { %v155_v51 = vmax.f32 %v138_v47, 0.0  ;;  %v268_v52 = vmax.f32 %v251_v48, 0.0  ;;  %v141_v53 = vpop.f32.mrb[4].mxu0  ;;  %v254_v54 = vpop.f32.mrb[4].mxu1 }
  0xe2   :  { %162 = vst [vmem:[%s1540_s3 + $0x10] sm:$0xff] %v154_v49  ;;  %985 = vst [vmem:[%s1540_s3 + $0x50] sm:$0xff] %v267_v50  ;;  %v142_v55 = vadd.f32 %v141_v53, %v1281_v38  ;;  %v255_v56 = vadd.f32 %v254_v54, %v1281_v38  ;;  %v143_v57 = vpop.f32.mrb[5].mxu0  ;;  %v256_v58 = vpop.f32.mrb[5].mxu1 }
  0xe3   :  { %163 = vst [vmem:[%s1540_s3 + $0x18] sm:$0xff] %v155_v51  ;;  %986 = vst [vmem:[%s1540_s3 + $0x58] sm:$0xff] %v268_v52  ;;  %v144_v59 = vadd.f32 %v143_v57, %v1281_v38  ;;  %v257_v60 = vadd.f32 %v256_v58, %v1281_v38 }
  0xe4   :  { %v156_v62 = vmax.f32 %v142_v55, 0.0  ;;  %v269_v63 = vmax.f32 %v255_v56, 0.0 }
  0xe5   :  { %v157_v0 = vmax.f32 %v144_v59, 0.0  ;;  %v270_v1 = vmax.f32 %v257_v60, 0.0  ;;  %v147_v2 = vpop.f32.mrb[6].mxu0  ;;  %v260_v3 = vpop.f32.mrb[6].mxu1 }
  0xe6   :  { %164 = vst [vmem:[%s1540_s3 + $0x20] sm:$0xff] %v156_v62  ;;  %987 = vst [vmem:[%s1540_s3 + $0x60] sm:$0xff] %v269_v63  ;;  %v148_v4 = vadd.f32 %v147_v2, %v1315_v61  ;;  %v261_v5 = vadd.f32 %v260_v3, %v1315_v61  ;;  %v149_v6 = vpop.f32.mrb[7].mxu0  ;;  %v262_v7 = vpop.f32.mrb[7].mxu1 }
  0xe7   :  { %165 = vst [vmem:[%s1540_s3 + $0x28] sm:$0xff] %v157_v0  ;;  %988 = vst [vmem:[%s1540_s3 + $0x68] sm:$0xff] %v270_v1  ;;  %v150_v8 = vadd.f32 %v149_v6, %v1315_v61  ;;  %v263_v9 = vadd.f32 %v262_v7, %v1315_v61 }
  0xe8   :  { %v158_v10 = vmax.f32 %v148_v4, 0.0  ;;  %v271_v11 = vmax.f32 %v261_v5, 0.0 }
  0xe9   :  { %v159_v12 = vmax.f32 %v150_v8, 0.0  ;;  %v272_v13 = vmax.f32 %v263_v9, 0.0  ;;  %v356_v14 = vpop.f32.mrb[8].mxu0  ;;  %v470_v15 = vpop.f32.mrb[8].mxu1 }
  0xea   :  { %166 = vst [vmem:[%s1540_s3 + $0x30] sm:$0xff] %v158_v10  ;;  %989 = vst [vmem:[%s1540_s3 + $0x70] sm:$0xff] %v271_v11  ;;  %v357_v16 = vadd.f32 %v356_v14, %v1273_v26  ;;  %v471_v17 = vadd.f32 %v470_v15, %v1273_v26  ;;  %v358_v18 = vpop.f32.mrb[9].mxu0  ;;  %v472_v19 = vpop.f32.mrb[9].mxu1 }
  0xeb   :  { %167 = vst [vmem:[%s1540_s3 + $0x38] sm:$0xff] %v159_v12  ;;  %990 = vst [vmem:[%s1540_s3 + $0x78] sm:$0xff] %v272_v13  ;;  %v359_v20 = vadd.f32 %v358_v18, %v1273_v26  ;;  %v473_v21 = vadd.f32 %v472_v19, %v1273_v26 }
  0xec   :  { %v379_v22 = vmax.f32 %v357_v16, 0.0  ;;  %v493_v23 = vmax.f32 %v471_v17, 0.0 }
  0xed   :  { %v380_v24 = vmax.f32 %v359_v20, 0.0  ;;  %v494_v25 = vmax.f32 %v473_v21, 0.0  ;;  %v362_v27 = vpop.f32.mrb[10].mxu0  ;;  %v476_v28 = vpop.f32.mrb[10].mxu1 }
  0xee   :  { %998 = vst [vmem:[%s1540_s3 + $0x80] sm:$0xff] %v379_v22  ;;  %1013 = vst [vmem:[%s1540_s3 + $0xc0] sm:$0xff] %v493_v23  ;;  %v363_v29 = vadd.f32 %v362_v27, %v1279_v35  ;;  %v477_v30 = vadd.f32 %v476_v28, %v1279_v35  ;;  %v364_v31 = vpop.f32.mrb[11].mxu0  ;;  %v478_v32 = vpop.f32.mrb[11].mxu1 }
  0xef   :  { %999 = vst [vmem:[%s1540_s3 + $0x88] sm:$0xff] %v380_v24  ;;  %1014 = vst [vmem:[%s1540_s3 + $0xc8] sm:$0xff] %v494_v25  ;;  %v365_v33 = vadd.f32 %v364_v31, %v1279_v35  ;;  %v479_v34 = vadd.f32 %v478_v32, %v1279_v35 }
  0xf0   :  { %v381_v36 = vmax.f32 %v363_v29, 0.0  ;;  %v495_v37 = vmax.f32 %v477_v30, 0.0 }
  0xf1   :  { %v382_v39 = vmax.f32 %v365_v33, 0.0  ;;  %v496_v40 = vmax.f32 %v479_v34, 0.0  ;;  %v368_v41 = vpop.f32.mrb[12].mxu0  ;;  %v482_v42 = vpop.f32.mrb[12].mxu1 }
  0xf2   :  { %1000 = vst [vmem:[%s1540_s3 + $0x90] sm:$0xff] %v381_v36  ;;  %1015 = vst [vmem:[%s1540_s3 + $0xd0] sm:$0xff] %v495_v37  ;;  %v369_v43 = vadd.f32 %v368_v41, %v1281_v38  ;;  %v483_v44 = vadd.f32 %v482_v42, %v1281_v38  ;;  %v370_v45 = vpop.f32.mrb[13].mxu0  ;;  %v484_v46 = vpop.f32.mrb[13].mxu1 }
  0xf3   :  { %1001 = vst [vmem:[%s1540_s3 + $0x98] sm:$0xff] %v382_v39  ;;  %1016 = vst [vmem:[%s1540_s3 + $0xd8] sm:$0xff] %v496_v40  ;;  %v371_v47 = vadd.f32 %v370_v45, %v1281_v38  ;;  %v485_v48 = vadd.f32 %v484_v46, %v1281_v38 }
  0xf4   :  { %v383_v49 = vmax.f32 %v369_v43, 0.0  ;;  %v497_v50 = vmax.f32 %v483_v44, 0.0 }
  0xf5   :  { %v384_v51 = vmax.f32 %v371_v47, 0.0  ;;  %v498_v52 = vmax.f32 %v485_v48, 0.0  ;;  %v374_v53 = vpop.f32.mrb[14].mxu0  ;;  %v488_v54 = vpop.f32.mrb[14].mxu1 }
  0xf6   :  { %1002 = vst [vmem:[%s1540_s3 + $0xa0] sm:$0xff] %v383_v49  ;;  %1017 = vst [vmem:[%s1540_s3 + $0xe0] sm:$0xff] %v497_v50  ;;  %v375_v55 = vadd.f32 %v374_v53, %v1315_v61  ;;  %v489_v56 = vadd.f32 %v488_v54, %v1315_v61  ;;  %v376_v57 = vpop.f32.mrb[15].mxu0  ;;  %v490_v58 = vpop.f32.mrb[15].mxu1 }
  0xf7   :  { %1003 = vst [vmem:[%s1540_s3 + $0xa8] sm:$0xff] %v384_v51  ;;  %1018 = vst [vmem:[%s1540_s3 + $0xe8] sm:$0xff] %v498_v52  ;;  %v377_v59 = vadd.f32 %v376_v57, %v1315_v61  ;;  %v491_v60 = vadd.f32 %v490_v58, %v1315_v61 }
  0xf8   :  { %v385_v62 = vmax.f32 %v375_v55, 0.0  ;;  %v499_v63 = vmax.f32 %v489_v56, 0.0 }
  0xf9   :  { %v386_v0 = vmax.f32 %v377_v59, 0.0  ;;  %v500_v1 = vmax.f32 %v491_v60, 0.0  ;;  %v584_v2 = vpop.f32.mrb[16].mxu0  ;;  %v698_v3 = vpop.f32.mrb[16].mxu1 }
  0xfa   :  { %1004 = vst [vmem:[%s1540_s3 + $0xb0] sm:$0xff] %v385_v62  ;;  %1019 = vst [vmem:[%s1540_s3 + $0xf0] sm:$0xff] %v499_v63  ;;  %v585_v4 = vadd.f32 %v584_v2, %v1273_v26  ;;  %v699_v5 = vadd.f32 %v698_v3, %v1273_v26  ;;  %v586_v6 = vpop.f32.mrb[17].mxu0  ;;  %v700_v7 = vpop.f32.mrb[17].mxu1 }
  0xfb   :  { %1005 = vst [vmem:[%s1540_s3 + $0xb8] sm:$0xff] %v386_v0  ;;  %1020 = vst [vmem:[%s1540_s3 + $0xf8] sm:$0xff] %v500_v1  ;;  %v587_v8 = vadd.f32 %v586_v6, %v1273_v26  ;;  %v701_v9 = vadd.f32 %v700_v7, %v1273_v26 }
  0xfc   :  { %v607_v10 = vmax.f32 %v585_v4, 0.0  ;;  %v721_v11 = vmax.f32 %v699_v5, 0.0 }
  0xfd   :  { %v608_v12 = vmax.f32 %v587_v8, 0.0  ;;  %v722_v13 = vmax.f32 %v701_v9, 0.0  ;;  %v590_v14 = vpop.f32.mrb[18].mxu0  ;;  %v704_v15 = vpop.f32.mrb[18].mxu1 }
  0xfe   :  { %1028 = vst [vmem:[%s1540_s3 + $0x100] sm:$0xff] %v607_v10  ;;  %1043 = vst [vmem:[%s1540_s3 + $0x140] sm:$0xff] %v721_v11  ;;  %v591_v16 = vadd.f32 %v590_v14, %v1279_v35  ;;  %v705_v17 = vadd.f32 %v704_v15, %v1279_v35  ;;  %v592_v18 = vpop.f32.mrb[19].mxu0  ;;  %v706_v19 = vpop.f32.mrb[19].mxu1 }
  0xff   :  { %1029 = vst [vmem:[%s1540_s3 + $0x108] sm:$0xff] %v608_v12  ;;  %1044 = vst [vmem:[%s1540_s3 + $0x148] sm:$0xff] %v722_v13  ;;  %v593_v20 = vadd.f32 %v592_v18, %v1279_v35  ;;  %v707_v21 = vadd.f32 %v706_v19, %v1279_v35 }
 0x100   :  { %v609_v22 = vmax.f32 %v591_v16, 0.0  ;;  %v723_v23 = vmax.f32 %v705_v17, 0.0 }
 0x101   :  { %v610_v24 = vmax.f32 %v593_v20, 0.0  ;;  %v724_v25 = vmax.f32 %v707_v21, 0.0  ;;  %v596_v27 = vpop.f32.mrb[20].mxu0  ;;  %v710_v28 = vpop.f32.mrb[20].mxu1 }
 0x102   :  { %1030 = vst [vmem:[%s1540_s3 + $0x110] sm:$0xff] %v609_v22  ;;  %1045 = vst [vmem:[%s1540_s3 + $0x150] sm:$0xff] %v723_v23  ;;  %v597_v29 = vadd.f32 %v596_v27, %v1281_v38  ;;  %v711_v30 = vadd.f32 %v710_v28, %v1281_v38  ;;  %v598_v31 = vpop.f32.mrb[21].mxu0  ;;  %v712_v32 = vpop.f32.mrb[21].mxu1 }
 0x103   :  { %1031 = vst [vmem:[%s1540_s3 + $0x118] sm:$0xff] %v610_v24  ;;  %1046 = vst [vmem:[%s1540_s3 + $0x158] sm:$0xff] %v724_v25  ;;  %v599_v33 = vadd.f32 %v598_v31, %v1281_v38  ;;  %v713_v34 = vadd.f32 %v712_v32, %v1281_v38 }
 0x104   :  { %v611_v36 = vmax.f32 %v597_v29, 0.0  ;;  %v725_v37 = vmax.f32 %v711_v30, 0.0 }
 0x105   :  { %v612_v39 = vmax.f32 %v599_v33, 0.0  ;;  %v726_v40 = vmax.f32 %v713_v34, 0.0  ;;  %v602_v41 = vpop.f32.mrb[22].mxu0  ;;  %v716_v42 = vpop.f32.mrb[22].mxu1 }
 0x106   :  { %1032 = vst [vmem:[%s1540_s3 + $0x120] sm:$0xff] %v611_v36  ;;  %1047 = vst [vmem:[%s1540_s3 + $0x160] sm:$0xff] %v725_v37  ;;  %v603_v43 = vadd.f32 %v602_v41, %v1315_v61  ;;  %v717_v44 = vadd.f32 %v716_v42, %v1315_v61  ;;  %v604_v45 = vpop.f32.mrb[23].mxu0  ;;  %v718_v46 = vpop.f32.mrb[23].mxu1 }
 0x107   :  { %1033 = vst [vmem:[%s1540_s3 + $0x128] sm:$0xff] %v612_v39  ;;  %1048 = vst [vmem:[%s1540_s3 + $0x168] sm:$0xff] %v726_v40  ;;  %v605_v47 = vadd.f32 %v604_v45, %v1315_v61  ;;  %v719_v48 = vadd.f32 %v718_v46, %v1315_v61 }
 0x108   :  { %v613_v49 = vmax.f32 %v603_v43, 0.0  ;;  %v727_v50 = vmax.f32 %v717_v44, 0.0 }
 0x109   :  { %v614_v51 = vmax.f32 %v605_v47, 0.0  ;;  %v728_v52 = vmax.f32 %v719_v48, 0.0  ;;  %v812_v53 = vpop.f32.mrb[24].mxu0  ;;  %v926_v54 = vpop.f32.mrb[24].mxu1 }
 0x10a   :  { %1034 = vst [vmem:[%s1540_s3 + $0x130] sm:$0xff] %v613_v49  ;;  %1049 = vst [vmem:[%s1540_s3 + $0x170] sm:$0xff] %v727_v50  ;;  %v813_v55 = vadd.f32 %v812_v53, %v1273_v26  ;;  %v927_v56 = vadd.f32 %v926_v54, %v1273_v26  ;;  %v814_v57 = vpop.f32.mrb[25].mxu0  ;;  %v928_v58 = vpop.f32.mrb[25].mxu1 }
 0x10b   :  { %1035 = vst [vmem:[%s1540_s3 + $0x138] sm:$0xff] %v614_v51  ;;  %1050 = vst [vmem:[%s1540_s3 + $0x178] sm:$0xff] %v728_v52  ;;  %v815_v59 = vadd.f32 %v814_v57, %v1273_v26  ;;  %v929_v60 = vadd.f32 %v928_v58, %v1273_v26 }
 0x10c   :  { %v835_v62 = vmax.f32 %v813_v55, 0.0  ;;  %v949_v63 = vmax.f32 %v927_v56, 0.0 }
 0x10d   :  { %v836_v0 = vmax.f32 %v815_v59, 0.0  ;;  %v950_v1 = vmax.f32 %v929_v60, 0.0  ;;  %v818_v2 = vpop.f32.mrb[26].mxu0  ;;  %v932_v3 = vpop.f32.mrb[26].mxu1 }
 0x10e   :  { %1058 = vst [vmem:[%s1540_s3 + $0x180] sm:$0xff] %v835_v62  ;;  %1073 = vst [vmem:[%s1540_s3 + $0x1c0] sm:$0xff] %v949_v63  ;;  %v819_v4 = vadd.f32 %v818_v2, %v1279_v35  ;;  %v933_v5 = vadd.f32 %v932_v3, %v1279_v35  ;;  %v820_v6 = vpop.f32.mrb[27].mxu0  ;;  %v934_v26 = vpop.f32.mrb[27].mxu1 }
 0x10f   :  { %1059 = vst [vmem:[%s1540_s3 + $0x188] sm:$0xff] %v836_v0  ;;  %1074 = vst [vmem:[%s1540_s3 + $0x1c8] sm:$0xff] %v950_v1  ;;  %v821_v7 = vadd.f32 %v820_v6, %v1279_v35  ;;  %v935_v8 = vadd.f32 %v934_v26, %v1279_v35 }
 0x110   :  { %v837_v9 = vmax.f32 %v819_v4, 0.0  ;;  %v951_v10 = vmax.f32 %v933_v5, 0.0 }
 0x111   :  { %v838_v11 = vmax.f32 %v821_v7, 0.0  ;;  %v952_v12 = vmax.f32 %v935_v8, 0.0  ;;  %v824_v13 = vpop.f32.mrb[28].mxu0  ;;  %v938_v14 = vpop.f32.mrb[28].mxu1 }
 0x112   :  { %1060 = vst [vmem:[%s1540_s3 + $0x190] sm:$0xff] %v837_v9  ;;  %1075 = vst [vmem:[%s1540_s3 + $0x1d0] sm:$0xff] %v951_v10  ;;  %v825_v15 = vadd.f32 %v824_v13, %v1281_v38  ;;  %v939_v16 = vadd.f32 %v938_v14, %v1281_v38  ;;  %v826_v17 = vpop.f32.mrb[29].mxu0  ;;  %v940_v35 = vpop.f32.mrb[29].mxu1 }
 0x113   :  { %1061 = vst [vmem:[%s1540_s3 + $0x198] sm:$0xff] %v838_v11  ;;  %1076 = vst [vmem:[%s1540_s3 + $0x1d8] sm:$0xff] %v952_v12  ;;  %v827_v18 = vadd.f32 %v826_v17, %v1281_v38  ;;  %v941_v19 = vadd.f32 %v940_v35, %v1281_v38 }
 0x114   :  { %v839_v20 = vmax.f32 %v825_v15, 0.0  ;;  %v953_v21 = vmax.f32 %v939_v16, 0.0 }
 0x115   :  { %v840_v22 = vmax.f32 %v827_v18, 0.0  ;;  %v954_v23 = vmax.f32 %v941_v19, 0.0  ;;  %v830_v24 = vpop.f32.mrb[30].mxu0  ;;  %v944_v25 = vpop.f32.mrb[30].mxu1 }
 0x116   :  { %1062 = vst [vmem:[%s1540_s3 + $0x1a0] sm:$0xff] %v839_v20  ;;  %1077 = vst [vmem:[%s1540_s3 + $0x1e0] sm:$0xff] %v953_v21  ;;  %v831_v27 = vadd.f32 %v830_v24, %v1315_v61  ;;  %v945_v28 = vadd.f32 %v944_v25, %v1315_v61  ;;  %v832_v29 = vpop.f32.mrb[31].mxu0  ;;  %v946_v38 = vpop.f32.mrb[31].mxu1 }
 0x117   :  { %1063 = vst [vmem:[%s1540_s3 + $0x1a8] sm:$0xff] %v840_v22  ;;  %1078 = vst [vmem:[%s1540_s3 + $0x1e8] sm:$0xff] %v954_v23  ;;  %v833_v30 = vadd.f32 %v832_v29, %v1315_v61  ;;  %v947_v31 = vadd.f32 %v946_v38, %v1315_v61 }
 0x118   :  { %v841_v32 = vmax.f32 %v831_v27, 0.0  ;;  %v955_v33 = vmax.f32 %v945_v28, 0.0 }
 0x119   :  { %v842_v34 = vmax.f32 %v833_v30, 0.0  ;;  %v956_v36 = vmax.f32 %v947_v31, 0.0 }
 0x11a   :  { %1064 = vst [vmem:[%s1540_s3 + $0x1b0] sm:$0xff] %v841_v32  ;;  %1079 = vst [vmem:[%s1540_s3 + $0x1f0] sm:$0xff] %v955_v33 }
 0x11b   :  { %1065 = vst [vmem:[%s1540_s3 + $0x1b8] sm:$0xff] %v842_v34  ;;  %1080 = vst [vmem:[%s1540_s3 + $0x1f8] sm:$0xff] %v956_v36 }

// kernel: masking_model_forward.2
= control target key start
LH: loop header
LB: loop body
LE: loop exit
PB: predicated region body
PF: predicated region fallthrough
CT: control target
= control target key end

     0   :  { %13 = vsyncpa [#allocation3], 0  ;;  %s6408_s0 = inlined_call_operand.vmem [shape: f32[4,2,3,256], index: 0, kind: input, shape index: {}]   ;;  %s6409_s1 = inlined_call_operand.vmem [shape: f32[4,3,3,256], index: 1, kind: input, shape index: {}]   ;;  %s6410_s2 = inlined_call_operand.hbm [shape: f32[32,3], index: 2, kind: input, shape index: {}]   ;;  %s6411_s3 = inlined_call_operand.vmem [shape: f32[32,1], index: 3, kind: input, shape index: {}, may-alias: {3,5}]   ;;  %s6412_s4 = inlined_call_operand.hbm [shape: f32[32,64], index: 4, kind: input, shape index: {}]   ;;  %s6413_s5 = inlined_call_operand.vmem [shape: f32[32,1], index: 5, kind: input, shape index: {}, may-alias: {3,5}]   ;;  %s6414_s6 = inlined_call_operand.vmem [shape: f32[4,2,32,256], index: 6, kind: output, shape index: {0}]   ;;  %s6415_s7 = inlined_call_operand.vmem [shape: f32[4,3,32,256], index: 7, kind: output, shape index: {1}]  }
   0x1   :  { %14 = vsyncpa [#allocation5], 0  ;;  %s4249_s24 = smov [#allocation2]   ;;  %s4201_s28 = scalar_lea.hbm %s6410_s2, 512 }
   0x2   :  { %s24_s25 = sshll.u32 %s4249_s24, 4  ;;  %p4202_p0 = scmp.ne.s32.totalorder %s6410_s2, %s4201_s28  ;;  %s25_s25 = int_to_ptr.vmem [resolvable:$true] %s24_s25 }
   0x3   :  { %p4205_p1 = scmp.lt.u32.totalorder %s4201_s28, %s6410_s2 }
   0x5   :  { %p4207_p2 = pnand %p4205_p1, %p4202_p0 }
   0x7   :  { %4210 = shalt.err (!%p4207_p2)
}
   0x8   :  { %s4211_s10 = scalar_lea.vmem %s25_s25, 512  ;;  %p4216_p4 = scmp.lt.s32.totalorder %s25_s25, %s25_s25 }
   0x9   :  { %p4212_p3 = scmp.ne.s32.totalorder %s25_s25, %s4211_s10  ;;  %p4217_p5 = scmp.lt.s32.totalorder %s4211_s10, %s4211_s10 }
   0xb   :  { %p4218_p6 = por %p4217_p5, %p4216_p4 }
   0xd   :  { %p4219_p7 = pnand %p4218_p6, %p4212_p3 }
   0xf   :  { %4222 = shalt.err (!%p4219_p7)
}
  0x10   :  { %s4250_s11 = smov 128   ;;  %s4251_s12 = smov 8  }
  0x11   :  { %30 = dma.hbm_to_vmem [thread:$0]  %s6410_s2, 512, %s25_s25, [#allocation3], %s4250_s11, %s4250_s11, %s4251_s12  }
  0x12   :  { %s4252_s15 = smov [#allocation4]   ;;  %s4223_s19 = scalar_lea.hbm %s6412_s4, 512 }
  0x13   :  { %s38_s16 = sshll.u32 %s4252_s15, 4  ;;  %p4224_p8 = scmp.ne.s32.totalorder %s6412_s4, %s4223_s19  ;;  %s39_s16 = int_to_ptr.vmem [resolvable:$true] %s38_s16 }
  0x14   :  { %p4227_p9 = scmp.lt.u32.totalorder %s4223_s19, %s6412_s4 }
  0x16   :  { %p4229_p10 = pnand %p4227_p9, %p4224_p8 }
  0x18   :  { %4232 = shalt.err (!%p4229_p10)
}
  0x19   :  { %s4233_s24 = scalar_lea.vmem %s39_s16, 512  ;;  %p4238_p12 = scmp.lt.s32.totalorder %s39_s16, %s39_s16 }
  0x1a   :  { %p4234_p11 = scmp.ne.s32.totalorder %s39_s16, %s4233_s24  ;;  %p4239_p13 = scmp.lt.s32.totalorder %s4233_s24, %s4233_s24 }
  0x1c   :  { %p4240_p0 = por %p4239_p13, %p4238_p12 }
  0x1e   :  { %p4241_p1 = pnand %p4240_p0, %p4234_p11 }
  0x20   :  { %4244 = shalt.err (!%p4241_p1)
}
  0x21   :  { %44 = dma.hbm_to_vmem [thread:$0]  %s6412_s4, 512, %s39_s16, [#allocation5], %s4250_s11, %s4250_s11, %s4251_s12  }
  0x22   :  { %4245 = dma.done.wait [#allocation3], 512  }
  0x23   :  { %4246 = vsyncadd [#allocation3], 4294966784 }
  0x24   :  { %4247 = dma.done.wait [#allocation5], 512  }
  0x25   :  { %4248 = vsyncadd [#allocation5], 4294966784  ;;  %v6470_v0 = vmov 0.0   ;;  %v4254_v1 = vmov 0   ;;  %v69_v2 = vld [vmem:[%s6408_s0] sm:$0x77] }
  0x26   :  { %174 = vmatprep.mubr.f32.mxu0 %v6470_v0  ;;  %287 = vmatprep.mubr.f32.mxu1 %v6470_v0  ;;  %vm105_vm0 = vcmask 1042432   ;;  %v3426_v3 = vld [vmem:[%s6408_s0 + $0x8] sm:$0x77]  ;;  %v91_v4 = vcombine.high %v69_v2, %v69_v2  ;;  %v346_v6 = vld [vmem:[%s6409_s1] sm:$0x77]  ;;  %vm92_vm1 = vcmask 23552  }
  0x27   :  { %3996 = vset.pattern.permute.xlu0 %v4254_v1  ;;  %3997 = vset.pattern.permute.xlu1 %v4254_v1  ;;  %v218_v5 = vcombine.high %v3426_v3, %v3426_v3  ;;  %v4330_v7 = vld [vmem:[#allocation2] sm:$0xff]  ;;  %v348_v8 = vcombine.high %v346_v6, %v346_v6  ;;  %v3447_v9 = vld [vmem:[%s6409_s1 + $0x8] sm:$0x77]  ;;  %v3462_v10 = vld [vmem:[%s6409_s1 + $0x10] sm:$0x77]  ;;  %vm731_vm2 = vcmask 523264  }
  0x28   :  { %3420 = vmatprep.subr.msk.mxu0 %vm105_vm0, %v91_v4  ;;  %v461_v11 = vcombine.high %v3447_v9, %v3447_v9  ;;  %v583_v12 = vcombine.high %v3462_v10, %v3462_v10  ;;  %v4348_v13 = vld [vmem:[#allocation2 + $0x8] sm:$0xff]  ;;  %v57_v14 = vld [vmem:[%s6411_s3] sm:$0xff]  ;;  %v59_v15 = vld [vmem:[%s6411_s3 + $0x10] sm:$0xff] }
  0x29   :  { %3427 = vmatprep.subr.msk.mxu1 %vm105_vm0, %v218_v5  ;;  %3421 = vmatpush1.msk.msra.mxu0 %vm105_vm0, %v69_v2  ;;  %v4366_v16 = vld [vmem:[#allocation2 + $0x10] sm:$0xff]  ;;  %v58_v17 = vld [vmem:[%s6411_s3 + $0x8] sm:$0xff]  ;;  %v60_v18 = vld [vmem:[%s6411_s3 + $0x18] sm:$0xff] }
  0x2a   :  { %3428 = vmatpush1.msk.msra.mxu1 %vm105_vm0, %v3426_v3  ;;  %3422 = vmatmul.mubr.msk.f32.vlgmr.msra.gmra.mrb[0].mxu0 %vm92_vm1, %v4330_v7  ;;  %v4381_v19 = vld [vmem:[#allocation2 + $0x18] sm:$0xff]  ;;  %v3521_v20 = vld [vmem:[%s6408_s0 + $0x10] sm:$0x77]  ;;  %v65_v21 = vld [vmem:[%s6413_s5] sm:$0xff] }
  0x2b   :  { %3429 = vmatmul.mubr.msk.f32.vlgmr.msra.gmra.mrb[0].mxu1 %vm92_vm1, %v4330_v7  ;;  %3441 = vmatprep.subr.msk.mxu0 %vm105_vm0, %v348_v8  ;;  %v66_v22 = vld [vmem:[%s6413_s5 + $0x8] sm:$0xff]  ;;  %v956_v23 = vcombine.high %v3521_v20, %v3521_v20  ;;  %v67_v24 = vld [vmem:[%s6413_s5 + $0x10] sm:$0xff]  ;;  %v68_v25 = vld [vmem:[%s6413_s5 + $0x18] sm:$0xff] }
  0x2c   :  { %180 = vmatprep.mubr.f32.mxu0 %v6470_v0  ;;  %3442 = vmatpush1.msk.msra.mxu0 %vm105_vm0, %v346_v6  ;;  %v3551_v26 = vld [vmem:[%s6409_s1 + $0x18] sm:$0x77]  ;;  %v3581_v28 = vld [vmem:[%s6409_s1 + $0x28] sm:$0x77]  ;;  %v3656_v30 = vld [vmem:[%s6408_s0 + $0x20] sm:$0x77] }
  0x2d   :  { %293 = vmatprep.mubr.f32.mxu1 %v6470_v0  ;;  %3448 = vmatprep.subr.msk.mxu1 %vm105_vm0, %v461_v11  ;;  %v1200_v27 = vcombine.high %v3551_v26, %v3551_v26  ;;  %v1436_v29 = vcombine.high %v3581_v28, %v3581_v28  ;;  %v1775_v31 = vcombine.high %v3656_v30, %v3656_v30  ;;  %v3686_v32 = vld [vmem:[%s6409_s1 + $0x30] sm:$0x77]  ;;  %v3716_v34 = vld [vmem:[%s6409_s1 + $0x40] sm:$0x77]  ;;  %v3821_v38 = vld [vmem:[%s6409_s1 + $0x48] sm:$0x77] }
  0x2e   :  { %3463 = vmatprep.subr.msk.mxu0 %vm105_vm0, %v583_v12  ;;  %3423 = vmatmul.mubr.msk.f32.gmra.mrb[2].mxu0 %vm92_vm1, %v4348_v13  ;;  %v2019_v33 = vcombine.high %v3686_v32, %v3686_v32  ;;  %v2255_v35 = vcombine.high %v3716_v34, %v3716_v34  ;;  %v3791_v36 = vld [vmem:[%s6408_s0 + $0x30] sm:$0x77]  ;;  %v2838_v39 = vcombine.high %v3821_v38, %v3821_v38  ;;  %v3851_v40 = vld [vmem:[%s6409_s1 + $0x58] sm:$0x77] }
  0x2f   :  { %3430 = vmatmul.mubr.msk.f32.gmra.mrb[2].mxu1 %vm92_vm1, %v4348_v13  ;;  %186 = vmatprep.mubr.f32.mxu0 %v6470_v0  ;;  %v2594_v37 = vcombine.high %v3791_v36, %v3791_v36  ;;  %v3074_v41 = vcombine.high %v3851_v40, %v3851_v40 }
  0x30   :  { %299 = vmatprep.mubr.f32.mxu1 %v6470_v0  ;;  %3449 = vmatpush1.msk.msra.mxu1 %vm105_vm0, %v3447_v9 }
  0x31   :  { %72 = vperm.xlu0 %3996, %v57_v14   ;;  %82 = vperm.xlu1 %3997, %v59_v15  }
  0x32   :  { %3424 = vmatmul.mubr.msk.f32.gmra.mrb[4].mxu0 %vm92_vm1, %v4366_v16 }
  0x33   :  { %3431 = vmatmul.mubr.msk.f32.gmra.mrb[4].mxu1 %vm92_vm1, %v4366_v16  ;;  %192 = vmatprep.mubr.f32.mxu0 %v6470_v0 }
  0x34   :  { %305 = vmatprep.mubr.f32.mxu1 %v6470_v0 }
  0x35   :  { %77 = vperm.xlu0 %3996, %v58_v17   ;;  %87 = vperm.xlu1 %3997, %v60_v18  }
  0x36   :  { %3425 = vmatmul.mubr.msk.f32.gmra.mrb[6].mxu0 %vm92_vm1, %v4381_v19 }
  0x37   :  { %3432 = vmatmul.mubr.msk.f32.gmra.mrb[6].mxu1 %vm92_vm1, %v4381_v19  ;;  %417 = vmatprep.mubr.f32.mxu0 %v6470_v0 }
  0x38   :  { %530 = vmatprep.mubr.f32.mxu1 %v6470_v0 }
  0x39   :  { %713 = vperm.xlu0 %3996, %v65_v21   ;;  %718 = vperm.xlu1 %3997, %v66_v22  }
  0x3a   :  { %3443 = vmatmul.mubr.msk.f32.vlgmr.msra.gmra.mrb[8].mxu0 %vm92_vm1, %v4330_v7 }
  0x3b   :  { %3450 = vmatmul.mubr.msk.f32.vlgmr.msra.gmra.mrb[8].mxu1 %vm92_vm1, %v4330_v7  ;;  %3464 = vmatpush1.msk.msra.mxu0 %vm105_vm0, %v3462_v10 }
  0x3c   :  { %423 = vmatprep.mubr.f32.mxu0 %v6470_v0  ;;  %536 = vmatprep.mubr.f32.mxu1 %v6470_v0 }
  0x3d   :  { %3522 = vmatprep.subr.msk.mxu0 %vm105_vm0, %v956_v23  ;;  %723 = vperm.xlu0 %3996, %v67_v24  }
  0x3e   :  { %728 = vperm.xlu1 %3997, %v68_v25   ;;  %3444 = vmatmul.mubr.msk.f32.gmra.mrb[10].mxu0 %vm92_vm1, %v4348_v13 }
  0x3f   :  { %3451 = vmatmul.mubr.msk.f32.gmra.mrb[10].mxu1 %vm92_vm1, %v4348_v13  ;;  %429 = vmatprep.mubr.f32.mxu0 %v6470_v0 }
  0x40   :  { %542 = vmatprep.mubr.f32.mxu1 %v6470_v0 }
  0x42   :  { %3445 = vmatmul.mubr.msk.f32.gmra.mrb[12].mxu0 %vm92_vm1, %v4366_v16 }
  0x43   :  { %3452 = vmatmul.mubr.msk.f32.gmra.mrb[12].mxu1 %vm92_vm1, %v4366_v16  ;;  %435 = vmatprep.mubr.f32.mxu0 %v6470_v0 }
  0x44   :  { %548 = vmatprep.mubr.f32.mxu1 %v6470_v0 }
  0x46   :  { %3446 = vmatmul.mubr.msk.f32.gmra.mrb[14].mxu0 %vm92_vm1, %v4381_v19 }
  0x47   :  { %3453 = vmatmul.mubr.msk.f32.gmra.mrb[14].mxu1 %vm92_vm1, %v4381_v19  ;;  %652 = vmatprep.mubr.f32.mxu0 %v6470_v0 }
  0x48   :  { %808 = vmatprep.mubr.f32.mxu1 %v6470_v0 }
  0x4a   :  { %3465 = vmatmul.mubr.msk.f32.vlgmr.msra.gmra.mrb[16].mxu0 %vm92_vm1, %v4330_v7 }
  0x4b   :  { %658 = vmatprep.mubr.f32.mxu0 %v6470_v0  ;;  %3523 = vmatpush1.msk.msra.mxu0 %vm105_vm0, %v3521_v20 }
  0x4c   :  { %3552 = vmatprep.subr.msk.mxu0 %vm105_vm0, %v1200_v27 }
  0x4e   :  { %3466 = vmatmul.mubr.msk.f32.gmra.mrb[18].mxu0 %vm92_vm1, %v4348_v13 }
  0x4f   :  { %664 = vmatprep.mubr.f32.mxu0 %v6470_v0 }
  0x52   :  { %3467 = vmatmul.mubr.msk.f32.gmra.mrb[20].mxu0 %vm92_vm1, %v4366_v16 }
  0x53   :  { %670 = vmatprep.mubr.f32.mxu0 %v6470_v0 }
  0x56   :  { %3468 = vmatmul.mubr.msk.f32.gmra.mrb[22].mxu0 %vm92_vm1, %v4381_v19 }
  0x57   :  { %1025 = vmatprep.mubr.f32.mxu0 %v6470_v0 }
  0x5a   :  { %3524 = vmatmul.mubr.msk.f32.vlgmr.msra.gmra.mrb[24].mxu0 %vm92_vm1, %v4330_v7 }
  0x5b   :  { %1031 = vmatprep.mubr.f32.mxu0 %v6470_v0  ;;  %3553 = vmatpush1.msk.msra.mxu0 %vm105_vm0, %v3551_v26 }
  0x5c   :  { %3582 = vmatprep.subr.msk.mxu0 %vm105_vm0, %v1436_v29 }
  0x5e   :  { %3525 = vmatmul.mubr.msk.f32.gmra.mrb[26].mxu0 %vm92_vm1, %v4348_v13 }
  0x5f   :  { %1037 = vmatprep.mubr.f32.mxu0 %v6470_v0 }
  0x62   :  { %3526 = vmatmul.mubr.msk.f32.gmra.mrb[28].mxu0 %vm92_vm1, %v4366_v16 }
  0x63   :  { %1043 = vmatprep.mubr.f32.mxu0 %v6470_v0 }
  0x66   :  { %3527 = vmatmul.mubr.msk.f32.gmra.mrb[30].mxu0 %vm92_vm1, %v4381_v19 }
  0x67   :  { %1269 = vmatprep.mubr.f32.mxu0 %v6470_v0 }
  0x6a   :  { %3554 = vmatmul.mubr.msk.f32.vlgmr.msra.gmra.mrb[32].mxu0 %vm92_vm1, %v4330_v7 }
  0x6b   :  { %1275 = vmatprep.mubr.f32.mxu0 %v6470_v0  ;;  %3583 = vmatpush1.msk.msra.mxu0 %vm105_vm0, %v3581_v28 }
  0x6c   :  { %3657 = vmatprep.subr.msk.mxu0 %vm105_vm0, %v1775_v31 }
  0x6e   :  { %3555 = vmatmul.mubr.msk.f32.gmra.mrb[34].mxu0 %vm92_vm1, %v4348_v13 }
  0x6f   :  { %1281 = vmatprep.mubr.f32.mxu0 %v6470_v0 }
  0x72   :  { %3556 = vmatmul.mubr.msk.f32.gmra.mrb[36].mxu0 %vm92_vm1, %v4366_v16 }
  0x73   :  { %1287 = vmatprep.mubr.f32.mxu0 %v6470_v0 }
  0x76   :  { %3557 = vmatmul.mubr.msk.f32.gmra.mrb[38].mxu0 %vm92_vm1, %v4381_v19 }
  0x77   :  { %1505 = vmatprep.mubr.f32.mxu0 %v6470_v0 }
  0x7a   :  { %3584 = vmatmul.mubr.msk.f32.vlgmr.msra.gmra.mrb[40].mxu0 %vm92_vm1, %v4330_v7 }
  0x7b   :  { %1511 = vmatprep.mubr.f32.mxu0 %v6470_v0  ;;  %3658 = vmatpush1.msk.msra.mxu0 %vm105_vm0, %v3656_v30 }
  0x7c   :  { %3687 = vmatprep.subr.msk.mxu0 %vm105_vm0, %v2019_v33 }
  0x7e   :  { %3585 = vmatmul.mubr.msk.f32.gmra.mrb[42].mxu0 %vm92_vm1, %v4348_v13 }
  0x7f   :  { %1517 = vmatprep.mubr.f32.mxu0 %v6470_v0 }
  0x82   :  { %3586 = vmatmul.mubr.msk.f32.gmra.mrb[44].mxu0 %vm92_vm1, %v4366_v16 }
  0x83   :  { %1523 = vmatprep.mubr.f32.mxu0 %v6470_v0 }
  0x86   :  { %3587 = vmatmul.mubr.msk.f32.gmra.mrb[46].mxu0 %vm92_vm1, %v4381_v19 }
  0x87   :  { %1844 = vmatprep.mubr.f32.mxu0 %v6470_v0 }
  0x8a   :  { %3659 = vmatmul.mubr.msk.f32.vlgmr.msra.gmra.mrb[48].mxu0 %vm92_vm1, %v4330_v7 }
  0x8b   :  { %1850 = vmatprep.mubr.f32.mxu0 %v6470_v0  ;;  %3688 = vmatpush1.msk.msra.mxu0 %vm105_vm0, %v3686_v32 }
  0x8c   :  { %3717 = vmatprep.subr.msk.mxu0 %vm105_vm0, %v2255_v35 }
  0x8e   :  { %3660 = vmatmul.mubr.msk.f32.gmra.mrb[50].mxu0 %vm92_vm1, %v4348_v13 }
  0x8f   :  { %1856 = vmatprep.mubr.f32.mxu0 %v6470_v0 }
  0x92   :  { %3661 = vmatmul.mubr.msk.f32.gmra.mrb[52].mxu0 %vm92_vm1, %v4366_v16 }
  0x93   :  { %1862 = vmatprep.mubr.f32.mxu0 %v6470_v0 }
  0x96   :  { %3662 = vmatmul.mubr.msk.f32.gmra.mrb[54].mxu0 %vm92_vm1, %v4381_v19 }
  0x97   :  { %2088 = vmatprep.mubr.f32.mxu0 %v6470_v0 }
  0x9a   :  { %3689 = vmatmul.mubr.msk.f32.vlgmr.msra.gmra.mrb[56].mxu0 %vm92_vm1, %v4330_v7 }
  0x9b   :  { %2094 = vmatprep.mubr.f32.mxu0 %v6470_v0  ;;  %3718 = vmatpush1.msk.msra.mxu0 %vm105_vm0, %v3716_v34 }
  0x9c   :  { %3792 = vmatprep.subr.msk.mxu0 %vm105_vm0, %v2594_v37 }
  0x9e   :  { %3690 = vmatmul.mubr.msk.f32.gmra.mrb[58].mxu0 %vm92_vm1, %v4348_v13 }
  0x9f   :  { %2100 = vmatprep.mubr.f32.mxu0 %v6470_v0 }
  0xa2   :  { %3691 = vmatmul.mubr.msk.f32.gmra.mrb[60].mxu0 %vm92_vm1, %v4366_v16 }
  0xa3   :  { %2106 = vmatprep.mubr.f32.mxu0 %v6470_v0 }
  0xa6   :  { %3692 = vmatmul.mubr.msk.f32.gmra.mrb[62].mxu0 %vm92_vm1, %v4381_v19 }
  0xa7   :  { %2324 = vmatprep.mubr.f32.mxu0 %v6470_v0 }
  0xaa   :  { %3719 = vmatmul.mubr.msk.f32.vlgmr.msra.gmra.mrb[64].mxu0 %vm92_vm1, %v4330_v7 }
  0xab   :  { %2330 = vmatprep.mubr.f32.mxu0 %v6470_v0  ;;  %3793 = vmatpush1.msk.msra.mxu0 %vm105_vm0, %v3791_v36 }
  0xac   :  { %3822 = vmatprep.subr.msk.mxu0 %vm105_vm0, %v2838_v39 }
  0xae   :  { %3720 = vmatmul.mubr.msk.f32.gmra.mrb[66].mxu0 %vm92_vm1, %v4348_v13 }
  0xaf   :  { %2336 = vmatprep.mubr.f32.mxu0 %v6470_v0 }
  0xb0   :  { %v4590_v42 = vpop.permute.xlu0 %72  ;;  %v4598_v54 = vpop.permute.xlu1 %82 }
  0xb2   :  { %3721 = vmatmul.mubr.msk.f32.gmra.mrb[68].mxu0 %vm92_vm1, %v4366_v16 }
  0xb3   :  { %2342 = vmatprep.mubr.f32.mxu0 %v6470_v0 }
  0xb4   :  { %v4596_v51 = vpop.permute.xlu0 %77  ;;  %v4632_v22 = vpop.permute.xlu1 %87 }
  0xb6   :  { %3722 = vmatmul.mubr.msk.f32.gmra.mrb[70].mxu0 %vm92_vm1, %v4381_v19 }
  0xb7   :  { %2663 = vmatprep.mubr.f32.mxu0 %v6470_v0 }
  0xba   :  { %3794 = vmatmul.mubr.msk.f32.vlgmr.msra.gmra.mrb[72].mxu0 %vm92_vm1, %v4330_v7 }
  0xbb   :  { %2669 = vmatprep.mubr.f32.mxu0 %v6470_v0  ;;  %3823 = vmatpush1.msk.msra.mxu0 %vm105_vm0, %v3821_v38 }
  0xbc   :  { %3852 = vmatprep.subr.msk.mxu0 %vm105_vm0, %v3074_v41 }
  0xbe   :  { %3795 = vmatmul.mubr.msk.f32.gmra.mrb[74].mxu0 %vm92_vm1, %v4348_v13 }
  0xbf   :  { %2675 = vmatprep.mubr.f32.mxu0 %v6470_v0 }
  0xc2   :  { %3796 = vmatmul.mubr.msk.f32.gmra.mrb[76].mxu0 %vm92_vm1, %v4366_v16 }
  0xc3   :  { %2681 = vmatprep.mubr.f32.mxu0 %v6470_v0 }
  0xc6   :  { %3797 = vmatmul.mubr.msk.f32.gmra.mrb[78].mxu0 %vm92_vm1, %v4381_v19 }
  0xc7   :  { %2907 = vmatprep.mubr.f32.mxu0 %v6470_v0 }
  0xca   :  { %3824 = vmatmul.mubr.msk.f32.vlgmr.msra.gmra.mrb[80].mxu0 %vm92_vm1, %v4330_v7 }
  0xcb   :  { %2913 = vmatprep.mubr.f32.mxu0 %v6470_v0  ;;  %3853 = vmatpush1.msk.msra.mxu0 %vm105_vm0, %v3851_v40 }
  0xce   :  { %3825 = vmatmul.mubr.msk.f32.gmra.mrb[82].mxu0 %vm92_vm1, %v4348_v13 }
  0xcf   :  { %2919 = vmatprep.mubr.f32.mxu0 %v6470_v0 }
  0xd2   :  { %3826 = vmatmul.mubr.msk.f32.gmra.mrb[84].mxu0 %vm92_vm1, %v4366_v16 }
  0xd3   :  { %2925 = vmatprep.mubr.f32.mxu0 %v6470_v0 }
  0xd6   :  { %3827 = vmatmul.mubr.msk.f32.gmra.mrb[86].mxu0 %vm92_vm1, %v4381_v19 }
  0xd7   :  { %3143 = vmatprep.mubr.f32.mxu0 %v6470_v0 }
  0xda   :  { %3854 = vmatmul.mubr.msk.f32.vlgmr.msra.gmra.mrb[88].mxu0 %vm92_vm1, %v4330_v7 }
  0xdb   :  { %3149 = vmatprep.mubr.f32.mxu0 %v6470_v0 }
  0xde   :  { %3855 = vmatmul.mubr.msk.f32.gmra.mrb[90].mxu0 %vm92_vm1, %v4348_v13 }
  0xdf   :  { %3155 = vmatprep.mubr.f32.mxu0 %v6470_v0 }
  0xe2   :  { %3856 = vmatmul.mubr.msk.f32.gmra.mrb[92].mxu0 %vm92_vm1, %v4366_v16 }
  0xe3   :  { %3161 = vmatprep.mubr.f32.mxu0 %v6470_v0 }
  0xe6   :  { %3857 = vmatmul.mubr.msk.f32.gmra.mrb[94].mxu0 %vm92_vm1, %v4381_v19 }
  0xfd   :  { %v176_v43 = vpop.f32.mrb[0].mxu0 }
  0xfe   :  { %v289_v44 = vpop.f32.mrb[0].mxu1  ;;  %v177_v45 = vadd.f32 %v176_v43, %v4590_v42  ;;  %v178_v47 = vpop.f32.mrb[1].mxu0 }
  0xff   :  { %v290_v46 = vadd.f32 %v289_v44, %v4590_v42  ;;  %v291_v48 = vpop.f32.mrb[1].mxu1  ;;  %v179_v49 = vadd.f32 %v178_v47, %v4590_v42 }
 0x100   :  { %v292_v50 = vadd.f32 %v291_v48, %v4590_v42  ;;  %v199_v52 = vmax.f32 %v177_v45, 0.0 }
 0x101   :  { %v312_v53 = vmax.f32 %v290_v46, 0.0  ;;  %v200_v55 = vmax.f32 %v179_v49, 0.0  ;;  %v182_v57 = vpop.f32.mrb[2].mxu0 }
 0x102   :  { %v313_v56 = vmax.f32 %v292_v50, 0.0  ;;  %v295_v58 = vpop.f32.mrb[2].mxu1  ;;  %207 = vst [vmem:[%s6414_s6] sm:$0xff] %v199_v52  ;;  %v183_v60 = vadd.f32 %v182_v57, %v4596_v51  ;;  %v184_v62 = vpop.f32.mrb[3].mxu0 }
 0x103   :  { %3433 = vst [vmem:[%s6414_s6 + $0x40] sm:$0xff] %v312_v53  ;;  %v329_v59 = vadd.f32 %v312_v53, %v199_v52  ;;  %v296_v61 = vadd.f32 %v295_v58, %v4596_v51  ;;  %v297_v63 = vpop.f32.mrb[3].mxu1  ;;  %208 = vst [vmem:[%s6414_s6 + $0x8] sm:$0xff] %v200_v55  ;;  %v185_v2 = vadd.f32 %v184_v62, %v4596_v51 }
 0x104   :  { %3434 = vst [vmem:[%s6414_s6 + $0x48] sm:$0xff] %v313_v56  ;;  %v330_v1 = vadd.f32 %v313_v56, %v200_v55  ;;  %v298_v3 = vadd.f32 %v297_v63, %v4596_v51  ;;  %v201_v4 = vmax.f32 %v183_v60, 0.0 }
 0x105   :  { %v314_v5 = vmax.f32 %v296_v61, 0.0  ;;  %v202_v6 = vmax.f32 %v185_v2, 0.0  ;;  %v188_v9 = vpop.f32.mrb[4].mxu0  ;;  %v338_v23 = vmul.f32 0.5, %v329_v59 }
 0x106   :  { %v315_v8 = vmax.f32 %v298_v3, 0.0  ;;  %v301_v10 = vpop.f32.mrb[4].mxu1  ;;  %209 = vst [vmem:[%s6414_s6 + $0x10] sm:$0xff] %v201_v4  ;;  %v189_v12 = vadd.f32 %v188_v9, %v4598_v54  ;;  %v190_v15 = vpop.f32.mrb[5].mxu0  ;;  %v339_v27 = vmul.f32 0.5, %v330_v1 }
 0x107   :  { %3435 = vst [vmem:[%s6414_s6 + $0x50] sm:$0xff] %v314_v5  ;;  %v331_v11 = vadd.f32 %v314_v5, %v201_v4  ;;  %v302_v14 = vadd.f32 %v301_v10, %v4598_v54  ;;  %v303_v17 = vpop.f32.mrb[5].mxu1  ;;  %210 = vst [vmem:[%s6414_s6 + $0x18] sm:$0xff] %v202_v6  ;;  %v191_v20 = vadd.f32 %v190_v15, %v4598_v54 }
 0x108   :  { %3436 = vst [vmem:[%s6414_s6 + $0x58] sm:$0xff] %v315_v8  ;;  %v332_v18 = vadd.f32 %v315_v8, %v202_v6  ;;  %v304_v21 = vadd.f32 %v303_v17, %v4598_v54  ;;  %v203_v25 = vmax.f32 %v189_v12, 0.0 }
 0x109   :  { %v340_v24 = vmul.f32 0.5, %v331_v11  ;;  %v316_v26 = vmax.f32 %v302_v14, 0.0  ;;  %v204_v29 = vmax.f32 %v191_v20, 0.0  ;;  %v194_v31 = vpop.f32.mrb[6].mxu0 }
 0x10a   :  { %v341_v28 = vmul.f32 0.5, %v332_v18  ;;  %v317_v30 = vmax.f32 %v304_v21, 0.0  ;;  %v307_v32 = vpop.f32.mrb[6].mxu1  ;;  %211 = vst [vmem:[%s6414_s6 + $0x20] sm:$0xff] %v203_v25  ;;  %v195_v35 = vadd.f32 %v194_v31, %v4632_v22  ;;  %v196_v37 = vpop.f32.mrb[7].mxu0 }
 0x10b   :  { %v3928_v33 = vpack.c.bf16 %v340_v24, %v338_v23  ;;  %3437 = vst [vmem:[%s6414_s6 + $0x60] sm:$0xff] %v316_v26  ;;  %v333_v34 = vadd.f32 %v316_v26, %v203_v25  ;;  %v308_v36 = vadd.f32 %v307_v32, %v4632_v22  ;;  %v309_v38 = vpop.f32.mrb[7].mxu1  ;;  %212 = vst [vmem:[%s6414_s6 + $0x28] sm:$0xff] %v204_v29 }
 0x10c   :  { %3438 = vst [vmem:[%s6414_s6 + $0x68] sm:$0xff] %v317_v30  ;;  %v334_v39 = vadd.f32 %v317_v30, %v204_v29  ;;  %v197_v40 = vadd.f32 %v196_v37, %v4632_v22  ;;  %v310_v41 = vadd.f32 %v309_v38, %v4632_v22  ;;  %v3926_v43 = vpack.c.bf16 %v341_v28, %v339_v27 }
 0x10d   :  { %v205_v44 = vmax.f32 %v195_v35, 0.0  ;;  %v318_v45 = vmax.f32 %v308_v36, 0.0  ;;  %v419_v48 = vpop.f32.mrb[8].mxu0  ;;  %v342_v56 = vmul.f32 0.5, %v333_v34 }
 0x10e   :  { %v206_v46 = vmax.f32 %v197_v40, 0.0  ;;  %v319_v47 = vmax.f32 %v310_v41, 0.0  ;;  %v532_v49 = vpop.f32.mrb[8].mxu1  ;;  %3927 = vmatprep.subr.bf16.mxu1 %v3926_v43  ;;  %v421_v52 = vpop.f32.mrb[9].mxu0  ;;  %v343_v58 = vmul.f32 0.5, %v334_v39  ;;  %v4663_v8 = vadd.f32 %v419_v48, %v4590_v42 }
 0x10f   :  { %213 = vst [vmem:[%s6414_s6 + $0x30] sm:$0xff] %v205_v44  ;;  %3439 = vst [vmem:[%s6414_s6 + $0x70] sm:$0xff] %v318_v45  ;;  %v335_v50 = vadd.f32 %v318_v45, %v205_v44  ;;  %v534_v53 = vpop.f32.mrb[9].mxu1  ;;  %3929 = vmatpush1.bf16.msra.mxu1 %v3928_v33  ;;  %v4666_v9 = vadd.f32 %v532_v49, %v4590_v42  ;;  %v4669_v10 = vadd.f32 %v421_v52, %v4590_v42 }
 0x110   :  { %214 = vst [vmem:[%s6414_s6 + $0x38] sm:$0xff] %v206_v46  ;;  %3440 = vst [vmem:[%s6414_s6 + $0x78] sm:$0xff] %v319_v47  ;;  %v336_v55 = vadd.f32 %v319_v47, %v206_v46  ;;  %v4672_v11 = vadd.f32 %v534_v53, %v4590_v42  ;;  %v6451_v24 = vmax.f32 %v4663_v8, 0.0 }
 0x111   :  { %v344_v57 = vmul.f32 0.5, %v335_v50  ;;  %v425_v60 = vpop.f32.mrb[10].mxu0  ;;  %v6450_v25 = vmax.f32 %v4666_v9, 0.0  ;;  %v6446_v26 = vmax.f32 %v4669_v10, 0.0 }
 0x112   :  { %v345_v59 = vmul.f32 0.5, %v336_v55  ;;  %v538_v61 = vpop.f32.mrb[10].mxu1  ;;  %v427_v63 = vpop.f32.mrb[11].mxu0  ;;  %v4675_v15 = vadd.f32 %v425_v60, %v4596_v51  ;;  %v6444_v27 = vmax.f32 %v4672_v11, 0.0 }
 0x113   :  { %v3932_v62 = vpack.c.bf16 %v344_v57, %v342_v56  ;;  %v540_v1 = vpop.f32.mrb[11].mxu1  ;;  %v4678_v17 = vadd.f32 %v538_v61, %v4596_v51  ;;  %v4681_v21 = vadd.f32 %v427_v63, %v4596_v51  ;;  %v572_v36 = vadd.f32 %v6450_v25, %v6451_v24 }
 0x114   :  { %v3930_v2 = vpack.c.bf16 %v345_v59, %v343_v58  ;;  %v4684_v23 = vadd.f32 %v540_v1, %v4596_v51  ;;  %v6437_v29 = vmax.f32 %v4675_v15, 0.0  ;;  %v573_v37 = vadd.f32 %v6444_v27, %v6446_v26 }
 0x115   :  { %v431_v3 = vpop.f32.mrb[12].mxu0  ;;  %v6435_v30 = vmax.f32 %v4678_v17, 0.0  ;;  %v6431_v33 = vmax.f32 %v4681_v21, 0.0 }
 0x116   :  { %v544_v4 = vpop.f32.mrb[12].mxu1  ;;  %3931 = vmatprep.subr.bf16.mxu1 %v3930_v2  ;;  %v433_v5 = vpop.f32.mrb[13].mxu0  ;;  %v6417_v34 = vmax.f32 %v4684_v23, 0.0  ;;  %v4709_v38 = vadd.f32 %v431_v3, %v4598_v54 }
 0x117   :  { %v546_v6 = vpop.f32.mrb[13].mxu1  ;;  %3933 = vmatpush1.bf16.msra.mxu1 %v3932_v62  ;;  %v4712_v39 = vadd.f32 %v544_v4, %v4598_v54  ;;  %v574_v43 = vadd.f32 %v6435_v30, %v6437_v29  ;;  %v4720_v44 = vadd.f32 %v433_v5, %v4598_v54 }
 0x118   :  { %v575_v48 = vadd.f32 %v6417_v34, %v6431_v33  ;;  %v4731_v49 = vadd.f32 %v546_v6, %v4598_v54  ;;  %v6429_v58 = vmax.f32 %v4709_v38, 0.0 }
 0x119   :  { %v437_v12 = vpop.f32.mrb[14].mxu0  ;;  %v6428_v59 = vmax.f32 %v4712_v39, 0.0  ;;  %v6419_v63 = vmax.f32 %v4720_v44, 0.0 }
 0x11a   :  { %v550_v14 = vpop.f32.mrb[14].mxu1  ;;  %v439_v18 = vpop.f32.mrb[15].mxu0  ;;  %v4734_v50 = vadd.f32 %v437_v12, %v4632_v22  ;;  %v6418_v5 = vmax.f32 %v4731_v49, 0.0 }
 0x11b   :  { %v552_v20 = vpop.f32.mrb[15].mxu1  ;;  %v4740_v53 = vadd.f32 %v550_v14, %v4632_v22  ;;  %v4743_v55 = vadd.f32 %v439_v18, %v4632_v22 }
 0x11c   :  { %v4746_v56 = vadd.f32 %v552_v20, %v4632_v22  ;;  %v6423_v6 = vmax.f32 %v4734_v50, 0.0 }
 0x11d   :  { %v654_v28 = vpop.f32.mrb[16].mxu0  ;;  %v6420_v18 = vmax.f32 %v4740_v53, 0.0  ;;  %v6422_v20 = vmax.f32 %v4743_v55, 0.0 }
 0x11e   :  { %v4693_v31 = vadd.f32 %v654_v28, %v4590_v42  ;;  %v656_v32 = vpop.f32.mrb[17].mxu0  ;;  %v6421_v28 = vmax.f32 %v4746_v56, 0.0 }
 0x11f   :  { %v4698_v35 = vadd.f32 %v656_v32, %v4590_v42 }
 0x120   :  { %v6447_v45 = vmax.f32 %v4693_v31, 0.0 }
 0x121   :  { %v6440_v40 = vmax.f32 %v4698_v35, 0.0  ;;  %v660_v41 = vpop.f32.mrb[18].mxu0 }
 0x122   :  { %v4724_v46 = vadd.f32 %v660_v41, %v4596_v51  ;;  %v662_v47 = vpop.f32.mrb[19].mxu0  ;;  %v694_v1 = vadd.f32 %v6447_v45, %v572_v36 }
 0x123   :  { %v4737_v52 = vadd.f32 %v662_v47, %v4596_v51  ;;  %v695_v60 = vadd.f32 %v6440_v40, %v573_v37 }
 0x124   :  { %v6433_v57 = vmax.f32 %v4724_v46, 0.0  ;;  %v703_v47 = vmul.f32 0.33333334, %v694_v1  ;;  %v576_v1 = vadd.f32 %v6428_v59, %v6429_v58  ;;  %v62_v59 = vld [vmem:[#allocation4 + $0x8] sm:$0xff] }
 0x125   :  { %v6416_v61 = vmax.f32 %v4737_v52, 0.0  ;;  %v666_v62 = vpop.f32.mrb[20].mxu0  ;;  %v704_v36 = vmul.f32 0.33333334, %v695_v60 }
 0x126   :  { %v696_v2 = vadd.f32 %v6433_v57, %v574_v43  ;;  %v4760_v3 = vadd.f32 %v666_v62, %v4598_v54  ;;  %v668_v4 = vpop.f32.mrb[21].mxu0 }
 0x127   :  { %v697_v12 = vadd.f32 %v6416_v61, %v575_v48  ;;  %v4767_v14 = vadd.f32 %v668_v4, %v4598_v54  ;;  %v577_v61 = vadd.f32 %v6418_v5, %v6419_v63 }
 0x128   :  { %v705_v32 = vmul.f32 0.33333334, %v696_v2  ;;  %v6427_v62 = vmax.f32 %v4760_v3, 0.0  ;;  %v578_v2 = vadd.f32 %v6420_v18, %v6423_v6 }
 0x129   :  { %v706_v37 = vmul.f32 0.33333334, %v697_v12  ;;  %v6426_v41 = vmax.f32 %v4767_v14, 0.0  ;;  %v672_v43 = vpop.f32.mrb[22].mxu0 }
 0x12a   :  { %v4775_v48 = vadd.f32 %v672_v43, %v4632_v22  ;;  %v674_v4 = vpop.f32.mrb[23].mxu0  ;;  %v3936_v12 = vpack.c.bf16 %v705_v32, %v703_v47  ;;  %v698_v63 = vadd.f32 %v6427_v62, %v576_v1  ;;  %v3536_v1 = vld [vmem:[%s6408_s0 + $0x18] sm:$0x77] }
 0x12b   :  { %v4782_v34 = vadd.f32 %v674_v4, %v4632_v22  ;;  %v3934_v60 = vpack.c.bf16 %v706_v37, %v704_v36  ;;  %v579_v4 = vadd.f32 %v6421_v28, %v6422_v20  ;;  %v699_v36 = vadd.f32 %v6426_v41, %v577_v61 }
 0x12c   :  { %v6424_v43 = vmax.f32 %v4775_v48, 0.0 }
 0x12d   :  { %v6425_v37 = vmax.f32 %v4782_v34, 0.0  ;;  %3935 = vmatprep.subr.bf16.mxu1 %v3934_v60  ;;  %v1027_v5 = vpop.f32.mrb[24].mxu0  ;;  %v708_v6 = vmul.f32 0.33333334, %v699_v36  ;;  %v1070_v36 = vcombine.high %v3536_v1, %v3536_v1 }
 0x12e   :  { %v700_v32 = vadd.f32 %v6424_v43, %v578_v2  ;;  %v4805_v47 = vadd.f32 %v1027_v5, %v4590_v42  ;;  %3937 = vmatpush1.bf16.msra.mxu1 %v3936_v12  ;;  %v1029_v18 = vpop.f32.mrb[25].mxu0  ;;  %v707_v12 = vmul.f32 0.33333334, %v698_v63 }
 0x12f   :  { %v701_v28 = vadd.f32 %v6425_v37, %v579_v4  ;;  %v4810_v61 = vadd.f32 %v1029_v18, %v4590_v42 }
 0x130   :  { %v709_v20 = vmul.f32 0.33333334, %v700_v32  ;;  %v6461_v60 = vmax.f32 %v4805_v47, 0.0 }
 0x131   :  { %v710_v2 = vmul.f32 0.33333334, %v701_v28  ;;  %v6458_v5 = vmax.f32 %v4810_v61, 0.0  ;;  %v1033_v43 = vpop.f32.mrb[26].mxu0 }
 0x132   :  { %3528 = vst [vmem:[%s6414_s6 + $0x80] sm:$0xff] %v6461_v60  ;;  %v4823_v18 = vadd.f32 %v1033_v43, %v4596_v51  ;;  %v1035_v4 = vpop.f32.mrb[27].mxu0  ;;  %v3940_v32 = vpack.c.bf16 %v709_v20, %v707_v12  ;;  %v4837_v43 = vld [vmem:[%s6409_s1 + $0x20] sm:$0x77] }
 0x133   :  { %3529 = vst [vmem:[%s6414_s6 + $0x88] sm:$0xff] %v6458_v5  ;;  %v4831_v28 = vadd.f32 %v1035_v4, %v4596_v51  ;;  %v3938_v63 = vpack.c.bf16 %v710_v2, %v708_v6  ;;  %v61_v2 = vld [vmem:[#allocation4] sm:$0xff]  ;;  %v1314_v4 = vcombine.high %v4837_v43, %v4837_v43 }
 0x134   :  { %v6455_v37 = vmax.f32 %v4823_v18, 0.0 }
 0x135   :  { %v6454_v41 = vmax.f32 %v4831_v28, 0.0  ;;  %3939 = vmatprep.subr.bf16.mxu1 %v3938_v63  ;;  %v1039_v62 = vpop.f32.mrb[28].mxu0 }
 0x136   :  { %3530 = vst [vmem:[%s6414_s6 + $0x90] sm:$0xff] %v6455_v37  ;;  %v4846_v6 = vadd.f32 %v1039_v62, %v4598_v54  ;;  %3941 = vmatpush1.bf16.msra.mxu1 %v3940_v32  ;;  %v1041_v20 = vpop.f32.mrb[29].mxu0 }
 0x137   :  { %3531 = vst [vmem:[%s6414_s6 + $0x98] sm:$0xff] %v6454_v41  ;;  %v4854_v12 = vadd.f32 %v1041_v20, %v4598_v54  ;;  %3537 = vmatprep.subr.msk.mxu1 %vm105_vm0, %v1070_v36 }
 0x138   :  { %v6439_v62 = vmax.f32 %v4846_v6, 0.0 }
 0x139   :  { %v6430_v63 = vmax.f32 %v4854_v12, 0.0  ;;  %3477 = vmatmul.mubr.msk.f32.vlgmr.msra.gmra.mrb[16].mxu1 %vm731_vm2, %v61_v2  ;;  %v1045_v32 = vpop.f32.mrb[30].mxu0 }
 0x13a   :  { %3532 = vst [vmem:[%s6414_s6 + $0xa0] sm:$0xff] %v6439_v62  ;;  %v4868_v20 = vadd.f32 %v1045_v32, %v4632_v22  ;;  %v1047_v36 = vpop.f32.mrb[31].mxu0  ;;  %3538 = vmatpush1.msk.msra.mxu1 %vm105_vm0, %v3536_v1  ;;  %814 = vmatprep.mubr.f32.mxu1 %v6470_v0 }
 0x13b   :  { %3533 = vst [vmem:[%s6414_s6 + $0xa8] sm:$0xff] %v6430_v63  ;;  %v4878_v2 = vadd.f32 %v1047_v36, %v4632_v22  ;;  %3567 = vmatprep.subr.msk.mxu1 %vm105_vm0, %v1314_v4  ;;  %v63_v4 = vld [vmem:[#allocation4 + $0x10] sm:$0xff] }
 0x13c   :  { %v6432_v32 = vmax.f32 %v4868_v20, 0.0 }
 0x13d   :  { %v6434_v58 = vmax.f32 %v4878_v2, 0.0  ;;  %3478 = vmatmul.mubr.msk.f32.gmra.mrb[18].mxu1 %vm731_vm2, %v62_v59  ;;  %v1271_v1 = vpop.f32.mrb[32].mxu0 }
 0x13e   :  { %3534 = vst [vmem:[%s6414_s6 + $0xb0] sm:$0xff] %v6432_v32  ;;  %v4890_v63 = vadd.f32 %v1271_v1, %v4590_v42  ;;  %v1273_v36 = vpop.f32.mrb[33].mxu0  ;;  %820 = vmatprep.mubr.f32.mxu1 %v6470_v0 }
 0x13f   :  { %3535 = vst [vmem:[%s6414_s6 + $0xb8] sm:$0xff] %v6434_v58  ;;  %v4899_v59 = vadd.f32 %v1273_v36, %v4590_v42  ;;  %v4913_v36 = vld [vmem:[#allocation4 + $0x18] sm:$0xff] }
 0x140   :  { %v6436_v33 = vmax.f32 %v4890_v63, 0.0  ;;  %6491 = vst [vmem:[#allocation8_spill] sm:$0xff] %v4913_v36 }
 0x141   :  { %v6438_v32 = vmax.f32 %v4899_v59, 0.0  ;;  %3479 = vmatmul.mubr.msk.f32.gmra.mrb[20].mxu1 %vm731_vm2, %v63_v4  ;;  %v1277_v1 = vpop.f32.mrb[34].mxu0 }
 0x142   :  { %3558 = vst [vmem:[%s6415_s7 + $0xc0] sm:$0xff] %v6436_v33  ;;  %v4910_v57 = vadd.f32 %v1277_v1, %v4596_v51  ;;  %v1279_v58 = vpop.f32.mrb[35].mxu0  ;;  %826 = vmatprep.mubr.f32.mxu1 %v6470_v0 }
 0x143   :  { %3559 = vst [vmem:[%s6415_s7 + $0xc8] sm:$0xff] %v6438_v32  ;;  %v4921_v4 = vadd.f32 %v1279_v58, %v4596_v51 }
 0x144   :  { %v6441_v30 = vmax.f32 %v4910_v57, 0.0 }
 0x145   :  { %v6442_v33 = vmax.f32 %v4921_v4, 0.0  ;;  %3480 = vmatmul.mubr.msk.f32.gmra.mrb[22].mxu1 %vm731_vm2, %v4913_v36  ;;  %v1283_v1 = vpop.f32.mrb[36].mxu0 }
 0x146   :  { %3560 = vst [vmem:[%s6415_s7 + $0xd0] sm:$0xff] %v6441_v30  ;;  %v4933_v29 = vadd.f32 %v1283_v1, %v4598_v54  ;;  %v1285_v32 = vpop.f32.mrb[37].mxu0  ;;  %1139 = vmatprep.mubr.f32.mxu1 %v6470_v0 }
 0x147   :  { %3561 = vst [vmem:[%s6415_s7 + $0xd8] sm:$0xff] %v6442_v33  ;;  %v4942_v58 = vadd.f32 %v1285_v32, %v4598_v54 }
 0x148   :  { %6492 = vst [vmem:[#allocation9_spill] sm:$0xff] %v4933_v29  ;;  %v6443_v62 = vmax.f32 %v4933_v29, 0.0 }
 0x149   :  { %6493 = vst [vmem:[#allocation10_spill] sm:$0xff] %v4942_v58  ;;  %v6445_v40 = vmax.f32 %v4942_v58, 0.0  ;;  %3539 = vmatmul.mubr.msk.f32.vlgmr.msra.gmra.mrb[24].mxu1 %vm92_vm1, %v4330_v7  ;;  %v1289_v1 = vpop.f32.mrb[38].mxu0  ;;  %v6512_v58 = vmax.f32 %v4663_v8, 0.0 }
 0x14a   :  { %3562 = vst [vmem:[%s6415_s7 + $0xe0] sm:$0xff] %v6443_v62  ;;  %v4954_v30 = vadd.f32 %v1289_v1, %v4632_v22  ;;  %v1291_v33 = vpop.f32.mrb[39].mxu0  ;;  %3568 = vmatpush1.msk.msra.mxu1 %vm105_vm0, %v4837_v43  ;;  %1145 = vmatprep.mubr.f32.mxu1 %v6470_v0 }
 0x14b   :  { %3563 = vst [vmem:[%s6415_s7 + $0xe8] sm:$0xff] %v6445_v40  ;;  %v4965_v32 = vadd.f32 %v1291_v33, %v4632_v22 }
 0x14c   :  { %6494 = vst [vmem:[#allocation11_spill] sm:$0xff] %v4954_v30  ;;  %v6448_v62 = vmax.f32 %v4954_v30, 0.0 }
 0x14d   :  { %6495 = vst [vmem:[#allocation12_spill] sm:$0xff] %v4965_v32  ;;  %v6449_v1 = vmax.f32 %v4965_v32, 0.0  ;;  %3540 = vmatmul.mubr.msk.f32.gmra.mrb[26].mxu1 %vm92_vm1, %v4348_v13  ;;  %v1507_v27 = vpop.f32.mrb[40].mxu0 }
 0x14e   :  { %3564 = vst [vmem:[%s6415_s7 + $0xf0] sm:$0xff] %v6448_v62  ;;  %v4977_v43 = vadd.f32 %v1507_v27, %v4590_v42  ;;  %v1509_v40 = vpop.f32.mrb[41].mxu0  ;;  %1151 = vmatprep.mubr.f32.mxu1 %v6470_v0 }
 0x14f   :  { %3565 = vst [vmem:[%s6415_s7 + $0xf8] sm:$0xff] %v6449_v1  ;;  %v4986_v33 = vadd.f32 %v1509_v40, %v4590_v42 }
 0x150   :  { %v6452_v26 = vmax.f32 %v4977_v43, 0.0 }
 0x151   :  { %v6453_v45 = vmax.f32 %v4986_v33, 0.0  ;;  %3541 = vmatmul.mubr.msk.f32.gmra.mrb[28].mxu1 %vm92_vm1, %v4366_v16  ;;  %v1513_v27 = vpop.f32.mrb[42].mxu0 }
 0x152   :  { %3588 = vst [vmem:[%s6415_s7 + $0x140] sm:$0xff] %v6452_v26  ;;  %v4998_v62 = vadd.f32 %v1513_v27, %v4596_v51  ;;  %v1515_v1 = vpop.f32.mrb[43].mxu0  ;;  %1157 = vmatprep.mubr.f32.mxu1 %v6470_v0 }
 0x153   :  { %3589 = vst [vmem:[%s6415_s7 + $0x148] sm:$0xff] %v6453_v45  ;;  %v5007_v40 = vadd.f32 %v1515_v1, %v4596_v51 }
 0x154   :  { %v6456_v25 = vmax.f32 %v4998_v62, 0.0 }
 0x155   :  { %v6457_v24 = vmax.f32 %v5007_v40, 0.0  ;;  %3542 = vmatmul.mubr.msk.f32.gmra.mrb[30].mxu1 %vm92_vm1, %v4381_v19  ;;  %v1519_v27 = vpop.f32.mrb[44].mxu0 }
 0x156   :  { %3590 = vst [vmem:[%s6415_s7 + $0x150] sm:$0xff] %v6456_v25  ;;  %v5019_v26 = vadd.f32 %v1519_v27, %v4598_v54  ;;  %v1521_v45 = vpop.f32.mrb[45].mxu0  ;;  %1383 = vmatprep.mubr.f32.mxu1 %v6470_v0 }
 0x157   :  { %3591 = vst [vmem:[%s6415_s7 + $0x158] sm:$0xff] %v6457_v24  ;;  %v5028_v1 = vadd.f32 %v1521_v45, %v4598_v54 }
 0x158   :  { %6496 = vst [vmem:[#allocation13_spill] sm:$0xff] %v5019_v26  ;;  %v6459_v41 = vmax.f32 %v5019_v26, 0.0 }
 0x159   :  { %6497 = vst [vmem:[#allocation14_spill] sm:$0xff] %v5028_v1  ;;  %v6460_v37 = vmax.f32 %v5028_v1, 0.0  ;;  %3569 = vmatmul.mubr.msk.f32.vlgmr.msra.gmra.mrb[32].mxu1 %vm92_vm1, %v4330_v7  ;;  %v1525_v27 = vpop.f32.mrb[46].mxu0 }
 0x15a   :  { %3592 = vst [vmem:[%s6415_s7 + $0x160] sm:$0xff] %v6459_v41  ;;  %v5040_v25 = vadd.f32 %v1525_v27, %v4632_v22  ;;  %v1527_v24 = vpop.f32.mrb[47].mxu0  ;;  %1389 = vmatprep.mubr.f32.mxu1 %v6470_v0 }
 0x15b   :  { %3593 = vst [vmem:[%s6415_s7 + $0x168] sm:$0xff] %v6460_v37  ;;  %v5049_v7 = vadd.f32 %v1527_v24, %v4632_v22 }
 0x15c   :  { %6498 = vst [vmem:[#allocation15_spill] sm:$0xff] %v5040_v25  ;;  %v6462_v45 = vmax.f32 %v5040_v25, 0.0 }
 0x15d   :  { %6499 = vst [vmem:[#allocation16_spill] sm:$0xff] %v5049_v7  ;;  %v6463_v5 = vmax.f32 %v5049_v7, 0.0  ;;  %3570 = vmatmul.mubr.msk.f32.gmra.mrb[34].mxu1 %vm92_vm1, %v4348_v13  ;;  %v1846_v27 = vpop.f32.mrb[48].mxu0 }
 0x15e   :  { %3594 = vst [vmem:[%s6415_s7 + $0x170] sm:$0xff] %v6462_v45  ;;  %v5061_v41 = vadd.f32 %v1846_v27, %v4590_v42  ;;  %v1848_v37 = vpop.f32.mrb[49].mxu0  ;;  %1395 = vmatprep.mubr.f32.mxu1 %v6470_v0 }
 0x15f   :  { %3595 = vst [vmem:[%s6415_s7 + $0x178] sm:$0xff] %v6463_v5  ;;  %v5070_v13 = vadd.f32 %v1848_v37, %v4590_v42 }
 0x160   :  { %6500 = vst [vmem:[#allocation17_spill] sm:$0xff] %v5061_v41  ;;  %v6465_v24 = vmax.f32 %v5061_v41, 0.0 }
 0x161   :  { %6501 = vst [vmem:[#allocation18_spill] sm:$0xff] %v5070_v13  ;;  %v6466_v60 = vmax.f32 %v5070_v13, 0.0  ;;  %3571 = vmatmul.mubr.msk.f32.gmra.mrb[36].mxu1 %vm92_vm1, %v4366_v16  ;;  %v1852_v27 = vpop.f32.mrb[50].mxu0 }
 0x162   :  { %3663 = vst [vmem:[%s6414_s6 + $0x100] sm:$0xff] %v6465_v24  ;;  %v5082_v45 = vadd.f32 %v1852_v27, %v4596_v51  ;;  %v1854_v5 = vpop.f32.mrb[51].mxu0  ;;  %1401 = vmatprep.mubr.f32.mxu1 %v6470_v0 }
 0x163   :  { %3664 = vst [vmem:[%s6414_s6 + $0x108] sm:$0xff] %v6466_v60  ;;  %v5091_v16 = vadd.f32 %v1854_v5, %v4596_v51 }
 0x164   :  { %6502 = vst [vmem:[#allocation19_spill] sm:$0xff] %v5082_v45  ;;  %v6469_v37 = vmax.f32 %v5082_v45, 0.0 }
 0x165   :  { %6503 = vst [vmem:[#allocation20_spill] sm:$0xff] %v5091_v16  ;;  %v6473_v41 = vmax.f32 %v5091_v16, 0.0  ;;  %3572 = vmatmul.mubr.msk.f32.gmra.mrb[38].mxu1 %vm92_vm1, %v4381_v19  ;;  %v1858_v27 = vpop.f32.mrb[52].mxu0 }
 0x166   :  { %3665 = vst [vmem:[%s6414_s6 + $0x110] sm:$0xff] %v6469_v37  ;;  %v1859_v24 = vadd.f32 %v1858_v27, %v4598_v54  ;;  %v1860_v60 = vpop.f32.mrb[53].mxu0  ;;  %1627 = vmatprep.mubr.f32.mxu1 %v6470_v0 }
 0x167   :  { %3666 = vst [vmem:[%s6414_s6 + $0x118] sm:$0xff] %v6473_v41  ;;  %v1861_v19 = vadd.f32 %v1860_v60, %v4598_v54 }
 0x168   :  { %v1873_v5 = vmax.f32 %v1859_v24, 0.0 }
 0x169   :  { %v1874_v13 = vmax.f32 %v1861_v19, 0.0  ;;  %v1864_v45 = vpop.f32.mrb[54].mxu0 }
 0x16a   :  { %3667 = vst [vmem:[%s6414_s6 + $0x120] sm:$0xff] %v1873_v5  ;;  %v1865_v27 = vadd.f32 %v1864_v45, %v4632_v22  ;;  %v1866_v37 = vpop.f32.mrb[55].mxu0 }
 0x16b   :  { %3668 = vst [vmem:[%s6414_s6 + $0x128] sm:$0xff] %v1874_v13  ;;  %v1867_v0 = vadd.f32 %v1866_v37, %v4632_v22 }
 0x16c   :  { %v1875_v16 = vmax.f32 %v1865_v27, 0.0 }
 0x16d   :  { %v1876_v41 = vmax.f32 %v1867_v0, 0.0  ;;  %v2090_v36 = vpop.f32.mrb[56].mxu0 }
 0x16e   :  { %3669 = vst [vmem:[%s6414_s6 + $0x130] sm:$0xff] %v1875_v16  ;;  %v2091_v60 = vadd.f32 %v2090_v36, %v4590_v42  ;;  %v2092_v24 = vpop.f32.mrb[57].mxu0 }
 0x16f   :  { %3670 = vst [vmem:[%s6414_s6 + $0x138] sm:$0xff] %v1876_v41  ;;  %v2093_v45 = vadd.f32 %v2092_v24, %v4590_v42 }
 0x170   :  { %v2113_v19 = vmax.f32 %v2091_v60, 0.0 }
 0x171   :  { %v2114_v13 = vmax.f32 %v2093_v45, 0.0  ;;  %v2096_v5 = vpop.f32.mrb[58].mxu0 }
 0x172   :  { %3693 = vst [vmem:[%s6415_s7 + $0x180] sm:$0xff] %v2113_v19  ;;  %v2097_v0 = vadd.f32 %v2096_v5, %v4596_v51  ;;  %v2098_v37 = vpop.f32.mrb[59].mxu0 }
 0x173   :  { %3694 = vst [vmem:[%s6415_s7 + $0x188] sm:$0xff] %v2114_v13  ;;  %v2099_v36 = vadd.f32 %v2098_v37, %v4596_v51 }
 0x174   :  { %v2115_v16 = vmax.f32 %v2097_v0, 0.0 }
 0x175   :  { %v2116_v41 = vmax.f32 %v2099_v36, 0.0  ;;  %v2102_v27 = vpop.f32.mrb[60].mxu0 }
 0x176   :  { %3695 = vst [vmem:[%s6415_s7 + $0x190] sm:$0xff] %v2115_v16  ;;  %v2103_v60 = vadd.f32 %v2102_v27, %v4598_v54  ;;  %v2104_v24 = vpop.f32.mrb[61].mxu0 }
 0x177   :  { %3696 = vst [vmem:[%s6415_s7 + $0x198] sm:$0xff] %v2116_v41  ;;  %v2105_v45 = vadd.f32 %v2104_v24, %v4598_v54 }
 0x178   :  { %v2117_v19 = vmax.f32 %v2103_v60, 0.0 }
 0x179   :  { %v2118_v13 = vmax.f32 %v2105_v45, 0.0  ;;  %v2108_v5 = vpop.f32.mrb[62].mxu0 }
 0x17a   :  { %3697 = vst [vmem:[%s6415_s7 + $0x1a0] sm:$0xff] %v2117_v19  ;;  %v2109_v0 = vadd.f32 %v2108_v5, %v4632_v22  ;;  %v2110_v37 = vpop.f32.mrb[63].mxu0 }
 0x17b   :  { %3698 = vst [vmem:[%s6415_s7 + $0x1a8] sm:$0xff] %v2118_v13  ;;  %v2111_v36 = vadd.f32 %v2110_v37, %v4632_v22 }
 0x17c   :  { %v2119_v16 = vmax.f32 %v2109_v0, 0.0 }
 0x17d   :  { %v2120_v41 = vmax.f32 %v2111_v36, 0.0  ;;  %v2326_v27 = vpop.f32.mrb[64].mxu0 }
 0x17e   :  { %3699 = vst [vmem:[%s6415_s7 + $0x1b0] sm:$0xff] %v2119_v16  ;;  %v2327_v60 = vadd.f32 %v2326_v27, %v4590_v42  ;;  %v2328_v24 = vpop.f32.mrb[65].mxu0 }
 0x17f   :  { %3700 = vst [vmem:[%s6415_s7 + $0x1b8] sm:$0xff] %v2120_v41  ;;  %v2329_v45 = vadd.f32 %v2328_v24, %v4590_v42 }
 0x180   :  { %v2349_v19 = vmax.f32 %v2327_v60, 0.0 }
 0x181   :  { %v2350_v13 = vmax.f32 %v2329_v45, 0.0  ;;  %v2332_v5 = vpop.f32.mrb[66].mxu0 }
 0x182   :  { %3723 = vst [vmem:[%s6415_s7 + $0x200] sm:$0xff] %v2349_v19  ;;  %v2333_v0 = vadd.f32 %v2332_v5, %v4596_v51  ;;  %v2334_v37 = vpop.f32.mrb[67].mxu0 }
 0x183   :  { %3724 = vst [vmem:[%s6415_s7 + $0x208] sm:$0xff] %v2350_v13  ;;  %v2335_v36 = vadd.f32 %v2334_v37, %v4596_v51 }
 0x184   :  { %v2351_v16 = vmax.f32 %v2333_v0, 0.0 }
 0x185   :  { %v2352_v41 = vmax.f32 %v2335_v36, 0.0  ;;  %v2338_v27 = vpop.f32.mrb[68].mxu0 }
 0x186   :  { %3725 = vst [vmem:[%s6415_s7 + $0x210] sm:$0xff] %v2351_v16  ;;  %v2339_v60 = vadd.f32 %v2338_v27, %v4598_v54  ;;  %v2340_v24 = vpop.f32.mrb[69].mxu0 }
 0x187   :  { %3726 = vst [vmem:[%s6415_s7 + $0x218] sm:$0xff] %v2352_v41  ;;  %v2341_v45 = vadd.f32 %v2340_v24, %v4598_v54 }
 0x188   :  { %v2353_v19 = vmax.f32 %v2339_v60, 0.0 }
 0x189   :  { %v2354_v13 = vmax.f32 %v2341_v45, 0.0  ;;  %v2344_v5 = vpop.f32.mrb[70].mxu0 }
 0x18a   :  { %3727 = vst [vmem:[%s6415_s7 + $0x220] sm:$0xff] %v2353_v19  ;;  %v2345_v0 = vadd.f32 %v2344_v5, %v4632_v22  ;;  %v2346_v37 = vpop.f32.mrb[71].mxu0 }
 0x18b   :  { %3728 = vst [vmem:[%s6415_s7 + $0x228] sm:$0xff] %v2354_v13  ;;  %v2347_v36 = vadd.f32 %v2346_v37, %v4632_v22 }
 0x18c   :  { %v2355_v16 = vmax.f32 %v2345_v0, 0.0 }
 0x18d   :  { %v2356_v41 = vmax.f32 %v2347_v36, 0.0  ;;  %v2665_v27 = vpop.f32.mrb[72].mxu0 }
 0x18e   :  { %3729 = vst [vmem:[%s6415_s7 + $0x230] sm:$0xff] %v2355_v16  ;;  %v2666_v60 = vadd.f32 %v2665_v27, %v4590_v42  ;;  %v2667_v24 = vpop.f32.mrb[73].mxu0 }
 0x18f   :  { %3730 = vst [vmem:[%s6415_s7 + $0x238] sm:$0xff] %v2356_v41  ;;  %v2668_v45 = vadd.f32 %v2667_v24, %v4590_v42 }
 0x190   :  { %v2688_v19 = vmax.f32 %v2666_v60, 0.0 }
 0x191   :  { %v2689_v13 = vmax.f32 %v2668_v45, 0.0  ;;  %v2671_v5 = vpop.f32.mrb[74].mxu0 }
 0x192   :  { %3798 = vst [vmem:[%s6414_s6 + $0x180] sm:$0xff] %v2688_v19  ;;  %v2672_v0 = vadd.f32 %v2671_v5, %v4596_v51  ;;  %v2673_v37 = vpop.f32.mrb[75].mxu0 }
 0x193   :  { %3799 = vst [vmem:[%s6414_s6 + $0x188] sm:$0xff] %v2689_v13  ;;  %v2674_v36 = vadd.f32 %v2673_v37, %v4596_v51 }
 0x194   :  { %v2690_v16 = vmax.f32 %v2672_v0, 0.0 }
 0x195   :  { %v2691_v41 = vmax.f32 %v2674_v36, 0.0  ;;  %v2677_v27 = vpop.f32.mrb[76].mxu0 }
 0x196   :  { %3800 = vst [vmem:[%s6414_s6 + $0x190] sm:$0xff] %v2690_v16  ;;  %v2678_v60 = vadd.f32 %v2677_v27, %v4598_v54  ;;  %v2679_v24 = vpop.f32.mrb[77].mxu0 }
 0x197   :  { %3801 = vst [vmem:[%s6414_s6 + $0x198] sm:$0xff] %v2691_v41  ;;  %v2680_v45 = vadd.f32 %v2679_v24, %v4598_v54 }
 0x198   :  { %v2692_v19 = vmax.f32 %v2678_v60, 0.0 }
 0x199   :  { %v2693_v13 = vmax.f32 %v2680_v45, 0.0  ;;  %v2683_v5 = vpop.f32.mrb[78].mxu0 }
 0x19a   :  { %3802 = vst [vmem:[%s6414_s6 + $0x1a0] sm:$0xff] %v2692_v19  ;;  %v2684_v0 = vadd.f32 %v2683_v5, %v4632_v22  ;;  %v2685_v37 = vpop.f32.mrb[79].mxu0 }
 0x19b   :  { %3803 = vst [vmem:[%s6414_s6 + $0x1a8] sm:$0xff] %v2693_v13  ;;  %v2686_v36 = vadd.f32 %v2685_v37, %v4632_v22 }
 0x19c   :  { %v2694_v16 = vmax.f32 %v2684_v0, 0.0 }
 0x19d   :  { %v2695_v41 = vmax.f32 %v2686_v36, 0.0  ;;  %v2909_v27 = vpop.f32.mrb[80].mxu0 }
 0x19e   :  { %3804 = vst [vmem:[%s6414_s6 + $0x1b0] sm:$0xff] %v2694_v16  ;;  %v2910_v60 = vadd.f32 %v2909_v27, %v4590_v42  ;;  %v2911_v24 = vpop.f32.mrb[81].mxu0 }
 0x19f   :  { %3805 = vst [vmem:[%s6414_s6 + $0x1b8] sm:$0xff] %v2695_v41  ;;  %v2912_v45 = vadd.f32 %v2911_v24, %v4590_v42 }
 0x1a0   :  { %v2932_v19 = vmax.f32 %v2910_v60, 0.0 }
 0x1a1   :  { %v2933_v13 = vmax.f32 %v2912_v45, 0.0  ;;  %v2915_v5 = vpop.f32.mrb[82].mxu0 }
 0x1a2   :  { %3828 = vst [vmem:[%s6415_s7 + $0x240] sm:$0xff] %v2932_v19  ;;  %v2916_v0 = vadd.f32 %v2915_v5, %v4596_v51  ;;  %v2917_v37 = vpop.f32.mrb[83].mxu0 }
 0x1a3   :  { %3829 = vst [vmem:[%s6415_s7 + $0x248] sm:$0xff] %v2933_v13  ;;  %v2918_v36 = vadd.f32 %v2917_v37, %v4596_v51 }
 0x1a4   :  { %v2934_v16 = vmax.f32 %v2916_v0, 0.0 }
 0x1a5   :  { %v2935_v41 = vmax.f32 %v2918_v36, 0.0  ;;  %v2921_v27 = vpop.f32.mrb[84].mxu0 }
 0x1a6   :  { %3830 = vst [vmem:[%s6415_s7 + $0x250] sm:$0xff] %v2934_v16  ;;  %v2922_v60 = vadd.f32 %v2921_v27, %v4598_v54  ;;  %v2923_v24 = vpop.f32.mrb[85].mxu0 }
 0x1a7   :  { %3831 = vst [vmem:[%s6415_s7 + $0x258] sm:$0xff] %v2935_v41  ;;  %v2924_v45 = vadd.f32 %v2923_v24, %v4598_v54 }
 0x1a8   :  { %v2936_v19 = vmax.f32 %v2922_v60, 0.0 }
 0x1a9   :  { %v2937_v13 = vmax.f32 %v2924_v45, 0.0  ;;  %v2927_v5 = vpop.f32.mrb[86].mxu0 }
 0x1aa   :  { %3832 = vst [vmem:[%s6415_s7 + $0x260] sm:$0xff] %v2936_v19  ;;  %v2928_v0 = vadd.f32 %v2927_v5, %v4632_v22  ;;  %v2929_v37 = vpop.f32.mrb[87].mxu0 }
 0x1ab   :  { %3833 = vst [vmem:[%s6415_s7 + $0x268] sm:$0xff] %v2937_v13  ;;  %v2930_v36 = vadd.f32 %v2929_v37, %v4632_v22 }
 0x1ac   :  { %v2938_v16 = vmax.f32 %v2928_v0, 0.0 }
 0x1ad   :  { %v2939_v41 = vmax.f32 %v2930_v36, 0.0  ;;  %v3145_v27 = vpop.f32.mrb[88].mxu0 }
 0x1ae   :  { %3834 = vst [vmem:[%s6415_s7 + $0x270] sm:$0xff] %v2938_v16  ;;  %v3146_v60 = vadd.f32 %v3145_v27, %v4590_v42  ;;  %v3147_v24 = vpop.f32.mrb[89].mxu0 }
 0x1af   :  { %3835 = vst [vmem:[%s6415_s7 + $0x278] sm:$0xff] %v2939_v41  ;;  %v3148_v45 = vadd.f32 %v3147_v24, %v4590_v42 }
 0x1b0   :  { %v3168_v19 = vmax.f32 %v3146_v60, 0.0 }
 0x1b1   :  { %v3169_v13 = vmax.f32 %v3148_v45, 0.0  ;;  %v3151_v5 = vpop.f32.mrb[90].mxu0 }
 0x1b2   :  { %3858 = vst [vmem:[%s6415_s7 + $0x2c0] sm:$0xff] %v3168_v19  ;;  %v3152_v0 = vadd.f32 %v3151_v5, %v4596_v51  ;;  %v3153_v37 = vpop.f32.mrb[91].mxu0 }
 0x1b3   :  { %3859 = vst [vmem:[%s6415_s7 + $0x2c8] sm:$0xff] %v3169_v13  ;;  %v3154_v36 = vadd.f32 %v3153_v37, %v4596_v51 }
 0x1b4   :  { %v3170_v16 = vmax.f32 %v3152_v0, 0.0 }
 0x1b5   :  { %v3171_v41 = vmax.f32 %v3154_v36, 0.0  ;;  %v3157_v27 = vpop.f32.mrb[92].mxu0 }
 0x1b6   :  { %3860 = vst [vmem:[%s6415_s7 + $0x2d0] sm:$0xff] %v3170_v16  ;;  %v3158_v60 = vadd.f32 %v3157_v27, %v4598_v54  ;;  %v3159_v24 = vpop.f32.mrb[93].mxu0  ;;  %v5284_v27 = vpop.permute.xlu0 %713 }
 0x1b7   :  { %3861 = vst [vmem:[%s6415_s7 + $0x2d8] sm:$0xff] %v3171_v41  ;;  %v3160_v45 = vadd.f32 %v3159_v24, %v4598_v54  ;;  %6504 = vst [vmem:[#allocation21_spill] sm:$0xff] %v5284_v27 }
 0x1b8   :  { %v3172_v19 = vmax.f32 %v3158_v60, 0.0 }
 0x1b9   :  { %v3173_v13 = vmax.f32 %v3160_v45, 0.0  ;;  %v3163_v5 = vpop.f32.mrb[94].mxu0 }
 0x1ba   :  { %3862 = vst [vmem:[%s6415_s7 + $0x2e0] sm:$0xff] %v3172_v19  ;;  %v3164_v0 = vadd.f32 %v3163_v5, %v4632_v22  ;;  %v3165_v37 = vpop.f32.mrb[95].mxu0  ;;  %v5288_v5 = vpop.permute.xlu1 %718 }
 0x1bb   :  { %3863 = vst [vmem:[%s6415_s7 + $0x2e8] sm:$0xff] %v3173_v13  ;;  %v3166_v36 = vadd.f32 %v3165_v37, %v4632_v22  ;;  %6505 = vst [vmem:[#allocation22_spill] sm:$0xff] %v5288_v5  ;;  %v5292_v25 = vpop.permute.xlu0 %723 }
 0x1bc   :  { %v3174_v16 = vmax.f32 %v3164_v0, 0.0  ;;  %6506 = vst [vmem:[#allocation23_spill] sm:$0xff] %v5292_v25 }
 0x1bd   :  { %v3175_v41 = vmax.f32 %v3166_v36, 0.0 }
 0x1be   :  { %3864 = vst [vmem:[%s6415_s7 + $0x2f0] sm:$0xff] %v3174_v16 }
 0x1bf   :  { %3865 = vst [vmem:[%s6415_s7 + $0x2f8] sm:$0xff] %v3175_v41 }
 0x20c   :  { %v810_v60 = vpop.f32.mrb[16].mxu1 }
 0x20d   :  { %v811_v24 = vadd.f32 %v810_v60, %v5284_v27  ;;  %v812_v45 = vpop.f32.mrb[17].mxu1 }
 0x20e   :  { %v813_v19 = vadd.f32 %v812_v45, %v5284_v27 }
 0x20f   :  { %v3481_v13 = vmul.f32 -1.442695, %v811_v24 }
 0x210   :  { %v3482_v0 = vmul.f32 -1.442695, %v813_v19  ;;  %v816_v37 = vpop.f32.mrb[18].mxu1 }
 0x211   :  { %4018 = vpow2.f32 %v3481_v13  ;;  %v817_v36 = vadd.f32 %v816_v37, %v5288_v5  ;;  %v818_v16 = vpop.f32.mrb[19].mxu1  ;;  %v5296_v13 = vpop.permute.xlu1 %728 }
 0x212   :  { %4020 = vpow2.f32 %v3482_v0  ;;  %v819_v41 = vadd.f32 %v818_v16, %v5288_v5  ;;  %6507 = vst [vmem:[#allocation24_spill] sm:$0xff] %v5296_v13 }
 0x213   :  { %v3483_v7 = vmul.f32 -1.442695, %v817_v36 }
 0x214   :  { %v3484_v26 = vmul.f32 -1.442695, %v819_v41  ;;  %v822_v60 = vpop.f32.mrb[20].mxu1 }
 0x215   :  { %4022 = vpow2.f32 %v3483_v7  ;;  %v823_v45 = vadd.f32 %v822_v60, %v5292_v25  ;;  %v824_v24 = vpop.f32.mrb[21].mxu1 }
 0x216   :  { %4024 = vpow2.f32 %v3484_v26  ;;  %v825_v19 = vadd.f32 %v824_v24, %v5292_v25 }
 0x217   :  { %v3485_v27 = vmul.f32 -1.442695, %v823_v45 }
 0x218   :  { %v3486_v37 = vmul.f32 -1.442695, %v825_v19  ;;  %v828_v32 = vpop.f32.mrb[22].mxu1 }
 0x219   :  { %4026 = vpow2.f32 %v3485_v27  ;;  %v829_v0 = vadd.f32 %v828_v32, %v5296_v13  ;;  %v830_v36 = vpop.f32.mrb[23].mxu1 }
 0x21a   :  { %4028 = vpow2.f32 %v3486_v37  ;;  %v831_v16 = vadd.f32 %v830_v36, %v5296_v13 }
 0x21b   :  { %v4019_v41 = vpop.eup %4018  ;;  %v3487_v7 = vmul.f32 -1.442695, %v829_v0 }
 0x21c   :  { %v4021_v5 = vpop.eup %4020  ;;  %v857_v60 = vadd.f32 1.0, %v4019_v41  ;;  %v3488_v30 = vmul.f32 -1.442695, %v831_v16  ;;  %v1141_v26 = vpop.f32.mrb[24].mxu1 }
 0x21d   :  { %v858_v1 = vadd.f32 1.0, %v4021_v5  ;;  %4030 = vpow2.f32 %v3487_v7  ;;  %v1142_v45 = vadd.f32 %v1141_v26, %v4590_v42  ;;  %v1143_v24 = vpop.f32.mrb[25].mxu1 }
 0x21e   :  { %4032 = vrcp.f32 %v857_v60  ;;  %v1144_v27 = vadd.f32 %v1143_v24, %v4590_v42  ;;  %v6509_v24 = vmax.f32 %v4810_v61, 0.0  ;;  %v6511_v61 = vmax.f32 %v4831_v28, 0.0 }
 0x21f   :  { %v4023_v19 = vpop.eup %4022  ;;  %4034 = vrcp.f32 %v858_v1  ;;  %v1164_v32 = vmax.f32 %v1142_v45, 0.0  ;;  %v6513_v28 = vmax.f32 %v4666_v9, 0.0 }
 0x220   :  { %v4025_v37 = vpop.eup %4024  ;;  %v859_v25 = vadd.f32 1.0, %v4023_v19  ;;  %4036 = vpow2.f32 %v3488_v30  ;;  %v1165_v36 = vmax.f32 %v1144_v27, 0.0  ;;  %v1147_v0 = vpop.f32.mrb[26].mxu1  ;;  %v6508_v30 = vmax.f32 %v4805_v47, 0.0 }
 0x221   :  { %v860_v13 = vadd.f32 1.0, %v4025_v37  ;;  %3543 = vst [vmem:[%s6414_s6 + $0xc0] sm:$0xff] %v1164_v32  ;;  %v1148_v5 = vadd.f32 %v1147_v0, %v4596_v51  ;;  %v1149_v16 = vpop.f32.mrb[27].mxu1  ;;  %v6510_v0 = vmax.f32 %v4823_v18, 0.0 }
 0x222   :  { %4038 = vrcp.f32 %v859_v25  ;;  %3544 = vst [vmem:[%s6414_s6 + $0xc8] sm:$0xff] %v1165_v36  ;;  %v1150_v1 = vadd.f32 %v1149_v16, %v4596_v51  ;;  %v1181_v7 = vadd.f32 %v1164_v32, %v6508_v30  ;;  %v1182_v27 = vadd.f32 %v1165_v36, %v6509_v24 }
 0x223   :  { %v4027_v41 = vpop.eup %4026  ;;  %4040 = vrcp.f32 %v860_v13  ;;  %v1166_v60 = vmax.f32 %v1148_v5, 0.0 }
 0x224   :  { %v4029_v26 = vpop.eup %4028  ;;  %v861_v45 = vadd.f32 1.0, %v4027_v41  ;;  %v1167_v19 = vmax.f32 %v1150_v1, 0.0  ;;  %v1153_v37 = vpop.f32.mrb[28].mxu1  ;;  %v1189_v1 = vmul.f32 0.5, %v1181_v7 }
 0x225   :  { %v862_v25 = vadd.f32 1.0, %v4029_v26  ;;  %3545 = vst [vmem:[%s6414_s6 + $0xd0] sm:$0xff] %v1166_v60  ;;  %v1183_v16 = vadd.f32 %v1166_v60, %v6510_v0  ;;  %v1154_v13 = vadd.f32 %v1153_v37, %v4598_v54  ;;  %v1155_v47 = vpop.f32.mrb[29].mxu1  ;;  %v1190_v26 = vmul.f32 0.5, %v1182_v27 }
 0x226   :  { %4042 = vrcp.f32 %v861_v45  ;;  %3546 = vst [vmem:[%s6414_s6 + $0xd8] sm:$0xff] %v1167_v19  ;;  %v1184_v32 = vadd.f32 %v1167_v19, %v6511_v61  ;;  %v1156_v36 = vadd.f32 %v1155_v47, %v4598_v54  ;;  %v6514_v47 = vmax.f32 %v4693_v31, 0.0 }
 0x227   :  { %v4031_v5 = vpop.eup %4030  ;;  %4044 = vrcp.f32 %v862_v25  ;;  %v1191_v41 = vmul.f32 0.5, %v1183_v16  ;;  %v1168_v30 = vmax.f32 %v1154_v13, 0.0  ;;  %v6515_v16 = vmax.f32 %v4669_v10, 0.0 }
 0x228   :  { %v4033_v18 = vpop.eup %4032  ;;  %v863_v60 = vadd.f32 1.0, %v4031_v5  ;;  %v1192_v24 = vmul.f32 0.5, %v1184_v32  ;;  %v1169_v37 = vmax.f32 %v1156_v36, 0.0  ;;  %v1159_v45 = vpop.f32.mrb[30].mxu1  ;;  %v6516_v32 = vmax.f32 %v4672_v11, 0.0 }
 0x229   :  { %v4035_v0 = vpop.eup %4034  ;;  %v889_v29 = vmul.f32 %v4033_v18, %v6512_v58  ;;  %v913_v19 = vmul.f32 %v4033_v18, %v6513_v28  ;;  %v937_v61 = vmul.f32 %v4033_v18, %v6514_v47  ;;  %v3944_v25 = vpack.c.bf16 %v1191_v41, %v1189_v1  ;;  %3547 = vst [vmem:[%s6414_s6 + $0xe0] sm:$0xff] %v1168_v30  ;;  %v1161_v7 = vpop.f32.mrb[31].mxu1 }
 0x22a   :  { %v4037_v27 = vpop.eup %4036  ;;  %v890_v13 = vmul.f32 %v4035_v0, %v6515_v16  ;;  %v914_v8 = vmul.f32 %v4035_v0, %v6516_v32  ;;  %v6517_v58 = vmax.f32 %v4698_v35, 0.0  ;;  %4046 = vrcp.f32 %v863_v60  ;;  %3548 = vst [vmem:[%s6414_s6 + $0xe8] sm:$0xff] %v1169_v37 }
 0x22b   :  { %897 = vst [vmem:[%s6415_s7] sm:$0xff] %v889_v29  ;;  %3497 = vst [vmem:[%s6415_s7 + $0x40] sm:$0xff] %v913_v19  ;;  %v864_v10 = vadd.f32 1.0, %v4037_v27  ;;  %v1160_v11 = vadd.f32 %v1159_v45, %v4632_v22  ;;  %v6518_v29 = vmax.f32 %v4846_v6, 0.0  ;;  %v1162_v36 = vadd.f32 %v1161_v7, %v4632_v22 }
 0x22c   :  { %v938_v9 = vmul.f32 %v4035_v0, %v6517_v58  ;;  %3513 = vst [vmem:[%s6415_s7 + $0x80] sm:$0xff] %v937_v61  ;;  %v4039_v31 = vpop.eup %4038  ;;  %898 = vst [vmem:[%s6415_s7 + $0x8] sm:$0xff] %v890_v13  ;;  %v1385_v5 = vpop.f32.mrb[32].mxu1  ;;  %v3942_v1 = vpack.c.bf16 %v1192_v24, %v1190_v26  ;;  %v6519_v18 = vmax.f32 %v4675_v15, 0.0  ;;  %v6520_v45 = vmax.f32 %v4678_v17, 0.0 }
 0x22d   :  { %3498 = vst [vmem:[%s6415_s7 + $0x48] sm:$0xff] %v914_v8  ;;  %v1185_v35 = vadd.f32 %v1168_v30, %v6518_v29  ;;  %v4041_v41 = vpop.eup %4040  ;;  %v6521_v28 = vmax.f32 %v4724_v46, 0.0  ;;  %4048 = vrcp.f32 %v864_v10  ;;  %v1387_v47 = vpop.f32.mrb[33].mxu1  ;;  %v6522_v61 = vmax.f32 %v4681_v21, 0.0 }
 0x22e   :  { %3514 = vst [vmem:[%s6415_s7 + $0x88] sm:$0xff] %v938_v9  ;;  %v891_v60 = vmul.f32 %v4039_v31, %v6519_v18  ;;  %v915_v0 = vmul.f32 %v4039_v31, %v6520_v45  ;;  %v6523_v30 = vmax.f32 %v4684_v23, 0.0  ;;  %v6524_v26 = vmax.f32 %v4737_v52, 0.0  ;;  %3943 = vmatprep.subr.bf16.mxu1 %v3942_v1 }
 0x22f   :  { %v939_v19 = vmul.f32 %v4039_v31, %v6521_v28  ;;  %v892_v6 = vmul.f32 %v4041_v41, %v6522_v61  ;;  %v1170_v15 = vmax.f32 %v1160_v11, 0.0  ;;  %v1171_v17 = vmax.f32 %v1162_v36, 0.0  ;;  %3945 = vmatpush1.bf16.msra.mxu1 %v3944_v25 }
 0x230   :  { %v916_v7 = vmul.f32 %v4041_v41, %v6523_v30  ;;  %v940_v24 = vmul.f32 %v4041_v41, %v6524_v26  ;;  %899 = vst [vmem:[%s6415_s7 + $0x10] sm:$0xff] %v891_v60  ;;  %3499 = vst [vmem:[%s6415_s7 + $0x50] sm:$0xff] %v915_v0  ;;  %v5388_v21 = vadd.f32 %v1385_v5, %v4590_v42  ;;  %v4043_v23 = vpop.eup %4042  ;;  %v1193_v46 = vmul.f32 0.5, %v1185_v35  ;;  %v1391_v25 = vpop.f32.mrb[34].mxu1 }
 0x231   :  { %3515 = vst [vmem:[%s6415_s7 + $0x90] sm:$0xff] %v939_v19  ;;  %900 = vst [vmem:[%s6415_s7 + $0x18] sm:$0xff] %v892_v6  ;;  %v6525_v52 = vmax.f32 %v4854_v12, 0.0  ;;  %v5402_v16 = vadd.f32 %v1387_v47, %v4590_v42  ;;  %v4045_v13 = vpop.eup %4044  ;;  %v6526_v32 = vmax.f32 %v4709_v38, 0.0  ;;  %v6527_v58 = vmax.f32 %v4712_v39, 0.0  ;;  %v1393_v31 = vpop.f32.mrb[35].mxu1 }
 0x232   :  { %3500 = vst [vmem:[%s6415_s7 + $0x58] sm:$0xff] %v916_v7  ;;  %3516 = vst [vmem:[%s6415_s7 + $0x98] sm:$0xff] %v940_v24  ;;  %v6528_v10 = vmax.f32 %v4760_v3, 0.0  ;;  %v6529_v12 = vmax.f32 %v4868_v20, 0.0  ;;  %v6530_v38 = vmax.f32 %v4720_v44, 0.0  ;;  %v6531_v39 = vmax.f32 %v4731_v49, 0.0 }
 0x233   :  { %v1186_v27 = vadd.f32 %v1169_v37, %v6525_v52  ;;  %v893_v8 = vmul.f32 %v4043_v23, %v6526_v32  ;;  %v917_v9 = vmul.f32 %v4043_v23, %v6527_v58  ;;  %3549 = vst [vmem:[%s6414_s6 + $0xf0] sm:$0xff] %v1170_v15  ;;  %3550 = vst [vmem:[%s6414_s6 + $0xf8] sm:$0xff] %v1171_v17  ;;  %v6532_v3 = vmax.f32 %v4767_v14, 0.0 }
 0x234   :  { %v941_v11 = vmul.f32 %v4043_v23, %v6528_v10  ;;  %v1187_v37 = vadd.f32 %v1170_v15, %v6529_v12  ;;  %v894_v29 = vmul.f32 %v4045_v13, %v6530_v38  ;;  %v918_v35 = vmul.f32 %v4045_v13, %v6531_v39  ;;  %v1397_v45 = vpop.f32.mrb[36].mxu1 }
 0x235   :  { %v942_v36 = vmul.f32 %v4045_v13, %v6532_v3  ;;  %v6533_v5 = vmax.f32 %v4878_v2, 0.0  ;;  %901 = vst [vmem:[%s6415_s7 + $0x20] sm:$0xff] %v893_v8  ;;  %3501 = vst [vmem:[%s6415_s7 + $0x60] sm:$0xff] %v917_v9  ;;  %v1408_v49 = vmax.f32 %v5388_v21, 0.0  ;;  %v1409_v14 = vmax.f32 %v5402_v16, 0.0  ;;  %v4047_v2 = vpop.eup %4046  ;;  %v1399_v7 = vpop.f32.mrb[37].mxu1 }
 0x236   :  { %3517 = vst [vmem:[%s6415_s7 + $0xa0] sm:$0xff] %v941_v11  ;;  %v1195_v44 = vmul.f32 0.5, %v1187_v37  ;;  %v5438_v20 = vadd.f32 %v1391_v25, %v4596_v51  ;;  %902 = vst [vmem:[%s6415_s7 + $0x28] sm:$0xff] %v894_v29  ;;  %v1194_v41 = vmul.f32 0.5, %v1186_v27  ;;  %v5450_v60 = vadd.f32 %v1393_v31, %v4596_v51  ;;  %v6548_v3 = vld [vmem:[#allocation9_spill] sm:$0xff] }
 0x237   :  { %v1188_v1 = vadd.f32 %v1171_v17, %v6533_v5  ;;  %3502 = vst [vmem:[%s6415_s7 + $0x68] sm:$0xff] %v918_v35  ;;  %3518 = vst [vmem:[%s6415_s7 + $0xa8] sm:$0xff] %v942_v36  ;;  %v6534_v0 = vmax.f32 %v4734_v50, 0.0  ;;  %v6535_v19 = vmax.f32 %v4740_v53, 0.0  ;;  %v6536_v61 = vmax.f32 %v4775_v48, 0.0  ;;  %v4049_v23 = vpop.eup %4048  ;;  %v6550_v5 = vld [vmem:[#allocation10_spill] sm:$0xff] }
 0x238   :  { %v3948_v30 = vpack.c.bf16 %v1195_v44, %v1193_v46  ;;  %v6537_v26 = vmax.f32 %v4890_v63, 0.0  ;;  %v6538_v15 = vmax.f32 %v4899_v59, 0.0  ;;  %v1410_v50 = vmax.f32 %v5438_v20, 0.0  ;;  %v1403_v8 = vpop.f32.mrb[38].mxu1 }
 0x239   :  { %v1196_v18 = vmul.f32 0.5, %v1188_v1  ;;  %v895_v28 = vmul.f32 %v4047_v2, %v6534_v0  ;;  %v919_v47 = vmul.f32 %v4047_v2, %v6535_v19  ;;  %v943_v6 = vmul.f32 %v4047_v2, %v6536_v61  ;;  %v1405_v37 = vpop.f32.mrb[39].mxu1 }
 0x23a   :  { %v1425_v24 = vadd.f32 %v1408_v49, %v6537_v26  ;;  %v1426_v17 = vadd.f32 %v1409_v14, %v6538_v15  ;;  %v1411_v53 = vmax.f32 %v5450_v60, 0.0  ;;  %v5478_v48 = vadd.f32 %v1397_v45, %v4598_v54 }
 0x23b   :  { %903 = vst [vmem:[%s6415_s7 + $0x30] sm:$0xff] %v895_v28  ;;  %3503 = vst [vmem:[%s6415_s7 + $0x70] sm:$0xff] %v919_v47  ;;  %v3946_v63 = vpack.c.bf16 %v1196_v18, %v1194_v41  ;;  %v5481_v59 = vadd.f32 %v1399_v7, %v4598_v54  ;;  %v6539_v46 = vmax.f32 %v4743_v55, 0.0  ;;  %v6540_v27 = vmax.f32 %v4746_v56, 0.0  ;;  %v6554_v47 = vld [vmem:[#allocation11_spill] sm:$0xff] }
 0x23c   :  { %3519 = vst [vmem:[%s6415_s7 + $0xb0] sm:$0xff] %v943_v6  ;;  %v6541_v13 = vmax.f32 %v4782_v34, 0.0  ;;  %v6542_v58 = vmax.f32 %v4986_v33, 0.0  ;;  %v6543_v10 = vmax.f32 %v4910_v57, 0.0  ;;  %v6544_v12 = vmax.f32 %v4921_v4, 0.0 }
 0x23d   :  { %v896_v52 = vmul.f32 %v4049_v23, %v6539_v46  ;;  %v920_v25 = vmul.f32 %v4049_v23, %v6540_v27  ;;  %v1412_v56 = vmax.f32 %v5478_v48, 0.0  ;;  %3947 = vmatprep.subr.bf16.mxu1 %v3946_v63  ;;  %v6545_v34 = vmax.f32 %v4977_v43, 0.0  ;;  %v6560_v63 = vld [vmem:[#allocation15_spill] sm:$0xff]  ;;  %v6562_v27 = vld [vmem:[#allocation16_spill] sm:$0xff] }
 0x23e   :  { %v944_v32 = vmul.f32 %v4049_v23, %v6541_v13  ;;  %v1548_v9 = vadd.f32 %v6542_v58, %v1426_v17  ;;  %v1427_v11 = vadd.f32 %v1410_v50, %v6543_v10  ;;  %v1428_v55 = vadd.f32 %v1411_v53, %v6544_v12  ;;  %3949 = vmatpush1.bf16.msra.mxu1 %v3948_v30  ;;  %v6556_v30 = vld [vmem:[#allocation12_spill] sm:$0xff] }
 0x23f   :  { %904 = vst [vmem:[%s6415_s7 + $0x38] sm:$0xff] %v896_v52  ;;  %3504 = vst [vmem:[%s6415_s7 + $0x78] sm:$0xff] %v920_v25  ;;  %v1547_v57 = vadd.f32 %v6545_v34, %v1425_v24  ;;  %v1413_v4 = vmax.f32 %v5481_v59, 0.0  ;;  %v5513_v33 = vadd.f32 %v1403_v8, %v4632_v22  ;;  %v5516_v31 = vadd.f32 %v1405_v37, %v4632_v22  ;;  %v6558_v24 = vld [vmem:[#allocation13_spill] sm:$0xff]  ;;  %v3701_v34 = vld [vmem:[%s6409_s1 + $0x38] sm:$0x77] }
 0x240   :  { %3520 = vst [vmem:[%s6415_s7 + $0xb8] sm:$0xff] %v944_v32  ;;  %v6546_v38 = vmax.f32 %v4998_v62, 0.0  ;;  %v6547_v39 = vmax.f32 %v5007_v40, 0.0  ;;  %v6549_v36 = vmax.f32 %v6548_v3, 0.0  ;;  %v6551_v1 = vmax.f32 %v6550_v5, 0.0  ;;  %v6552_v40 = vld [vmem:[#allocation14_spill] sm:$0xff] }
 0x241   :  { %v1414_v2 = vmax.f32 %v5513_v33, 0.0  ;;  %v1415_v41 = vmax.f32 %v5516_v31, 0.0  ;;  %v1556_v18 = vmul.f32 0.33333334, %v1548_v9  ;;  %v1555_v0 = vmul.f32 0.33333334, %v1547_v57 }
 0x242   :  { %v1549_v29 = vadd.f32 %v6546_v38, %v1427_v11  ;;  %v1550_v35 = vadd.f32 %v6547_v39, %v1428_v55  ;;  %v1429_v43 = vadd.f32 %v1412_v56, %v6549_v36  ;;  %v1430_v44 = vadd.f32 %v1413_v4, %v6551_v1  ;;  %v3671_v8 = vld [vmem:[%s6408_s0 + $0x28] sm:$0x77]  ;;  %v5555_v38 = vld [vmem:[#allocation4] sm:$0xff]  ;;  %v5586_v5 = vld [vmem:[#allocation2 + $0x10] sm:$0xff] }
 0x243   :  { %v6553_v28 = vmax.f32 %v6552_v40, 0.0  ;;  %v6555_v61 = vmax.f32 %v6554_v47, 0.0  ;;  %v6557_v7 = vmax.f32 %v6556_v30, 0.0  ;;  %v6559_v15 = vmax.f32 %v6558_v24, 0.0  ;;  %v5562_v39 = vld [vmem:[#allocation4 + $0x8] sm:$0xff]  ;;  %v6565_v3 = vld [vmem:[#allocation8_spill] sm:$0xff] }
 0x244   :  { %v1557_v62 = vmul.f32 0.33333334, %v1549_v29  ;;  %v1558_v45 = vmul.f32 0.33333334, %v1550_v35  ;;  %v6561_v46 = vmax.f32 %v6560_v63, 0.0  ;;  %v6563_v25 = vmax.f32 %v6562_v27, 0.0 }
 0x245   :  { %v1552_v19 = vadd.f32 %v6553_v28, %v1430_v44  ;;  %v1431_v6 = vadd.f32 %v1414_v2, %v6555_v61  ;;  %v1432_v26 = vadd.f32 %v1415_v41, %v6557_v7  ;;  %v1551_v17 = vadd.f32 %v6559_v15, %v1429_v43  ;;  %v5567_v35 = vld [vmem:[#allocation4 + $0x10] sm:$0xff]  ;;  %v5575_v36 = vld [vmem:[#allocation2] sm:$0xff]  ;;  %v5581_v43 = vld [vmem:[#allocation2 + $0x8] sm:$0xff] }
 0x246   :  { %v3950_v23 = vpack.c.bf16 %v1558_v45, %v1556_v18  ;;  %v3952_v32 = vpack.c.bf16 %v1557_v62, %v1555_v0  ;;  %v1889_v55 = vcombine.high %v3671_v8, %v3671_v8  ;;  %v2133_v57 = vcombine.high %v3701_v34, %v3701_v34  ;;  %v5591_v1 = vld [vmem:[#allocation2 + $0x18] sm:$0xff]  ;;  %v6566_v18 = vld [vmem:[#allocation21_spill] sm:$0xff]  ;;  %v6567_v47 = vld [vmem:[#allocation22_spill] sm:$0xff] }
 0x247   :  { %v1553_v52 = vadd.f32 %v6561_v46, %v1431_v6  ;;  %v1554_v13 = vadd.f32 %v6563_v25, %v1432_v26  ;;  %v1560_v58 = vmul.f32 0.33333334, %v1552_v19  ;;  %v1559_v11 = vmul.f32 0.33333334, %v1551_v17  ;;  %v6568_v15 = vld [vmem:[#allocation23_spill] sm:$0xff]  ;;  %v6569_v25 = vld [vmem:[#allocation24_spill] sm:$0xff] }
 0x248   :  { %3951 = vmatprep.subr.bf16.mxu1 %v3950_v23  ;;  %v6564_v29 = vmov 0.0  }
 0x249   :  { %v1561_v9 = vmul.f32 0.33333334, %v1553_v52  ;;  %v1562_v10 = vmul.f32 0.33333334, %v1554_v13  ;;  %3953 = vmatpush1.bf16.msra.mxu1 %v3952_v32 }
 0x24b   :  { %v3954_v12 = vpack.c.bf16 %v1562_v10, %v1560_v58  ;;  %v3956_v37 = vpack.c.bf16 %v1561_v9, %v1559_v11 }
 0x24d   :  { %3955 = vmatprep.subr.bf16.mxu1 %v3954_v12 }
 0x24e   :  { %3957 = vmatpush1.bf16.msra.mxu1 %v3956_v37 }
 0x24f   :  { %3672 = vmatprep.subr.msk.mxu1 %vm105_vm0, %v1889_v55 }
 0x251   :  { %3596 = vmatmul.mubr.msk.f32.vlgmr.msra.gmra.mrb[40].mxu1 %vm731_vm2, %v5555_v38 }
 0x252   :  { %3673 = vmatpush1.msk.msra.mxu1 %vm105_vm0, %v3671_v8  ;;  %1633 = vmatprep.mubr.f32.mxu1 %v6564_v29 }
 0x253   :  { %3702 = vmatprep.subr.msk.mxu1 %vm105_vm0, %v2133_v57 }
 0x255   :  { %3597 = vmatmul.mubr.msk.f32.gmra.mrb[42].mxu1 %vm731_vm2, %v5562_v39 }
 0x256   :  { %1639 = vmatprep.mubr.f32.mxu1 %v6564_v29 }
 0x259   :  { %3598 = vmatmul.mubr.msk.f32.gmra.mrb[44].mxu1 %vm731_vm2, %v5567_v35 }
 0x25a   :  { %1645 = vmatprep.mubr.f32.mxu1 %v6564_v29 }
 0x25d   :  { %3599 = vmatmul.mubr.msk.f32.gmra.mrb[46].mxu1 %vm731_vm2, %v6565_v3 }
 0x25e   :  { %1958 = vmatprep.mubr.f32.mxu1 %v6564_v29 }
 0x261   :  { %3674 = vmatmul.mubr.msk.f32.vlgmr.msra.gmra.mrb[48].mxu1 %vm92_vm1, %v5575_v36 }
 0x262   :  { %3703 = vmatpush1.msk.msra.mxu1 %vm105_vm0, %v3701_v34  ;;  %1964 = vmatprep.mubr.f32.mxu1 %v6564_v29 }
 0x265   :  { %3675 = vmatmul.mubr.msk.f32.gmra.mrb[50].mxu1 %vm92_vm1, %v5581_v43 }
 0x266   :  { %1970 = vmatprep.mubr.f32.mxu1 %v6564_v29 }
 0x269   :  { %3676 = vmatmul.mubr.msk.f32.gmra.mrb[52].mxu1 %vm92_vm1, %v5586_v5 }
 0x26a   :  { %1976 = vmatprep.mubr.f32.mxu1 %v6564_v29 }
 0x26d   :  { %3677 = vmatmul.mubr.msk.f32.gmra.mrb[54].mxu1 %vm92_vm1, %v5591_v1 }
 0x26e   :  { %2202 = vmatprep.mubr.f32.mxu1 %v6564_v29 }
 0x271   :  { %3704 = vmatmul.mubr.msk.f32.vlgmr.msra.gmra.mrb[56].mxu1 %vm92_vm1, %v5575_v36 }
 0x272   :  { %2208 = vmatprep.mubr.f32.mxu1 %v6564_v29 }
 0x275   :  { %3705 = vmatmul.mubr.msk.f32.gmra.mrb[58].mxu1 %vm92_vm1, %v5581_v43 }
 0x276   :  { %2214 = vmatprep.mubr.f32.mxu1 %v6564_v29 }
 0x279   :  { %3706 = vmatmul.mubr.msk.f32.gmra.mrb[60].mxu1 %vm92_vm1, %v5586_v5 }
 0x27a   :  { %2220 = vmatprep.mubr.f32.mxu1 %v6564_v29 }
 0x27d   :  { %3707 = vmatmul.mubr.msk.f32.gmra.mrb[62].mxu1 %vm92_vm1, %v5591_v1 }
 0x27e   :  { %2446 = vmatprep.mubr.f32.mxu1 %v6564_v29 }
 0x324   :  { %v1629_v44 = vpop.f32.mrb[40].mxu1 }
 0x325   :  { %v1630_v62 = vadd.f32 %v1629_v44, %v6566_v18  ;;  %v1631_v45 = vpop.f32.mrb[41].mxu1 }
 0x326   :  { %v1632_v0 = vadd.f32 %v1631_v45, %v6566_v18 }
 0x327   :  { %v3600_v40 = vmul.f32 -1.442695, %v1630_v62 }
 0x328   :  { %v3601_v28 = vmul.f32 -1.442695, %v1632_v0  ;;  %v1635_v19 = vpop.f32.mrb[42].mxu1 }
 0x329   :  { %4050 = vpow2.f32 %v3600_v40  ;;  %v1636_v61 = vadd.f32 %v1635_v19, %v6567_v47  ;;  %v1637_v6 = vpop.f32.mrb[43].mxu1 }
 0x32a   :  { %4052 = vpow2.f32 %v3601_v28  ;;  %v1638_v30 = vadd.f32 %v1637_v6, %v6567_v47 }
 0x32b   :  { %v3602_v7 = vmul.f32 -1.442695, %v1636_v61 }
 0x32c   :  { %v3603_v26 = vmul.f32 -1.442695, %v1638_v30  ;;  %v1641_v24 = vpop.f32.mrb[44].mxu1 }
 0x32d   :  { %4054 = vpow2.f32 %v3602_v7  ;;  %v1642_v17 = vadd.f32 %v1641_v24, %v6568_v15  ;;  %v1643_v23 = vpop.f32.mrb[45].mxu1 }
 0x32e   :  { %4056 = vpow2.f32 %v3603_v26  ;;  %v1644_v63 = vadd.f32 %v1643_v23, %v6568_v15  ;;  %v6570_v26 = vld [vmem:[#allocation17_spill] sm:$0xff] }
 0x32f   :  { %v3604_v46 = vmul.f32 -1.442695, %v1642_v17  ;;  %v6571_v24 = vmax.f32 %v6570_v26, 0.0 }
 0x330   :  { %v3605_v52 = vmul.f32 -1.442695, %v1644_v63  ;;  %v1647_v27 = vpop.f32.mrb[46].mxu1 }
 0x331   :  { %4058 = vpow2.f32 %v3604_v46  ;;  %v1648_v13 = vadd.f32 %v1647_v27, %v6569_v25  ;;  %v1649_v32 = vpop.f32.mrb[47].mxu1 }
 0x332   :  { %4060 = vpow2.f32 %v3605_v52  ;;  %v1650_v8 = vadd.f32 %v1649_v32, %v6569_v25  ;;  %v6572_v52 = vld [vmem:[#allocation18_spill] sm:$0xff] }
 0x333   :  { %v4051_v58 = vpop.eup %4050  ;;  %v3606_v9 = vmul.f32 -1.442695, %v1648_v13  ;;  %v6573_v27 = vmax.f32 %v6572_v52, 0.0  ;;  %v3641_v52 = vld [vmem:[%s6415_s7 + $0x148] sm:$0xff] }
 0x334   :  { %v4053_v10 = vpop.eup %4052  ;;  %v1676_v11 = vadd.f32 1.0, %v4051_v58  ;;  %v3607_v12 = vmul.f32 -1.442695, %v1650_v8  ;;  %v1960_v55 = vpop.f32.mrb[48].mxu1 }
 0x335   :  { %v1677_v37 = vadd.f32 1.0, %v4053_v10  ;;  %4062 = vpow2.f32 %v3606_v9  ;;  %v1961_v34 = vadd.f32 %v1960_v55, %v4590_v42  ;;  %v1962_v57 = vpop.f32.mrb[49].mxu1  ;;  %v6574_v9 = vld [vmem:[#allocation19_spill] sm:$0xff] }
 0x336   :  { %4064 = vrcp.f32 %v1676_v11  ;;  %v1963_v3 = vadd.f32 %v1962_v57, %v4590_v42  ;;  %v6575_v10 = vmax.f32 %v6574_v9, 0.0  ;;  %v3610_v9 = vld [vmem:[%s6415_s7 + $0xd0] sm:$0xff] }
 0x337   :  { %v4055_v44 = vpop.eup %4054  ;;  %4066 = vrcp.f32 %v1677_v37  ;;  %v1983_v62 = vmax.f32 %v1961_v34, 0.0  ;;  %v6576_v37 = vld [vmem:[#allocation20_spill] sm:$0xff] }
 0x338   :  { %v4057_v45 = vpop.eup %4056  ;;  %v1678_v0 = vadd.f32 1.0, %v4055_v44  ;;  %4068 = vpow2.f32 %v3607_v12  ;;  %v1984_v40 = vmax.f32 %v1963_v3, 0.0  ;;  %v1966_v28 = vpop.f32.mrb[50].mxu1  ;;  %v6577_v34 = vmax.f32 %v6576_v37, 0.0 }
 0x339   :  { %v1679_v19 = vadd.f32 1.0, %v4057_v45  ;;  %3678 = vst [vmem:[%s6414_s6 + $0x140] sm:$0xff] %v1983_v62  ;;  %v1967_v61 = vadd.f32 %v1966_v28, %v4596_v51  ;;  %v1968_v6 = vpop.f32.mrb[51].mxu1  ;;  %v2000_v17 = vadd.f32 %v1983_v62, %v6571_v24  ;;  %v3608_v62 = vld [vmem:[%s6415_s7 + $0xc0] sm:$0xff] }
 0x33a   :  { %4070 = vrcp.f32 %v1678_v0  ;;  %3679 = vst [vmem:[%s6414_s6 + $0x148] sm:$0xff] %v1984_v40  ;;  %v1969_v30 = vadd.f32 %v1968_v6, %v4596_v51  ;;  %v2001_v13 = vadd.f32 %v1984_v40, %v6573_v27 }
 0x33b   :  { %v4059_v7 = vpop.eup %4058  ;;  %4072 = vrcp.f32 %v1679_v19  ;;  %v1985_v23 = vmax.f32 %v1967_v61, 0.0  ;;  %v2008_v45 = vmul.f32 0.5, %v2000_v17  ;;  %v3640_v19 = vld [vmem:[%s6415_s7 + $0x140] sm:$0xff]  ;;  %v3609_v17 = vld [vmem:[%s6415_s7 + $0xc8] sm:$0xff] }
 0x33c   :  { %v4061_v63 = vpop.eup %4060  ;;  %v1680_v46 = vadd.f32 1.0, %v4059_v7  ;;  %v1986_v32 = vmax.f32 %v1969_v30, 0.0  ;;  %v1972_v8 = vpop.f32.mrb[52].mxu1  ;;  %v2009_v6 = vmul.f32 0.5, %v2001_v13 }
 0x33d   :  { %v1681_v58 = vadd.f32 1.0, %v4061_v63  ;;  %3680 = vst [vmem:[%s6414_s6 + $0x150] sm:$0xff] %v1985_v23  ;;  %v2002_v11 = vadd.f32 %v1985_v23, %v6575_v10  ;;  %v1973_v12 = vadd.f32 %v1972_v8, %v4598_v54  ;;  %v1974_v55 = vpop.f32.mrb[53].mxu1  ;;  %v3642_v10 = vld [vmem:[%s6415_s7 + $0x150] sm:$0xff] }
 0x33e   :  { %4074 = vrcp.f32 %v1680_v46  ;;  %3681 = vst [vmem:[%s6414_s6 + $0x158] sm:$0xff] %v1986_v32  ;;  %v2003_v57 = vadd.f32 %v1986_v32, %v6577_v34  ;;  %v5642_v3 = vadd.f32 %v1974_v55, %v4598_v54 }
 0x33f   :  { %v4063_v44 = vpop.eup %4062  ;;  %4076 = vrcp.f32 %v1681_v58  ;;  %v2010_v0 = vmul.f32 0.5, %v2002_v11  ;;  %v1987_v40 = vmax.f32 %v1973_v12, 0.0  ;;  %v4153_v11 = vld [vmem:[%s6414_s6 + $0x120] sm:$0xff] }
 0x340   :  { %v4065_v28 = vpop.eup %4064  ;;  %v1682_v61 = vadd.f32 1.0, %v4063_v44  ;;  %v2011_v30 = vmul.f32 0.5, %v2003_v57  ;;  %v1988_v7 = vmax.f32 %v5642_v3, 0.0  ;;  %v1978_v26 = vpop.f32.mrb[54].mxu1 }
 0x341   :  { %v4067_v24 = vpop.eup %4066  ;;  %v1708_v23 = vmul.f32 %v4065_v28, %v3608_v62  ;;  %v1732_v63 = vmul.f32 %v4065_v28, %v1408_v49  ;;  %v1756_v46 = vmul.f32 %v4065_v28, %v3640_v19  ;;  %v3960_v27 = vpack.c.bf16 %v2010_v0, %v2008_v45  ;;  %3682 = vst [vmem:[%s6414_s6 + $0x160] sm:$0xff] %v1987_v40  ;;  %v1980_v13 = vpop.f32.mrb[55].mxu1  ;;  %v3611_v45 = vld [vmem:[%s6415_s7 + $0xd8] sm:$0xff] }
 0x342   :  { %v4069_v32 = vpop.eup %4068  ;;  %v1709_v8 = vmul.f32 %v4067_v24, %v3609_v17  ;;  %v1733_v21 = vmul.f32 %v4067_v24, %v1409_v14  ;;  %v1757_v49 = vmul.f32 %v4067_v24, %v3641_v52  ;;  %4078 = vrcp.f32 %v1682_v61  ;;  %3683 = vst [vmem:[%s6414_s6 + $0x168] sm:$0xff] %v1988_v7  ;;  %v3643_v0 = vld [vmem:[%s6415_s7 + $0x158] sm:$0xff]  ;;  %v4154_v24 = vld [vmem:[%s6414_s6 + $0x128] sm:$0xff] }
 0x343   :  { %3616 = vst [vmem:[%s6415_s7 + $0xc0] sm:$0xff] %v1708_v23  ;;  %3632 = vst [vmem:[%s6415_s7 + $0x100] sm:$0xff] %v1732_v63  ;;  %v1683_v16 = vadd.f32 1.0, %v4069_v32  ;;  %v1979_v14 = vadd.f32 %v1978_v26, %v4632_v22  ;;  %v2004_v12 = vadd.f32 %v4153_v11, %v1987_v40  ;;  %v1981_v55 = vadd.f32 %v1980_v13, %v4632_v22  ;;  %v3613_v32 = vld [vmem:[%s6415_s7 + $0xe8] sm:$0xff] }
 0x344   :  { %3648 = vst [vmem:[%s6415_s7 + $0x140] sm:$0xff] %v1756_v46  ;;  %v4071_v58 = vpop.eup %4070  ;;  %3617 = vst [vmem:[%s6415_s7 + $0xc8] sm:$0xff] %v1709_v8  ;;  %v2204_v37 = vpop.f32.mrb[56].mxu1  ;;  %v3958_v34 = vpack.c.bf16 %v2011_v30, %v2009_v6  ;;  %v3644_v30 = vld [vmem:[%s6415_s7 + $0x160] sm:$0xff]  ;;  %v2005_v23 = vadd.f32 %v4154_v24, %v1988_v7  ;;  %v3645_v8 = vld [vmem:[%s6415_s7 + $0x168] sm:$0xff] }
 0x345   :  { %3633 = vst [vmem:[%s6415_s7 + $0x108] sm:$0xff] %v1733_v21  ;;  %3649 = vst [vmem:[%s6415_s7 + $0x148] sm:$0xff] %v1757_v49  ;;  %v4073_v57 = vpop.eup %4072  ;;  %v1710_v3 = vmul.f32 %v4071_v58, %v3610_v9  ;;  %v1734_v44 = vmul.f32 %v4071_v58, %v1410_v50  ;;  %v1758_v62 = vmul.f32 %v4071_v58, %v3642_v10  ;;  %4080 = vrcp.f32 %v1683_v16  ;;  %v2206_v40 = vpop.f32.mrb[57].mxu1  ;;  %v4155_v7 = vld [vmem:[%s6414_s6 + $0x130] sm:$0xff] }
 0x346   :  { %v1711_v28 = vmul.f32 %v4073_v57, %v3611_v45  ;;  %v1735_v19 = vmul.f32 %v4073_v57, %v1411_v53  ;;  %v1759_v61 = vmul.f32 %v4073_v57, %v3643_v0  ;;  %3959 = vmatprep.subr.bf16.mxu1 %v3958_v34  ;;  %v1989_v20 = vmax.f32 %v1979_v14, 0.0  ;;  %v3612_v53 = vld [vmem:[%s6415_s7 + $0xe0] sm:$0xff]  ;;  %v4156_v14 = vld [vmem:[%s6414_s6 + $0x138] sm:$0xff] }
 0x347   :  { %3618 = vst [vmem:[%s6415_s7 + $0xd0] sm:$0xff] %v1710_v3  ;;  %3634 = vst [vmem:[%s6415_s7 + $0x110] sm:$0xff] %v1734_v44  ;;  %v1990_v50 = vmax.f32 %v1981_v55, 0.0  ;;  %v5716_v6 = vadd.f32 %v2204_v37, %v4590_v42  ;;  %3961 = vmatpush1.bf16.msra.mxu1 %v3960_v27  ;;  %v5733_v26 = vmul.f32 0.5, %v2004_v12  ;;  %v5739_v63 = vadd.f32 %v2206_v40, %v4590_v42  ;;  %v3614_v12 = vld [vmem:[%s6415_s7 + $0xf0] sm:$0xff] }
 0x348   :  { %3650 = vst [vmem:[%s6415_s7 + $0x150] sm:$0xff] %v1758_v62  ;;  %v4075_v60 = vpop.eup %4074  ;;  %3619 = vst [vmem:[%s6415_s7 + $0xd8] sm:$0xff] %v1711_v28  ;;  %v2210_v46 = vpop.f32.mrb[58].mxu1  ;;  %v2006_v21 = vadd.f32 %v4155_v7, %v1989_v20  ;;  %v3646_v55 = vld [vmem:[%s6415_s7 + $0x170] sm:$0xff]  ;;  %v2013_v37 = vmul.f32 0.5, %v2005_v23  ;;  %v4157_v28 = vld [vmem:[%s6415_s7 + $0x180] sm:$0xff] }
 0x349   :  { %3635 = vst [vmem:[%s6415_s7 + $0x118] sm:$0xff] %v1735_v19  ;;  %3651 = vst [vmem:[%s6415_s7 + $0x158] sm:$0xff] %v1759_v61  ;;  %v4077_v17 = vpop.eup %4076  ;;  %v1712_v52 = vmul.f32 %v4075_v60, %v3612_v53  ;;  %v1736_v27 = vmul.f32 %v4075_v60, %v1412_v56  ;;  %v1760_v13 = vmul.f32 %v4075_v60, %v3644_v30  ;;  %v2212_v48 = vpop.f32.mrb[59].mxu1  ;;  %v2228_v9 = vmax.f32 %v5739_v63, 0.0  ;;  %v4158_v61 = vld [vmem:[%s6415_s7 + $0x188] sm:$0xff]  ;;  %v3615_v60 = vld [vmem:[%s6415_s7 + $0xf8] sm:$0xff] }
 0x34a   :  { %3684 = vst [vmem:[%s6414_s6 + $0x170] sm:$0xff] %v1989_v20  ;;  %3685 = vst [vmem:[%s6414_s6 + $0x178] sm:$0xff] %v1990_v50  ;;  %v1713_v56 = vmul.f32 %v4077_v17, %v3613_v32  ;;  %v1737_v49 = vmul.f32 %v4077_v17, %v1413_v4  ;;  %v1761_v16 = vmul.f32 %v4077_v17, %v3645_v8  ;;  %v2014_v59 = vmul.f32 0.5, %v2006_v21  ;;  %v3647_v53 = vld [vmem:[%s6415_s7 + $0x178] sm:$0xff]  ;;  %v4160_v32 = vld [vmem:[%s6415_s7 + $0x190] sm:$0xff] }
 0x34b   :  { %v2007_v58 = vadd.f32 %v4156_v14, %v1990_v50  ;;  %3620 = vst [vmem:[%s6415_s7 + $0xe0] sm:$0xff] %v1712_v52  ;;  %3636 = vst [vmem:[%s6415_s7 + $0x120] sm:$0xff] %v1736_v27  ;;  %v2227_v4 = vmax.f32 %v5716_v6, 0.0  ;;  %v5775_v10 = vadd.f32 %v2210_v46, %v4596_v51  ;;  %v5793_v57 = vadd.f32 %v2212_v48, %v4596_v51  ;;  %v4159_v27 = vld [vmem:[%s6415_s7 + $0x208] sm:$0xff]  ;;  %v4161_v7 = vld [vmem:[%s6415_s7 + $0x198] sm:$0xff] }
 0x34c   :  { %3652 = vst [vmem:[%s6415_s7 + $0x160] sm:$0xff] %v1760_v13  ;;  %v4079_v11 = vpop.eup %4078  ;;  %3621 = vst [vmem:[%s6415_s7 + $0xe8] sm:$0xff] %v1713_v56  ;;  %v2216_v3 = vpop.f32.mrb[60].mxu1  ;;  %v3964_v0 = vpack.c.bf16 %v2014_v59, %v5733_v26  ;;  %v2245_v20 = vadd.f32 %v4158_v61, %v2228_v9  ;;  %v4162_v48 = vld [vmem:[%s6415_s7 + $0x200] sm:$0xff] }
 0x34d   :  { %3637 = vst [vmem:[%s6415_s7 + $0x128] sm:$0xff] %v1737_v49  ;;  %3653 = vst [vmem:[%s6415_s7 + $0x168] sm:$0xff] %v1761_v16  ;;  %v2015_v34 = vmul.f32 0.5, %v2007_v58  ;;  %v1714_v44 = vmul.f32 %v4079_v11, %v3614_v12  ;;  %v1738_v62 = vmul.f32 %v4079_v11, %v1414_v2  ;;  %v1762_v45 = vmul.f32 %v4079_v11, %v3646_v55  ;;  %v2218_v40 = vpop.f32.mrb[61].mxu1  ;;  %v4163_v58 = vld [vmem:[%s6415_s7 + $0x210] sm:$0xff]  ;;  %v4164_v11 = vld [vmem:[%s6415_s7 + $0x218] sm:$0xff] }
 0x34e   :  { %v2244_v19 = vadd.f32 %v4157_v28, %v2227_v4  ;;  %v2229_v33 = vmax.f32 %v5775_v10, 0.0  ;;  %v2230_v2 = vmax.f32 %v5793_v57, 0.0  ;;  %v5826_v30 = vadd.f32 %v2216_v3, %v4598_v54  ;;  %v4165_v55 = vld [vmem:[%s6415_s7 + $0x1a0] sm:$0xff] }
 0x34f   :  { %v4081_v50 = vpop.eup %4080  ;;  %3622 = vst [vmem:[%s6415_s7 + $0xf0] sm:$0xff] %v1714_v44  ;;  %3638 = vst [vmem:[%s6415_s7 + $0x130] sm:$0xff] %v1738_v62  ;;  %v3962_v26 = vpack.c.bf16 %v2015_v34, %v2013_v37  ;;  %v5829_v24 = vadd.f32 %v2218_v40, %v4598_v54  ;;  %v2367_v13 = vadd.f32 %v4159_v27, %v2245_v20  ;;  %v4166_v34 = vld [vmem:[%s6415_s7 + $0x1a8] sm:$0xff]  ;;  %v4168_v20 = vld [vmem:[%s6415_s7 + $0x1b0] sm:$0xff] }
 0x350   :  { %3654 = vst [vmem:[%s6415_s7 + $0x170] sm:$0xff] %v1762_v45  ;;  %v1715_v23 = vmul.f32 %v4081_v50, %v3615_v60  ;;  %v1739_v46 = vmul.f32 %v4081_v50, %v1415_v41  ;;  %v1763_v17 = vmul.f32 %v4081_v50, %v3647_v53  ;;  %v2222_v52 = vpop.f32.mrb[62].mxu1  ;;  %v2246_v8 = vadd.f32 %v4160_v32, %v2229_v33  ;;  %v4169_v60 = vld [vmem:[%s6415_s7 + $0x1b8] sm:$0xff] }
 0x351   :  { %v2247_v31 = vadd.f32 %v4161_v7, %v2230_v2  ;;  %v2231_v41 = vmax.f32 %v5826_v30, 0.0  ;;  %3963 = vmatprep.subr.bf16.mxu1 %v3962_v26  ;;  %v2224_v21 = vpop.f32.mrb[63].mxu1  ;;  %v2366_v56 = vadd.f32 %v4162_v48, %v2244_v19  ;;  %v2232_v49 = vmax.f32 %v5829_v24, 0.0  ;;  %v4167_v19 = vld [vmem:[%s6415_s7 + $0x228] sm:$0xff]  ;;  %v4170_v26 = vld [vmem:[%s6415_s7 + $0x220] sm:$0xff]  ;;  %v4172_v27 = vld [vmem:[%s6415_s7 + $0x238] sm:$0xff] }
 0x352   :  { %3623 = vst [vmem:[%s6415_s7 + $0xf8] sm:$0xff] %v1715_v23  ;;  %3639 = vst [vmem:[%s6415_s7 + $0x138] sm:$0xff] %v1739_v46  ;;  %3965 = vmatpush1.bf16.msra.mxu1 %v3964_v0  ;;  %v5861_v16 = vadd.f32 %v2222_v52, %v4632_v22  ;;  %v5864_v14 = vadd.f32 %v2224_v21, %v4632_v22  ;;  %v2368_v59 = vadd.f32 %v4163_v58, %v2246_v8  ;;  %v3806_v8 = vld [vmem:[%s6408_s0 + $0x38] sm:$0x77] }
 0x353   :  { %3655 = vst [vmem:[%s6415_s7 + $0x178] sm:$0xff] %v1763_v17  ;;  %v2369_v12 = vadd.f32 %v4164_v11, %v2247_v31  ;;  %v2248_v37 = vadd.f32 %v4165_v55, %v2231_v41  ;;  %v2249_v3 = vadd.f32 %v4166_v34, %v2232_v49  ;;  %v2375_v45 = vmul.f32 0.33333334, %v2367_v13  ;;  %v4171_v17 = vld [vmem:[%s6415_s7 + $0x230] sm:$0xff]  ;;  %v5924_v55 = vld [vmem:[#allocation4 + $0x18] sm:$0xff] }
 0x354   :  { %v2233_v44 = vmax.f32 %v5861_v16, 0.0  ;;  %v2234_v62 = vmax.f32 %v5864_v14, 0.0  ;;  %v2376_v0 = vmul.f32 0.33333334, %v2368_v59  ;;  %v2374_v28 = vmul.f32 0.33333334, %v2366_v56 }
 0x355   :  { %v2377_v40 = vmul.f32 0.33333334, %v2369_v12  ;;  %v2371_v61 = vadd.f32 %v4167_v19, %v2249_v3  ;;  %v2370_v23 = vadd.f32 %v4170_v26, %v2248_v37  ;;  %v2708_v58 = vcombine.high %v3806_v8, %v3806_v8  ;;  %v3836_v11 = vld [vmem:[%s6409_s1 + $0x50] sm:$0x77] }
 0x356   :  { %v2250_v50 = vadd.f32 %v4168_v20, %v2233_v44  ;;  %v2251_v53 = vadd.f32 %v4169_v60, %v2234_v62  ;;  %v3968_v32 = vpack.c.bf16 %v2376_v0, %v2374_v28  ;;  %v2952_v12 = vcombine.high %v3836_v11, %v3836_v11 }
 0x357   :  { %v3966_v46 = vpack.c.bf16 %v2377_v40, %v2375_v45  ;;  %v2379_v7 = vmul.f32 0.33333334, %v2371_v61  ;;  %v2378_v48 = vmul.f32 0.33333334, %v2370_v23 }
 0x358   :  { %v2372_v52 = vadd.f32 %v4171_v17, %v2250_v50  ;;  %v2373_v13 = vadd.f32 %v4172_v27, %v2251_v53 }
 0x359   :  { %3967 = vmatprep.subr.bf16.mxu1 %v3966_v46 }
 0x35a   :  { %v2380_v31 = vmul.f32 0.33333334, %v2372_v52  ;;  %v2381_v21 = vmul.f32 0.33333334, %v2373_v13  ;;  %3969 = vmatpush1.bf16.msra.mxu1 %v3968_v32 }
 0x35c   :  { %v3970_v56 = vpack.c.bf16 %v2381_v21, %v2379_v7  ;;  %v3972_v59 = vpack.c.bf16 %v2380_v31, %v2378_v48 }
 0x35e   :  { %3971 = vmatprep.subr.bf16.mxu1 %v3970_v56 }
 0x35f   :  { %3973 = vmatpush1.bf16.msra.mxu1 %v3972_v59 }
 0x360   :  { %3807 = vmatprep.subr.msk.mxu1 %vm105_vm0, %v2708_v58 }
 0x362   :  { %3731 = vmatmul.mubr.msk.f32.vlgmr.msra.gmra.mrb[64].mxu1 %vm731_vm2, %v5555_v38 }
 0x363   :  { %3808 = vmatpush1.msk.msra.mxu1 %vm105_vm0, %v3806_v8  ;;  %2452 = vmatprep.mubr.f32.mxu1 %v6564_v29 }
 0x364   :  { %3837 = vmatprep.subr.msk.mxu1 %vm105_vm0, %v2952_v12 }
 0x366   :  { %3732 = vmatmul.mubr.msk.f32.gmra.mrb[66].mxu1 %vm731_vm2, %v5562_v39 }
 0x367   :  { %2458 = vmatprep.mubr.f32.mxu1 %v6564_v29 }
 0x36a   :  { %3733 = vmatmul.mubr.msk.f32.gmra.mrb[68].mxu1 %vm731_vm2, %v5567_v35 }
 0x36b   :  { %2464 = vmatprep.mubr.f32.mxu1 %v6564_v29 }
 0x36e   :  { %3734 = vmatmul.mubr.msk.f32.gmra.mrb[70].mxu1 %vm731_vm2, %v5924_v55 }
 0x36f   :  { %2777 = vmatprep.mubr.f32.mxu1 %v6564_v29 }
 0x372   :  { %3809 = vmatmul.mubr.msk.f32.vlgmr.msra.gmra.mrb[72].mxu1 %vm92_vm1, %v5575_v36 }
 0x373   :  { %3838 = vmatpush1.msk.msra.mxu1 %vm105_vm0, %v3836_v11  ;;  %2783 = vmatprep.mubr.f32.mxu1 %v6564_v29 }
 0x376   :  { %3810 = vmatmul.mubr.msk.f32.gmra.mrb[74].mxu1 %vm92_vm1, %v5581_v43 }
 0x377   :  { %2789 = vmatprep.mubr.f32.mxu1 %v6564_v29 }
 0x37a   :  { %3811 = vmatmul.mubr.msk.f32.gmra.mrb[76].mxu1 %vm92_vm1, %v5586_v5 }
 0x37b   :  { %2795 = vmatprep.mubr.f32.mxu1 %v6564_v29 }
 0x37e   :  { %3812 = vmatmul.mubr.msk.f32.gmra.mrb[78].mxu1 %vm92_vm1, %v5591_v1 }
 0x37f   :  { %3021 = vmatprep.mubr.f32.mxu1 %v6564_v29 }
 0x382   :  { %3839 = vmatmul.mubr.msk.f32.vlgmr.msra.gmra.mrb[80].mxu1 %vm92_vm1, %v5575_v36 }
 0x383   :  { %3027 = vmatprep.mubr.f32.mxu1 %v6564_v29 }
 0x386   :  { %3840 = vmatmul.mubr.msk.f32.gmra.mrb[82].mxu1 %vm92_vm1, %v5581_v43 }
 0x387   :  { %3033 = vmatprep.mubr.f32.mxu1 %v6564_v29 }
 0x38a   :  { %3841 = vmatmul.mubr.msk.f32.gmra.mrb[84].mxu1 %vm92_vm1, %v5586_v5 }
 0x38b   :  { %3039 = vmatprep.mubr.f32.mxu1 %v6564_v29 }
 0x38e   :  { %3842 = vmatmul.mubr.msk.f32.gmra.mrb[86].mxu1 %vm92_vm1, %v5591_v1 }
 0x38f   :  { %3265 = vmatprep.mubr.f32.mxu1 %v6564_v29 }
 0x435   :  { %v2448_v38 = vpop.f32.mrb[64].mxu1 }
 0x436   :  { %v2449_v39 = vadd.f32 %v2448_v38, %v6566_v18  ;;  %v2450_v35 = vpop.f32.mrb[65].mxu1 }
 0x437   :  { %v2451_v36 = vadd.f32 %v2450_v35, %v6566_v18 }
 0x438   :  { %v3735_v37 = vmul.f32 -1.442695, %v2449_v39 }
 0x439   :  { %v3736_v43 = vmul.f32 -1.442695, %v2451_v36  ;;  %v2454_v34 = vpop.f32.mrb[66].mxu1 }
 0x43a   :  { %4082 = vpow2.f32 %v3735_v37  ;;  %v2455_v3 = vadd.f32 %v2454_v34, %v6567_v47  ;;  %v2456_v5 = vpop.f32.mrb[67].mxu1 }
 0x43b   :  { %4084 = vpow2.f32 %v3736_v43  ;;  %v2457_v45 = vadd.f32 %v2456_v5, %v6567_v47  ;;  %v4174_v43 = vld [vmem:[%s6414_s6 + $0x180] sm:$0xff] }
 0x43c   :  { %v3737_v0 = vmul.f32 -1.442695, %v2455_v3 }
 0x43d   :  { %v3738_v1 = vmul.f32 -1.442695, %v2457_v45  ;;  %v2460_v40 = vpop.f32.mrb[68].mxu1 }
 0x43e   :  { %4086 = vpow2.f32 %v3737_v0  ;;  %v2461_v28 = vadd.f32 %v2460_v40, %v6568_v15  ;;  %v2462_v19 = vpop.f32.mrb[69].mxu1  ;;  %v4175_v0 = vld [vmem:[%s6414_s6 + $0x188] sm:$0xff] }
 0x43f   :  { %4088 = vpow2.f32 %v3738_v1  ;;  %v2463_v61 = vadd.f32 %v2462_v19, %v6568_v15 }
 0x440   :  { %v3739_v20 = vmul.f32 -1.442695, %v2461_v28 }
 0x441   :  { %v3740_v50 = vmul.f32 -1.442695, %v2463_v61  ;;  %v2466_v60 = vpop.f32.mrb[70].mxu1  ;;  %v4176_v61 = vld [vmem:[%s6414_s6 + $0x190] sm:$0xff] }
 0x442   :  { %4090 = vpow2.f32 %v3739_v20  ;;  %v2467_v53 = vadd.f32 %v2466_v60, %v6569_v25  ;;  %v2468_v26 = vpop.f32.mrb[71].mxu1 }
 0x443   :  { %4092 = vpow2.f32 %v3740_v50  ;;  %v2469_v23 = vadd.f32 %v2468_v26, %v6569_v25 }
 0x444   :  { %v4083_v46 = vpop.eup %4082  ;;  %v3741_v17 = vmul.f32 -1.442695, %v2467_v53  ;;  %v4177_v53 = vld [vmem:[%s6414_s6 + $0x198] sm:$0xff] }
 0x445   :  { %v4085_v52 = vpop.eup %4084  ;;  %v2495_v27 = vadd.f32 1.0, %v4083_v46  ;;  %v3742_v13 = vmul.f32 -1.442695, %v2469_v23  ;;  %v2779_v32 = vpop.f32.mrb[72].mxu1 }
 0x446   :  { %v2496_v8 = vadd.f32 1.0, %v4085_v52  ;;  %4094 = vpow2.f32 %v3741_v17  ;;  %v2780_v7 = vadd.f32 %v2779_v32, %v4590_v42  ;;  %v2781_v31 = vpop.f32.mrb[73].mxu1  ;;  %v3743_v17 = vld [vmem:[%s6415_s7 + $0x180] sm:$0xff] }
 0x447   :  { %4096 = vrcp.f32 %v2495_v27  ;;  %v2782_v21 = vadd.f32 %v2781_v31, %v4590_v42 }
 0x448   :  { %v4087_v48 = vpop.eup %4086  ;;  %4098 = vrcp.f32 %v2496_v8  ;;  %v2802_v56 = vmax.f32 %v2780_v7, 0.0  ;;  %v3775_v8 = vld [vmem:[%s6415_s7 + $0x200] sm:$0xff] }
 0x449   :  { %v4089_v58 = vpop.eup %4088  ;;  %v2497_v59 = vadd.f32 1.0, %v4087_v48  ;;  %4100 = vpow2.f32 %v3742_v13  ;;  %v2803_v11 = vmax.f32 %v2782_v21, 0.0  ;;  %v2785_v12 = vpop.f32.mrb[74].mxu1 }
 0x44a   :  { %v2498_v38 = vadd.f32 1.0, %v4089_v58  ;;  %3813 = vst [vmem:[%s6414_s6 + $0x1c0] sm:$0xff] %v2802_v56  ;;  %v2786_v39 = vadd.f32 %v2785_v12, %v4596_v51  ;;  %v2787_v35 = vpop.f32.mrb[75].mxu1  ;;  %v2819_v34 = vadd.f32 %v4174_v43, %v2802_v56 }
 0x44b   :  { %4102 = vrcp.f32 %v2497_v59  ;;  %3814 = vst [vmem:[%s6414_s6 + $0x1c8] sm:$0xff] %v2803_v11  ;;  %v2788_v36 = vadd.f32 %v2787_v35, %v4596_v51  ;;  %v2820_v1 = vadd.f32 %v4175_v0, %v2803_v11 }
 0x44c   :  { %v4091_v37 = vpop.eup %4090  ;;  %4104 = vrcp.f32 %v2498_v38  ;;  %v2804_v3 = vmax.f32 %v2786_v39, 0.0  ;;  %v2827_v52 = vmul.f32 0.5, %v2819_v34  ;;  %v3744_v38 = vld [vmem:[%s6415_s7 + $0x188] sm:$0xff] }
 0x44d   :  { %v4093_v5 = vpop.eup %4092  ;;  %v2499_v45 = vadd.f32 1.0, %v4091_v37  ;;  %v2805_v40 = vmax.f32 %v2788_v36, 0.0  ;;  %v2791_v28 = vpop.f32.mrb[76].mxu1  ;;  %v2828_v31 = vmul.f32 0.5, %v2820_v1  ;;  %v3776_v39 = vld [vmem:[%s6415_s7 + $0x208] sm:$0xff] }
 0x44e   :  { %v2500_v19 = vadd.f32 1.0, %v4093_v5  ;;  %3815 = vst [vmem:[%s6414_s6 + $0x1d0] sm:$0xff] %v2804_v3  ;;  %v2821_v20 = vadd.f32 %v4176_v61, %v2804_v3  ;;  %v2792_v50 = vadd.f32 %v2791_v28, %v4598_v54  ;;  %v2793_v60 = vpop.f32.mrb[77].mxu1  ;;  %v3745_v3 = vld [vmem:[%s6415_s7 + $0x190] sm:$0xff] }
 0x44f   :  { %4106 = vrcp.f32 %v2499_v45  ;;  %3816 = vst [vmem:[%s6414_s6 + $0x1d8] sm:$0xff] %v2805_v40  ;;  %v2822_v26 = vadd.f32 %v4177_v53, %v2805_v40  ;;  %v5992_v23 = vadd.f32 %v2793_v60, %v4598_v54  ;;  %v3777_v5 = vld [vmem:[%s6415_s7 + $0x210] sm:$0xff]  ;;  %v4178_v45 = vld [vmem:[%s6414_s6 + $0x1a0] sm:$0xff]  ;;  %v3746_v60 = vld [vmem:[%s6415_s7 + $0x198] sm:$0xff] }
 0x450   :  { %v4095_v46 = vpop.eup %4094  ;;  %4108 = vrcp.f32 %v2500_v19  ;;  %v2829_v27 = vmul.f32 0.5, %v2821_v20  ;;  %v2806_v13 = vmax.f32 %v2792_v50, 0.0  ;;  %v3778_v53 = vld [vmem:[%s6415_s7 + $0x218] sm:$0xff] }
 0x451   :  { %v4097_v32 = vpop.eup %4096  ;;  %v2501_v7 = vadd.f32 1.0, %v4095_v46  ;;  %v2830_v21 = vmul.f32 0.5, %v2822_v26  ;;  %v2807_v48 = vmax.f32 %v5992_v23, 0.0  ;;  %v2797_v56 = vpop.f32.mrb[78].mxu1 }
 0x452   :  { %v4099_v58 = vpop.eup %4098  ;;  %v2527_v59 = vmul.f32 %v4097_v32, %v3743_v17  ;;  %v2551_v11 = vmul.f32 %v4097_v32, %v2227_v4  ;;  %v2575_v12 = vmul.f32 %v4097_v32, %v3775_v8  ;;  %v3976_v35 = vpack.c.bf16 %v2829_v27, %v2827_v52  ;;  %3817 = vst [vmem:[%s6414_s6 + $0x1e0] sm:$0xff] %v2806_v13  ;;  %v2799_v36 = vpop.f32.mrb[79].mxu1  ;;  %v3779_v27 = vld [vmem:[%s6415_s7 + $0x220] sm:$0xff]  ;;  %v4179_v32 = vld [vmem:[%s6414_s6 + $0x1a8] sm:$0xff] }
 0x453   :  { %v4101_v37 = vpop.eup %4100  ;;  %v2528_v43 = vmul.f32 %v4099_v58, %v3744_v38  ;;  %v2552_v6 = vmul.f32 %v4099_v58, %v2228_v9  ;;  %v2576_v4 = vmul.f32 %v4099_v58, %v3776_v39  ;;  %4110 = vrcp.f32 %v2501_v7  ;;  %3818 = vst [vmem:[%s6414_s6 + $0x1e8] sm:$0xff] %v2807_v48 }
 0x454   :  { %3751 = vst [vmem:[%s6415_s7 + $0x180] sm:$0xff] %v2527_v59  ;;  %3767 = vst [vmem:[%s6415_s7 + $0x1c0] sm:$0xff] %v2551_v11  ;;  %v2502_v63 = vadd.f32 1.0, %v4101_v37  ;;  %v2798_v9 = vadd.f32 %v2797_v56, %v4632_v22  ;;  %v2823_v0 = vadd.f32 %v4178_v45, %v2806_v13  ;;  %v2800_v1 = vadd.f32 %v2799_v36, %v4632_v22  ;;  %v3748_v11 = vld [vmem:[%s6415_s7 + $0x1a8] sm:$0xff] }
 0x455   :  { %3783 = vst [vmem:[%s6415_s7 + $0x200] sm:$0xff] %v2575_v12  ;;  %v4103_v34 = vpop.eup %4102  ;;  %3752 = vst [vmem:[%s6415_s7 + $0x188] sm:$0xff] %v2528_v43  ;;  %v3023_v40 = vpop.f32.mrb[80].mxu1  ;;  %v3974_v28 = vpack.c.bf16 %v2830_v21, %v2828_v31  ;;  %v2824_v8 = vadd.f32 %v4179_v32, %v2807_v48  ;;  %v3780_v12 = vld [vmem:[%s6415_s7 + $0x228] sm:$0xff] }
 0x456   :  { %3768 = vst [vmem:[%s6415_s7 + $0x1c8] sm:$0xff] %v2552_v6  ;;  %3784 = vst [vmem:[%s6415_s7 + $0x208] sm:$0xff] %v2576_v4  ;;  %v4105_v19 = vpop.eup %4104  ;;  %v2529_v61 = vmul.f32 %v4103_v34, %v3745_v3  ;;  %v2553_v20 = vmul.f32 %v4103_v34, %v2229_v33  ;;  %v2577_v50 = vmul.f32 %v4103_v34, %v3777_v5  ;;  %4112 = vrcp.f32 %v2502_v63  ;;  %v3025_v26 = vpop.f32.mrb[81].mxu1  ;;  %v3749_v4 = vld [vmem:[%s6415_s7 + $0x1b0] sm:$0xff] }
 0x457   :  { %v2530_v23 = vmul.f32 %v4105_v19, %v3746_v60  ;;  %v2554_v46 = vmul.f32 %v4105_v19, %v2230_v2  ;;  %v2578_v17 = vmul.f32 %v4105_v19, %v3778_v53  ;;  %3975 = vmatprep.subr.bf16.mxu1 %v3974_v28  ;;  %v2808_v10 = vmax.f32 %v2798_v9, 0.0  ;;  %v3747_v2 = vld [vmem:[%s6415_s7 + $0x1a0] sm:$0xff]  ;;  %v3781_v63 = vld [vmem:[%s6415_s7 + $0x230] sm:$0xff]  ;;  %v3750_v60 = vld [vmem:[%s6415_s7 + $0x1b8] sm:$0xff] }
 0x458   :  { %3753 = vst [vmem:[%s6415_s7 + $0x190] sm:$0xff] %v2529_v61  ;;  %3769 = vst [vmem:[%s6415_s7 + $0x1d0] sm:$0xff] %v2553_v20  ;;  %v2809_v33 = vmax.f32 %v2800_v1, 0.0  ;;  %v6066_v52 = vadd.f32 %v3023_v40, %v4590_v42  ;;  %3977 = vmatpush1.bf16.msra.mxu1 %v3976_v35  ;;  %v6083_v13 = vmul.f32 0.5, %v2823_v0  ;;  %v6089_v7 = vadd.f32 %v3025_v26, %v4590_v42  ;;  %v4180_v42 = vld [vmem:[%s6414_s6 + $0x1b0] sm:$0xff]  ;;  %v4181_v35 = vld [vmem:[%s6414_s6 + $0x1b8] sm:$0xff] }
 0x459   :  { %3785 = vst [vmem:[%s6415_s7 + $0x210] sm:$0xff] %v2577_v50  ;;  %v4107_v57 = vpop.eup %4106  ;;  %3754 = vst [vmem:[%s6415_s7 + $0x198] sm:$0xff] %v2530_v23  ;;  %v3029_v31 = vpop.f32.mrb[82].mxu1  ;;  %v2825_v48 = vadd.f32 %v4180_v42, %v2808_v10  ;;  %v2832_v9 = vmul.f32 0.5, %v2824_v8  ;;  %v4182_v19 = vld [vmem:[%s6415_s7 + $0x240] sm:$0xff]  ;;  %v3782_v53 = vld [vmem:[%s6415_s7 + $0x238] sm:$0xff] }
 0x45a   :  { %3770 = vst [vmem:[%s6415_s7 + $0x1d8] sm:$0xff] %v2554_v46  ;;  %3786 = vst [vmem:[%s6415_s7 + $0x218] sm:$0xff] %v2578_v17  ;;  %v4109_v21 = vpop.eup %4108  ;;  %v2531_v56 = vmul.f32 %v4107_v57, %v3747_v2  ;;  %v2555_v58 = vmul.f32 %v4107_v57, %v2231_v41  ;;  %v2579_v59 = vmul.f32 %v4107_v57, %v3779_v27  ;;  %v3031_v30 = vpop.f32.mrb[83].mxu1  ;;  %v3047_v37 = vmax.f32 %v6089_v7, 0.0  ;;  %v4184_v2 = vld [vmem:[%s6415_s7 + $0x2c8] sm:$0xff]  ;;  %v4189_v42 = vld [vmem:[%s6415_s7 + $0x2d8] sm:$0xff] }
 0x45b   :  { %3819 = vst [vmem:[%s6414_s6 + $0x1f0] sm:$0xff] %v2808_v10  ;;  %3820 = vst [vmem:[%s6414_s6 + $0x1f8] sm:$0xff] %v2809_v33  ;;  %v2532_v41 = vmul.f32 %v4109_v21, %v3748_v11  ;;  %v2556_v38 = vmul.f32 %v4109_v21, %v2232_v49  ;;  %v2580_v39 = vmul.f32 %v4109_v21, %v3780_v12  ;;  %v2833_v24 = vmul.f32 0.5, %v2825_v48  ;;  %v4188_v11 = vld [vmem:[%s6415_s7 + $0x2d0] sm:$0xff] }
 0x45c   :  { %v2826_v36 = vadd.f32 %v4181_v35, %v2809_v33  ;;  %3755 = vst [vmem:[%s6415_s7 + $0x1a0] sm:$0xff] %v2531_v56  ;;  %3771 = vst [vmem:[%s6415_s7 + $0x1e0] sm:$0xff] %v2555_v58  ;;  %v3046_v49 = vmax.f32 %v6066_v52, 0.0  ;;  %v6125_v43 = vadd.f32 %v3029_v31, %v4596_v51  ;;  %v6143_v3 = vadd.f32 %v3031_v30, %v4596_v51  ;;  %v4183_v51 = vld [vmem:[%s6415_s7 + $0x248] sm:$0xff]  ;;  %v4187_v31 = vld [vmem:[%s6415_s7 + $0x2c0] sm:$0xff] }
 0x45d   :  { %3787 = vst [vmem:[%s6415_s7 + $0x220] sm:$0xff] %v2579_v59  ;;  %v4111_v6 = vpop.eup %4110  ;;  %3756 = vst [vmem:[%s6415_s7 + $0x1a8] sm:$0xff] %v2532_v41  ;;  %v3035_v5 = vpop.f32.mrb[84].mxu1  ;;  %v3980_v40 = vpack.c.bf16 %v2833_v24, %v6083_v13  ;;  %v3064_v20 = vadd.f32 %v4183_v51, %v3047_v37  ;;  %v4185_v13 = vld [vmem:[%s6415_s7 + $0x250] sm:$0xff]  ;;  %v4190_v30 = vld [vmem:[%s6415_s7 + $0x260] sm:$0xff] }
 0x45e   :  { %3772 = vst [vmem:[%s6415_s7 + $0x1e8] sm:$0xff] %v2556_v38  ;;  %3788 = vst [vmem:[%s6415_s7 + $0x228] sm:$0xff] %v2580_v39  ;;  %v2834_v34 = vmul.f32 0.5, %v2826_v36  ;;  %v2533_v45 = vmul.f32 %v4111_v6, %v3749_v4  ;;  %v2557_v0 = vmul.f32 %v4111_v6, %v2233_v44  ;;  %v2581_v1 = vmul.f32 %v4111_v6, %v3781_v63  ;;  %v3037_v28 = vpop.f32.mrb[85].mxu1  ;;  %v4192_v63 = vld [vmem:[%s6415_s7 + $0x2e8] sm:$0xff]  ;;  %v4197_v51 = vld [vmem:[%s6415_s7 + $0x2f8] sm:$0xff] }
 0x45f   :  { %v3063_v61 = vadd.f32 %v4182_v19, %v3046_v49  ;;  %v3048_v16 = vmax.f32 %v6125_v43, 0.0  ;;  %v3049_v44 = vmax.f32 %v6143_v3, 0.0  ;;  %v6176_v26 = vadd.f32 %v3035_v5, %v4598_v54  ;;  %v4196_v19 = vld [vmem:[%s6415_s7 + $0x2f0] sm:$0xff]  ;;  %v3882_v3 = vld [vmem:[%s6415_s7 + $0x260] sm:$0xff] }
 0x460   :  { %v4113_v50 = vpop.eup %4112  ;;  %3757 = vst [vmem:[%s6415_s7 + $0x1b0] sm:$0xff] %v2533_v45  ;;  %3773 = vst [vmem:[%s6415_s7 + $0x1f0] sm:$0xff] %v2557_v0  ;;  %v3978_v23 = vpack.c.bf16 %v2834_v34, %v2832_v9  ;;  %v6179_v46 = vadd.f32 %v3037_v28, %v4598_v54  ;;  %v3186_v27 = vadd.f32 %v4184_v2, %v3064_v20  ;;  %v4186_v54 = vld [vmem:[%s6415_s7 + $0x258] sm:$0xff]  ;;  %v4193_v34 = vld [vmem:[%s6415_s7 + $0x270] sm:$0xff] }
 0x461   :  { %3789 = vst [vmem:[%s6415_s7 + $0x230] sm:$0xff] %v2581_v1  ;;  %v2534_v17 = vmul.f32 %v4113_v50, %v3750_v60  ;;  %v2558_v10 = vmul.f32 %v4113_v50, %v2234_v62  ;;  %v2582_v33 = vmul.f32 %v4113_v50, %v3782_v53  ;;  %v3041_v57 = vpop.f32.mrb[86].mxu1  ;;  %v3065_v32 = vadd.f32 %v4185_v13, %v3048_v16  ;;  %v4194_v45 = vld [vmem:[%s6415_s7 + $0x278] sm:$0xff]  ;;  %v4195_v1 = vld [vmem:[%s6415_s7 + $0x2e0] sm:$0xff]  ;;  %v4199_v2 = vld [vmem:[#allocation4 + $0x8] sm:$0xff] }
 0x462   :  { %v3066_v14 = vadd.f32 %v4186_v54, %v3049_v44  ;;  %v3050_v62 = vmax.f32 %v6176_v26, 0.0  ;;  %3979 = vmatprep.subr.bf16.mxu1 %v3978_v23  ;;  %v3043_v8 = vpop.f32.mrb[87].mxu1  ;;  %v3185_v21 = vadd.f32 %v4187_v31, %v3063_v61  ;;  %v3051_v56 = vmax.f32 %v6179_v46, 0.0  ;;  %v3880_v7 = vld [vmem:[%s6415_s7 + $0x250] sm:$0xff] }
 0x463   :  { %3758 = vst [vmem:[%s6415_s7 + $0x1b8] sm:$0xff] %v2534_v17  ;;  %3774 = vst [vmem:[%s6415_s7 + $0x1f8] sm:$0xff] %v2558_v10  ;;  %3981 = vmatpush1.bf16.msra.mxu1 %v3980_v40  ;;  %v6211_v58 = vadd.f32 %v3041_v57, %v4632_v22  ;;  %v6214_v59 = vadd.f32 %v3043_v8, %v4632_v22  ;;  %v3187_v12 = vadd.f32 %v4188_v11, %v3065_v32  ;;  %v4191_v22 = vld [vmem:[%s6415_s7 + $0x268] sm:$0xff]  ;;  %v4198_v57 = vld [vmem:[#allocation4] sm:$0xff] }
 0x464   :  { %3790 = vst [vmem:[%s6415_s7 + $0x238] sm:$0xff] %v2582_v33  ;;  %v3188_v48 = vadd.f32 %v4189_v42, %v3066_v14  ;;  %v3067_v41 = vadd.f32 %v4190_v30, %v3050_v62  ;;  %v3068_v38 = vadd.f32 %v4191_v22, %v3051_v56  ;;  %v3194_v36 = vmul.f32 0.33333334, %v3186_v27  ;;  %v4200_v27 = vld [vmem:[#allocation4 + $0x10] sm:$0xff] }
 0x465   :  { %v3052_v39 = vmax.f32 %v6211_v58, 0.0  ;;  %v3053_v35 = vmax.f32 %v6214_v59, 0.0  ;;  %v3195_v24 = vmul.f32 0.33333334, %v3187_v12  ;;  %v3193_v4 = vmul.f32 0.33333334, %v3185_v21 }
 0x466   :  { %v3196_v6 = vmul.f32 0.33333334, %v3188_v48  ;;  %v3190_v9 = vadd.f32 %v4192_v63, %v3068_v38  ;;  %v3189_v40 = vadd.f32 %v4195_v1, %v3067_v41  ;;  %v3884_v46 = vld [vmem:[%s6415_s7 + $0x270] sm:$0xff]  ;;  %v3917_v58 = vld [vmem:[%s6415_s7 + $0x2f8] sm:$0xff] }
 0x467   :  { %v3069_v5 = vadd.f32 %v4193_v34, %v3052_v39  ;;  %v3070_v0 = vadd.f32 %v4194_v45, %v3053_v35  ;;  %v3984_v50 = vpack.c.bf16 %v3195_v24, %v3193_v4 }
 0x468   :  { %v3982_v28 = vpack.c.bf16 %v3196_v6, %v3194_v36  ;;  %v3198_v60 = vmul.f32 0.33333334, %v3190_v9  ;;  %v3197_v17 = vmul.f32 0.33333334, %v3189_v40 }
 0x469   :  { %v3191_v61 = vadd.f32 %v4196_v19, %v3069_v5  ;;  %v3192_v20 = vadd.f32 %v4197_v51, %v3070_v0 }
 0x46a   :  { %3983 = vmatprep.subr.bf16.mxu1 %v3982_v28 }
 0x46b   :  { %v3199_v53 = vmul.f32 0.33333334, %v3191_v61  ;;  %v3200_v23 = vmul.f32 0.33333334, %v3192_v20  ;;  %3985 = vmatpush1.bf16.msra.mxu1 %v3984_v50  ;;  %v3878_v50 = vld [vmem:[%s6415_s7 + $0x240] sm:$0xff] }
 0x46d   :  { %v3986_v10 = vpack.c.bf16 %v3200_v23, %v3198_v60  ;;  %v3988_v33 = vpack.c.bf16 %v3199_v53, %v3197_v17  ;;  %v3910_v60 = vld [vmem:[%s6415_s7 + $0x2c0] sm:$0xff] }
 0x46f   :  { %3987 = vmatprep.subr.bf16.mxu1 %v3986_v10 }
 0x470   :  { %3989 = vmatpush1.bf16.msra.mxu1 %v3988_v33 }
 0x473   :  { %3866 = vmatmul.mubr.msk.f32.vlgmr.msra.gmra.mrb[88].mxu1 %vm731_vm2, %v4198_v57  ;;  %v3879_v57 = vld [vmem:[%s6415_s7 + $0x248] sm:$0xff] }
 0x474   :  { %3271 = vmatprep.mubr.f32.mxu1 %v6564_v29 }
 0x477   :  { %3867 = vmatmul.mubr.msk.f32.gmra.mrb[90].mxu1 %vm731_vm2, %v4199_v2  ;;  %v3911_v2 = vld [vmem:[%s6415_s7 + $0x2c8] sm:$0xff] }
 0x478   :  { %3277 = vmatprep.mubr.f32.mxu1 %v6564_v29 }
 0x47b   :  { %3868 = vmatmul.mubr.msk.f32.gmra.mrb[92].mxu1 %vm731_vm2, %v4200_v27 }
 0x47c   :  { %3283 = vmatprep.mubr.f32.mxu1 %v6564_v29 }
 0x47f   :  { %3869 = vmatmul.mubr.msk.f32.gmra.mrb[94].mxu1 %vm731_vm2, %v5924_v55 }
 0x546   :  { %v3267_v13 = vpop.f32.mrb[88].mxu1 }
 0x547   :  { %v3268_v32 = vadd.f32 %v3267_v13, %v6566_v18  ;;  %v3269_v54 = vpop.f32.mrb[89].mxu1 }
 0x548   :  { %v3270_v14 = vadd.f32 %v3269_v54, %v6566_v18 }
 0x549   :  { %v3870_v8 = vmul.f32 -1.442695, %v3268_v32 }
 0x54a   :  { %v3871_v31 = vmul.f32 -1.442695, %v3270_v14  ;;  %v3273_v21 = vpop.f32.mrb[90].mxu1 }
 0x54b   :  { %4114 = vpow2.f32 %v3870_v8  ;;  %v3274_v11 = vadd.f32 %v3273_v21, %v6567_v47  ;;  %v3275_v12 = vpop.f32.mrb[91].mxu1 }
 0x54c   :  { %4116 = vpow2.f32 %v3871_v31  ;;  %v3276_v42 = vadd.f32 %v3275_v12, %v6567_v47  ;;  %v3913_v12 = vld [vmem:[%s6415_s7 + $0x2d8] sm:$0xff] }
 0x54d   :  { %v3872_v29 = vmul.f32 -1.442695, %v3274_v11  ;;  %v3881_v11 = vld [vmem:[%s6415_s7 + $0x258] sm:$0xff] }
 0x54e   :  { %v3873_v48 = vmul.f32 -1.442695, %v3276_v42  ;;  %v3279_v30 = vpop.f32.mrb[92].mxu1 }
 0x54f   :  { %4118 = vpow2.f32 %v3872_v29  ;;  %v3280_v55 = vadd.f32 %v3279_v30, %v6568_v15  ;;  %v3281_v41 = vpop.f32.mrb[93].mxu1 }
 0x550   :  { %4120 = vpow2.f32 %v3873_v48  ;;  %v3282_v18 = vadd.f32 %v3281_v41, %v6568_v15 }
 0x551   :  { %v3874_v22 = vmul.f32 -1.442695, %v3280_v55 }
 0x552   :  { %v3875_v38 = vmul.f32 -1.442695, %v3282_v18  ;;  %v3285_v36 = vpop.f32.mrb[94].mxu1  ;;  %v3883_v18 = vld [vmem:[%s6415_s7 + $0x268] sm:$0xff] }
 0x553   :  { %4122 = vpow2.f32 %v3874_v22  ;;  %v3286_v24 = vadd.f32 %v3285_v36, %v6569_v25  ;;  %v3287_v6 = vpop.f32.mrb[95].mxu1  ;;  %v3915_v22 = vld [vmem:[%s6415_s7 + $0x2e8] sm:$0xff] }
 0x554   :  { %4124 = vpow2.f32 %v3875_v38  ;;  %v3288_v47 = vadd.f32 %v3287_v6, %v6569_v25 }
 0x555   :  { %v4115_v4 = vpop.eup %4114  ;;  %v3876_v63 = vmul.f32 -1.442695, %v3286_v24 }
 0x556   :  { %v4117_v9 = vpop.eup %4116  ;;  %v3314_v34 = vadd.f32 1.0, %v4115_v4  ;;  %v3877_v5 = vmul.f32 -1.442695, %v3288_v47 }
 0x557   :  { %v3315_v45 = vadd.f32 1.0, %v4117_v9  ;;  %4126 = vpow2.f32 %v3876_v63  ;;  %v3885_v63 = vld [vmem:[%s6415_s7 + $0x278] sm:$0xff] }
 0x558   :  { %4128 = vrcp.f32 %v3314_v34 }
 0x559   :  { %v4119_v0 = vpop.eup %4118  ;;  %4130 = vrcp.f32 %v3315_v45 }
 0x55a   :  { %v4121_v15 = vpop.eup %4120  ;;  %v3316_v1 = vadd.f32 1.0, %v4119_v0  ;;  %4132 = vpow2.f32 %v3877_v5 }
 0x55b   :  { %v3317_v40 = vadd.f32 1.0, %v4121_v15 }
 0x55c   :  { %4134 = vrcp.f32 %v3316_v1 }
 0x55d   :  { %v4123_v28 = vpop.eup %4122  ;;  %4136 = vrcp.f32 %v3317_v40 }
 0x55e   :  { %v4125_v19 = vpop.eup %4124  ;;  %v3318_v61 = vadd.f32 1.0, %v4123_v28 }
 0x55f   :  { %v3319_v25 = vadd.f32 1.0, %v4125_v19 }
 0x560   :  { %4138 = vrcp.f32 %v3318_v61 }
 0x561   :  { %v4127_v51 = vpop.eup %4126  ;;  %4140 = vrcp.f32 %v3319_v25 }
 0x562   :  { %v4129_v20 = vpop.eup %4128  ;;  %v3320_v53 = vadd.f32 1.0, %v4127_v51 }
 0x563   :  { %v4131_v23 = vpop.eup %4130  ;;  %v3346_v17 = vmul.f32 %v4129_v20, %v3878_v50  ;;  %v3370_v10 = vmul.f32 %v4129_v20, %v3046_v49  ;;  %v3394_v33 = vmul.f32 %v4129_v20, %v3910_v60 }
 0x564   :  { %v4133_v27 = vpop.eup %4132  ;;  %v3347_v13 = vmul.f32 %v4131_v23, %v3879_v57  ;;  %v3371_v32 = vmul.f32 %v4131_v23, %v3047_v37  ;;  %v3395_v54 = vmul.f32 %v4131_v23, %v3911_v2  ;;  %4142 = vrcp.f32 %v3320_v53  ;;  %v3912_v37 = vld [vmem:[%s6415_s7 + $0x2d0] sm:$0xff] }
 0x565   :  { %3886 = vst [vmem:[%s6415_s7 + $0x240] sm:$0xff] %v3346_v17  ;;  %3902 = vst [vmem:[%s6415_s7 + $0x280] sm:$0xff] %v3370_v10  ;;  %v3321_v52 = vadd.f32 1.0, %v4133_v27 }
 0x566   :  { %3918 = vst [vmem:[%s6415_s7 + $0x2c0] sm:$0xff] %v3394_v33  ;;  %v4135_v49 = vpop.eup %4134  ;;  %3887 = vst [vmem:[%s6415_s7 + $0x248] sm:$0xff] %v3347_v13 }
 0x567   :  { %3903 = vst [vmem:[%s6415_s7 + $0x288] sm:$0xff] %v3371_v32  ;;  %3919 = vst [vmem:[%s6415_s7 + $0x2c8] sm:$0xff] %v3395_v54  ;;  %v4137_v14 = vpop.eup %4136  ;;  %v3348_v8 = vmul.f32 %v4135_v49, %v3880_v7  ;;  %v3372_v31 = vmul.f32 %v4135_v49, %v3048_v16  ;;  %v3396_v21 = vmul.f32 %v4135_v49, %v3912_v37  ;;  %4144 = vrcp.f32 %v3321_v52  ;;  %v3914_v16 = vld [vmem:[%s6415_s7 + $0x2e0] sm:$0xff] }
 0x568   :  { %v3349_v42 = vmul.f32 %v4137_v14, %v3881_v11  ;;  %v3373_v29 = vmul.f32 %v4137_v14, %v3049_v44  ;;  %v3397_v48 = vmul.f32 %v4137_v14, %v3913_v12 }
 0x569   :  { %3888 = vst [vmem:[%s6415_s7 + $0x250] sm:$0xff] %v3348_v8  ;;  %3904 = vst [vmem:[%s6415_s7 + $0x290] sm:$0xff] %v3372_v31 }
 0x56a   :  { %3920 = vst [vmem:[%s6415_s7 + $0x2d0] sm:$0xff] %v3396_v21  ;;  %v4139_v43 = vpop.eup %4138  ;;  %3889 = vst [vmem:[%s6415_s7 + $0x258] sm:$0xff] %v3349_v42 }
 0x56b   :  { %3905 = vst [vmem:[%s6415_s7 + $0x298] sm:$0xff] %v3373_v29  ;;  %3921 = vst [vmem:[%s6415_s7 + $0x2d8] sm:$0xff] %v3397_v48  ;;  %v4141_v44 = vpop.eup %4140  ;;  %v3350_v30 = vmul.f32 %v4139_v43, %v3882_v3  ;;  %v3374_v55 = vmul.f32 %v4139_v43, %v3050_v62  ;;  %v3398_v41 = vmul.f32 %v4139_v43, %v3914_v16  ;;  %v3916_v62 = vld [vmem:[%s6415_s7 + $0x2f0] sm:$0xff] }
 0x56c   :  { %v3351_v38 = vmul.f32 %v4141_v44, %v3883_v18  ;;  %v3375_v36 = vmul.f32 %v4141_v44, %v3051_v56  ;;  %v3399_v24 = vmul.f32 %v4141_v44, %v3915_v22 }
 0x56d   :  { %3890 = vst [vmem:[%s6415_s7 + $0x260] sm:$0xff] %v3350_v30  ;;  %3906 = vst [vmem:[%s6415_s7 + $0x2a0] sm:$0xff] %v3374_v55 }
 0x56e   :  { %3922 = vst [vmem:[%s6415_s7 + $0x2e0] sm:$0xff] %v3398_v41  ;;  %v4143_v26 = vpop.eup %4142  ;;  %3891 = vst [vmem:[%s6415_s7 + $0x268] sm:$0xff] %v3351_v38 }
 0x56f   :  { %3907 = vst [vmem:[%s6415_s7 + $0x2a8] sm:$0xff] %v3375_v36  ;;  %3923 = vst [vmem:[%s6415_s7 + $0x2e8] sm:$0xff] %v3399_v24  ;;  %v3352_v56 = vmul.f32 %v4143_v26, %v3884_v46  ;;  %v3376_v6 = vmul.f32 %v4143_v26, %v3052_v39  ;;  %v3400_v47 = vmul.f32 %v4143_v26, %v3916_v62 }
 0x571   :  { %v4145_v4 = vpop.eup %4144  ;;  %3892 = vst [vmem:[%s6415_s7 + $0x270] sm:$0xff] %v3352_v56  ;;  %3908 = vst [vmem:[%s6415_s7 + $0x2b0] sm:$0xff] %v3376_v6 }
 0x572   :  { %3924 = vst [vmem:[%s6415_s7 + $0x2f0] sm:$0xff] %v3400_v47  ;;  %v3353_v39 = vmul.f32 %v4145_v4, %v3885_v63  ;;  %v3377_v9 = vmul.f32 %v4145_v4, %v3053_v35  ;;  %v3401_v34 = vmul.f32 %v4145_v4, %v3917_v58 }
 0x574   :  { %3893 = vst [vmem:[%s6415_s7 + $0x278] sm:$0xff] %v3353_v39  ;;  %3909 = vst [vmem:[%s6415_s7 + $0x2b8] sm:$0xff] %v3377_v9 }
 0x575   :  { %3925 = vst [vmem:[%s6415_s7 + $0x2f8] sm:$0xff] %v3401_v34 }
 0x576   :  { %3418 = vsyncpa [#allocation3], 1 }
 0x577   :  { %3419 = vsyncpa [#allocation5], 1 }

</bundles_post_ra>
